<compile_context>
chip_gen: v5e
topology: v5e:2x2
jax: 0.10.0
libtpu: 0.0.40
codegen_flags: <defaults>
</compile_context>

<pallas_src>
import math

import jax
import jax.numpy as jnp
from jax.experimental import pallas as pl
from jax.experimental.pallas import tpu as pltpu

DROPOUT_RATE = 0.4  # unused at inference

# --- model configuration (small, consistent with the module) ---
B, S, D = 2, 8, 64            # batch, seq, input_size (d_model; nhead=8 -> head_dim=8)
H = 32                        # hidden_size
NHEAD = 8
DH = D // NHEAD
FF = 4 * H                    # dim_feedforward = hidden_size * 4
NLAYER = 3
GENRE_OUT = 4                 # genre_output_size
STYLE_OUTPUT_SIZES = {"rock": 3, "electronic": 5}
HEAD_SIZES = (GENRE_OUT, STYLE_OUTPUT_SIZES["rock"], STYLE_OUTPUT_SIZES["electronic"])
N_HEADS_OUT = len(HEAD_SIZES)
OUT_PAD = 8                   # padded logits width per head
LN_EPS = 1e-5

SLAB_COLS = 3 * D             # 192 lanes: width of the widest parameter (fused QKV weight)

_VSPEC = pl.BlockSpec(memory_space=pltpu.MemorySpace.VMEM)


# ---------------- parameter-slab layout (shared by init & kernel) ----------------
def _build_layout():
    layout = {}
    cur = 0

    def add(name, rows, cols):
        nonlocal cur
        layout[name] = (cur, rows, cols)
        cur += ((rows + 7) // 8) * 8        # keep every section 8-sublane aligned

    for l in range(NLAYER):
        add(f"wqkv{l}", D, 3 * D)           # fused Q/K/V weight            (64, 192)
        add(f"bqkv{l}", 1, 3 * D)           # fused Q/K/V bias              (1, 192)
        add(f"wo{l}", D, D)                 # attention output projection   (64, 64)
        add(f"vec{l}", 6, D)                # bo, ln1g, ln1b, b2, ln2g, ln2b
        add(f"w1_{l}", D, FF)               # FFN up                        (64, 128)
        add(f"b1_{l}", 1, FF)
        add(f"w2_{l}", FF, D)               # FFN down                      (128, 64)
    add("wa1", D, H)                        # attention-pooling Linear 1    (64, 32)
    add("avec", 2, H)                       # row0 = ba1, row1 = wa2^T (ba2 cancels in softmax)
    add("fw1", D, H)                        # feature_fc Linear 1           (64, 32)
    add("fvec", 6, H)                       # fb1, fg1, fbe1, fb2, fg2, fbe2
    add("fw2", H, H)                        # feature_fc Linear 2           (32, 32)
    for k in range(N_HEADS_OUT):
        add(f"hw1_{k}", H, H)               # head Linear 1                 (32, 32)
        add(f"hvec_{k}", 5, H)              # b1, g1, be1, b2 (16 lanes), b3 (8 lanes)
        add(f"hw2_{k}", H, H // 2)          # head Linear 2                 (32, 16)
        add(f"hw3_{k}", H // 2, OUT_PAD)    # head Linear 3 (lane-padded)   (16, 8)
    return layout, ((cur + 7) // 8) * 8


LAYOUT, SLAB_ROWS = _build_layout()


def _blk(slab_ref, name):
    r0, rows, cols = LAYOUT[name]
    return slab_ref[r0:r0 + rows, 0:cols]   # static slice -> plain VMEM load


def _ln(x, g, b):
    mu = jnp.mean(x, axis=-1, keepdims=True)
    var = jnp.mean((x - mu) ** 2, axis=-1, keepdims=True)
    return (x - mu) * jax.lax.rsqrt(var + LN_EPS) * g + b


def _softmax_lastdim(x):
    m = jnp.max(x, axis=-1, keepdims=True)
    e = jnp.exp(x - m)
    return e * pl.reciprocal(jnp.sum(e, axis=-1, keepdims=True), approx=True)


# ---------------- single fused forward kernel ----------------
def _fused_forward_kernel(x_ref, slab_ref, out_ref):
    scale = 1.0 / math.sqrt(DH)
    xf = x_ref[...]                                           # (B*S, D) flat activations

    # ---- 3 transformer encoder layers (post-norm, ReLU FFN), statically unrolled ----
    for l in range(NLAYER):
        wqkv = _blk(slab_ref, f"wqkv{l}")                     # (D, 3D)
        bqkv = _blk(slab_ref, f"bqkv{l}")                     # (1, 3D)
        wo = _blk(slab_ref, f"wo{l}")                         # (D, D)
        v64 = _blk(slab_ref, f"vec{l}")                       # bo, ln1g, ln1b, b2, ln2g, ln2b
        w1 = _blk(slab_ref, f"w1_{l}")                        # (D, FF)
        b1 = _blk(slab_ref, f"b1_{l}")                        # (1, FF)
        w2 = _blk(slab_ref, f"w2_{l}")                        # (FF, D)

        # fused Q/K/V projection: one MXU pass, kept flat as (B*S, 3D)
        qkv = jnp.dot(xf, wqkv, preferred_element_type=jnp.float32) + bqkv

        # head-batched attention: heads stacked on the (cheap) major axis so the whole
        # layer is 2 batched einsums (single batch dim) + 1 softmax.
        def split_heads(col0):
            parts = [qkv[:, col0 + h * DH:col0 + (h + 1) * DH].reshape(B, S, DH)
                     for h in range(NHEAD)]
            return jnp.concatenate(parts, axis=0)             # (NHEAD*B, S, DH)

        qh, kh, vh = split_heads(0), split_heads(D), split_heads(2 * D)
        s = jnp.einsum("nqd,nkd->nqk", qh, kh,
                       preferred_element_type=jnp.float32) * scale
        p = _softmax_lastdim(s)
        o = jnp.einsum("nqk,nkd->nqd", p, vh,
                       preferred_element_type=jnp.float32)     # (NHEAD*B, S, DH)

        # reassemble heads -> (B*S, D), then ONE K=64 output-projection matmul
        oh = jnp.concatenate(
            [o[h * B:(h + 1) * B].reshape(B * S, DH) for h in range(NHEAD)], axis=-1)
        proj = jnp.dot(oh, wo, preferred_element_type=jnp.float32) + v64[0:1, :]

        y = _ln(xf + proj, v64[1:2, :], v64[2:3, :])          # norm1(residual)
        hid = jnp.maximum(jnp.dot(y, w1, preferred_element_type=jnp.float32) + b1, 0.0)
        ff = jnp.dot(hid, w2, preferred_element_type=jnp.float32) + v64[3:4, :]
        xf = _ln(y + ff, v64[4:5, :], v64[5:6, :])            # norm2(residual)

    # ---- attention pooling over the sequence (lane-dense) ----
    avec = _blk(slab_ref, "avec")                             # row0 = ba1, row1 = wa2^T
    ahid = jnp.tanh(jnp.dot(xf, _blk(slab_ref, "wa1"),
                            preferred_element_type=jnp.float32) + avec[0:1, :])
    # scores: VPU multiply + lane reduction (no width-1 matmul); the Linear(H,1) bias is
    # constant over the sequence so it cancels in Softmax(dim=1) and is dropped.
    sc = jnp.sum(ahid.reshape(B, S, H) * avec[1:2, :], axis=-1)   # (B, S), S on lanes
    w = _softmax_lastdim(sc)                                  # (B, S)
    ctx = jnp.sum(w.reshape(B, S, 1) * xf.reshape(B, S, D), axis=1)   # (B, D)

    # ---- feature_fc: (Linear, LN, ReLU) x2 ----
    fv = _blk(slab_ref, "fvec")                               # fb1, fg1, fbe1, fb2, fg2, fbe2
    h1 = jnp.maximum(_ln(jnp.dot(ctx, _blk(slab_ref, "fw1"),
                                 preferred_element_type=jnp.float32)
                         + fv[0:1, :], fv[1:2, :], fv[2:3, :]), 0.0)
    feat = jnp.maximum(_ln(jnp.dot(h1, _blk(slab_ref, "fw2"),
                                   preferred_element_type=jnp.float32)
                           + fv[3:4, :], fv[4:5, :], fv[5:6, :]), 0.0)   # (B, H)

    # ---- classifier heads (genre, rock, electronic) -> one (B, 3*OUT_PAD) store ----
    logits = []
    for k in range(N_HEADS_OUT):
        hv = _blk(slab_ref, f"hvec_{k}")                      # b1, g1, be1, b2, b3
        a1 = jnp.maximum(_ln(jnp.dot(feat, _blk(slab_ref, f"hw1_{k}"),
                                     preferred_element_type=jnp.float32)
                             + hv[0:1, :], hv[1:2, :], hv[2:3, :]), 0.0)
        a2 = jnp.maximum(jnp.dot(a1, _blk(slab_ref, f"hw2_{k}"),
                                 preferred_element_type=jnp.float32)
                         + hv[3:4, 0:H // 2], 0.0)
        logits.append(jnp.dot(a2, _blk(slab_ref, f"hw3_{k}"),
                              preferred_element_type=jnp.float32) + hv[4:5, 0:OUT_PAD])
    out_ref[...] = jnp.concatenate(logits, axis=-1)           # single full store


# ---------------- wrapper: one pallas_call for the whole forward ----------------
def hierarchical_classifier_forward(param_slab, features):
    out = pl.pallas_call(
        _fused_forward_kernel,
        out_shape=jax.ShapeDtypeStruct((B, N_HEADS_OUT * OUT_PAD), jnp.float32),
        in_specs=[_VSPEC, _VSPEC],
        out_specs=_VSPEC,
    )(features.reshape(B * S, D), param_slab)

    genre_logits = out[:, :GENRE_OUT]
    style_logits = {
        "rock": out[:, OUT_PAD:OUT_PAD + STYLE_OUTPUT_SIZES["rock"]],
        "electronic": out[:, 2 * OUT_PAD:2 * OUT_PAD + STYLE_OUTPUT_SIZES["electronic"]],
    }
    return genre_logits, style_logits


# ---------------- deterministic parameter init (single packed slab) ----------------
def _dense(key, fan_in, fan_out):
    w = jax.random.normal(key, (fan_in, fan_out), jnp.float32) * 0.02
    b = jnp.zeros((1, fan_out), jnp.float32)
    return w, b


def init_params(key):
    """Builds the single packed f32 parameter slab of shape (SLAB_ROWS, SLAB_COLS)."""
    keys = iter(jax.random.split(key, 64))
    slab = jnp.zeros((SLAB_ROWS, SLAB_COLS), jnp.float32)

    def put(name, val):
        nonlocal slab
        r0, rows, cols = LAYOUT[name]
        assert val.shape == (rows, cols), (name, val.shape, (rows, cols))
        slab = slab.at[r0:r0 + rows, 0:cols].set(val)

    ones_d = jnp.ones((1, D), jnp.float32)
    zeros_d = jnp.zeros((1, D), jnp.float32)
    ones_h = jnp.ones((1, H), jnp.float32)
    zeros_h = jnp.zeros((1, H), jnp.float32)

    # --- transformer encoder layers ---
    for l in range(NLAYER):
        wq, bq = _dense(next(keys), D, D)
        wk, bk = _dense(next(keys), D, D)
        wv, bv = _dense(next(keys), D, D)
        wo, bo = _dense(next(keys), D, D)
        w1, b1 = _dense(next(keys), D, FF)
        w2, b2 = _dense(next(keys), FF, D)
        put(f"wqkv{l}", jnp.concatenate([wq, wk, wv], axis=1))
        put(f"bqkv{l}", jnp.concatenate([bq, bk, bv], axis=1))
        put(f"wo{l}", wo)
        put(f"vec{l}", jnp.concatenate([bo, ones_d, zeros_d, b2, ones_d, zeros_d], axis=0))
        put(f"w1_{l}", w1)
        put(f"b1_{l}", b1)
        put(f"w2_{l}", w2)

    # --- attention pooling MLP: Linear(D,H), Tanh, Linear(H,1), Softmax(dim=1) ---
    wa1, ba1 = _dense(next(keys), D, H)
    wa2, _ba2 = _dense(next(keys), H, 1)     # ba2 cancels inside Softmax(dim=1) -> not packed
    put("wa1", wa1)
    put("avec", jnp.concatenate([ba1, wa2.T], axis=0))

    # --- feature_fc ---
    fw1, fb1 = _dense(next(keys), D, H)
    fw2, fb2 = _dense(next(keys), H, H)
    put("fw1", fw1)
    put("fw2", fw2)
    put("fvec", jnp.concatenate([fb1, ones_h, zeros_h, fb2, ones_h, zeros_h], axis=0))

    # --- classifier heads (genre + styles); final layer lane-padded to OUT_PAD ---
    for k, out_size in enumerate(HEAD_SIZES):
        w1, b1 = _dense(next(keys), H, H)
        w2, b2 = _dense(next(keys), H, H // 2)
        w3, b3 = _dense(next(keys), H // 2, out_size)
        put(f"hw1_{k}", w1)
        put(f"hvec_{k}", jnp.concatenate(
            [b1, ones_h, zeros_h,
             jnp.pad(b2, ((0, 0), (0, H - H // 2))),
             jnp.pad(b3, ((0, 0), (0, H - out_size)))], axis=0))
        put(f"hw2_{k}", w2)
        put(f"hw3_{k}", jnp.pad(w3, ((0, 0), (0, OUT_PAD - out_size))))
    return slab


if __name__ == "__main__":
    root = jax.random.PRNGKey(0)
    k_param, k_input = jax.random.split(root)
    param_slab = init_params(k_param)
    features = jax.random.normal(k_input, (B, S, D), jnp.float32)

    genre_logits, style_logits = jax.jit(hierarchical_classifier_forward)(param_slab, features)
    jax.block_until_ready(genre_logits)
    jax.block_until_ready(style_logits)

    assert genre_logits.shape == (B, GENRE_OUT)
    assert bool(jnp.all(jnp.isfinite(genre_logits)))
    for g, o in STYLE_OUTPUT_SIZES.items():
        assert style_logits[g].shape == (B, o)
        assert bool(jnp.all(jnp.isfinite(style_logits[g])))

    print("KERNEL_OK")
</pallas_src>

<mosaic_0001>
module attributes {stable_mosaic.version = 11 : i64} {
  func.func @_fused_forward_kernel(%arg0: memref<16x64xf32, #tpu.memory_space<vmem>>, %arg1: memref<1472x192xf32, #tpu.memory_space<vmem>>, %arg2: memref<2x24xf32, #tpu.memory_space<vmem>>) attributes {dimension_semantics = [], scalar_prefetch = 0 : i64, scratch_operands = 0 : i64, tpu.core_type = #tpu.core_type<tc>} {
    %c0 = arith.constant 0 : index
    %c0_0 = arith.constant 0 : index
    %0 = vector.load %arg0[%c0, %c0_0] : memref<16x64xf32, #tpu.memory_space<vmem>>, vector<16x64xf32>
    %c0_1 = arith.constant 0 : index
    %c0_2 = arith.constant 0 : index
    %1 = vector.load %arg1[%c0_1, %c0_2] : memref<1472x192xf32, #tpu.memory_space<vmem>>, vector<64x192xf32>
    %c64 = arith.constant 64 : index
    %c0_3 = arith.constant 0 : index
    %2 = vector.load %arg1[%c64, %c0_3] : memref<1472x192xf32, #tpu.memory_space<vmem>>, vector<1x192xf32>
    %c72 = arith.constant 72 : index
    %c0_4 = arith.constant 0 : index
    %3 = vector.load %arg1[%c72, %c0_4] : memref<1472x192xf32, #tpu.memory_space<vmem>>, vector<64x64xf32>
    %c136 = arith.constant 136 : index
    %c0_5 = arith.constant 0 : index
    %4 = vector.load %arg1[%c136, %c0_5] : memref<1472x192xf32, #tpu.memory_space<vmem>>, vector<6x64xf32>
    %c144 = arith.constant 144 : index
    %c0_6 = arith.constant 0 : index
    %5 = vector.load %arg1[%c144, %c0_6] : memref<1472x192xf32, #tpu.memory_space<vmem>>, vector<64x128xf32>
    %c208 = arith.constant 208 : index
    %c0_7 = arith.constant 0 : index
    %6 = vector.load %arg1[%c208, %c0_7] : memref<1472x192xf32, #tpu.memory_space<vmem>>, vector<1x128xf32>
    %c216 = arith.constant 216 : index
    %c0_8 = arith.constant 0 : index
    %7 = vector.load %arg1[%c216, %c0_8] : memref<1472x192xf32, #tpu.memory_space<vmem>>, vector<128x64xf32>
    %cst = arith.constant dense<0.000000e+00> : vector<16x192xf32>
    %8 = tpu.matmul %0, %1, %cst {dimension_numbers = #tpu.dot_dimension_numbers<[1], [0], [0], [1], [0, 0, 1, 1], [], []>} : vector<16x64xf32>, vector<64x192xf32>, vector<16x192xf32> -> vector<16x192xf32>
    %9 = vector.broadcast %2 : vector<1x192xf32> to vector<16x192xf32>
    %10 = arith.addf %8, %9 : vector<16x192xf32>
    %11 = vector.extract_strided_slice %10 {offsets = [0, 0], sizes = [16, 8], strides = [1, 1]} : vector<16x192xf32> to vector<16x8xf32>
    %12 = vector.shape_cast %11 : vector<16x8xf32> to vector<2x8x8xf32>
    %13 = vector.extract_strided_slice %10 {offsets = [0, 8], sizes = [16, 8], strides = [1, 1]} : vector<16x192xf32> to vector<16x8xf32>
    %14 = vector.shape_cast %13 : vector<16x8xf32> to vector<2x8x8xf32>
    %15 = vector.extract_strided_slice %10 {offsets = [0, 16], sizes = [16, 8], strides = [1, 1]} : vector<16x192xf32> to vector<16x8xf32>
    %16 = vector.shape_cast %15 : vector<16x8xf32> to vector<2x8x8xf32>
    %17 = vector.extract_strided_slice %10 {offsets = [0, 24], sizes = [16, 8], strides = [1, 1]} : vector<16x192xf32> to vector<16x8xf32>
    %18 = vector.shape_cast %17 : vector<16x8xf32> to vector<2x8x8xf32>
    %19 = vector.extract_strided_slice %10 {offsets = [0, 32], sizes = [16, 8], strides = [1, 1]} : vector<16x192xf32> to vector<16x8xf32>
    %20 = vector.shape_cast %19 : vector<16x8xf32> to vector<2x8x8xf32>
    %21 = vector.extract_strided_slice %10 {offsets = [0, 40], sizes = [16, 8], strides = [1, 1]} : vector<16x192xf32> to vector<16x8xf32>
    %22 = vector.shape_cast %21 : vector<16x8xf32> to vector<2x8x8xf32>
    %23 = vector.extract_strided_slice %10 {offsets = [0, 48], sizes = [16, 8], strides = [1, 1]} : vector<16x192xf32> to vector<16x8xf32>
    %24 = vector.shape_cast %23 : vector<16x8xf32> to vector<2x8x8xf32>
    %25 = vector.extract_strided_slice %10 {offsets = [0, 56], sizes = [16, 8], strides = [1, 1]} : vector<16x192xf32> to vector<16x8xf32>
    %26 = vector.shape_cast %25 : vector<16x8xf32> to vector<2x8x8xf32>
    %27 = tpu.concatenate %12, %14, %16, %18, %20, %22, %24, %26 in 0 : vector<2x8x8xf32>, vector<2x8x8xf32>, vector<2x8x8xf32>, vector<2x8x8xf32>, vector<2x8x8xf32>, vector<2x8x8xf32>, vector<2x8x8xf32>, vector<2x8x8xf32> -> vector<16x8x8xf32>
    %28 = vector.extract_strided_slice %10 {offsets = [0, 64], sizes = [16, 8], strides = [1, 1]} : vector<16x192xf32> to vector<16x8xf32>
    %29 = vector.shape_cast %28 : vector<16x8xf32> to vector<2x8x8xf32>
    %30 = vector.extract_strided_slice %10 {offsets = [0, 72], sizes = [16, 8], strides = [1, 1]} : vector<16x192xf32> to vector<16x8xf32>
    %31 = vector.shape_cast %30 : vector<16x8xf32> to vector<2x8x8xf32>
    %32 = vector.extract_strided_slice %10 {offsets = [0, 80], sizes = [16, 8], strides = [1, 1]} : vector<16x192xf32> to vector<16x8xf32>
    %33 = vector.shape_cast %32 : vector<16x8xf32> to vector<2x8x8xf32>
    %34 = vector.extract_strided_slice %10 {offsets = [0, 88], sizes = [16, 8], strides = [1, 1]} : vector<16x192xf32> to vector<16x8xf32>
    %35 = vector.shape_cast %34 : vector<16x8xf32> to vector<2x8x8xf32>
    %36 = vector.extract_strided_slice %10 {offsets = [0, 96], sizes = [16, 8], strides = [1, 1]} : vector<16x192xf32> to vector<16x8xf32>
    %37 = vector.shape_cast %36 : vector<16x8xf32> to vector<2x8x8xf32>
    %38 = vector.extract_strided_slice %10 {offsets = [0, 104], sizes = [16, 8], strides = [1, 1]} : vector<16x192xf32> to vector<16x8xf32>
    %39 = vector.shape_cast %38 : vector<16x8xf32> to vector<2x8x8xf32>
    %40 = vector.extract_strided_slice %10 {offsets = [0, 112], sizes = [16, 8], strides = [1, 1]} : vector<16x192xf32> to vector<16x8xf32>
    %41 = vector.shape_cast %40 : vector<16x8xf32> to vector<2x8x8xf32>
    %42 = vector.extract_strided_slice %10 {offsets = [0, 120], sizes = [16, 8], strides = [1, 1]} : vector<16x192xf32> to vector<16x8xf32>
    %43 = vector.shape_cast %42 : vector<16x8xf32> to vector<2x8x8xf32>
    %44 = tpu.concatenate %29, %31, %33, %35, %37, %39, %41, %43 in 0 : vector<2x8x8xf32>, vector<2x8x8xf32>, vector<2x8x8xf32>, vector<2x8x8xf32>, vector<2x8x8xf32>, vector<2x8x8xf32>, vector<2x8x8xf32>, vector<2x8x8xf32> -> vector<16x8x8xf32>
    %45 = vector.extract_strided_slice %10 {offsets = [0, 128], sizes = [16, 8], strides = [1, 1]} : vector<16x192xf32> to vector<16x8xf32>
    %46 = vector.shape_cast %45 : vector<16x8xf32> to vector<2x8x8xf32>
    %47 = vector.extract_strided_slice %10 {offsets = [0, 136], sizes = [16, 8], strides = [1, 1]} : vector<16x192xf32> to vector<16x8xf32>
    %48 = vector.shape_cast %47 : vector<16x8xf32> to vector<2x8x8xf32>
    %49 = vector.extract_strided_slice %10 {offsets = [0, 144], sizes = [16, 8], strides = [1, 1]} : vector<16x192xf32> to vector<16x8xf32>
    %50 = vector.shape_cast %49 : vector<16x8xf32> to vector<2x8x8xf32>
    %51 = vector.extract_strided_slice %10 {offsets = [0, 152], sizes = [16, 8], strides = [1, 1]} : vector<16x192xf32> to vector<16x8xf32>
    %52 = vector.shape_cast %51 : vector<16x8xf32> to vector<2x8x8xf32>
    %53 = vector.extract_strided_slice %10 {offsets = [0, 160], sizes = [16, 8], strides = [1, 1]} : vector<16x192xf32> to vector<16x8xf32>
    %54 = vector.shape_cast %53 : vector<16x8xf32> to vector<2x8x8xf32>
    %55 = vector.extract_strided_slice %10 {offsets = [0, 168], sizes = [16, 8], strides = [1, 1]} : vector<16x192xf32> to vector<16x8xf32>
    %56 = vector.shape_cast %55 : vector<16x8xf32> to vector<2x8x8xf32>
    %57 = vector.extract_strided_slice %10 {offsets = [0, 176], sizes = [16, 8], strides = [1, 1]} : vector<16x192xf32> to vector<16x8xf32>
    %58 = vector.shape_cast %57 : vector<16x8xf32> to vector<2x8x8xf32>
    %59 = vector.extract_strided_slice %10 {offsets = [0, 184], sizes = [16, 8], strides = [1, 1]} : vector<16x192xf32> to vector<16x8xf32>
    %60 = vector.shape_cast %59 : vector<16x8xf32> to vector<2x8x8xf32>
    %61 = tpu.concatenate %46, %48, %50, %52, %54, %56, %58, %60 in 0 : vector<2x8x8xf32>, vector<2x8x8xf32>, vector<2x8x8xf32>, vector<2x8x8xf32>, vector<2x8x8xf32>, vector<2x8x8xf32>, vector<2x8x8xf32>, vector<2x8x8xf32> -> vector<16x8x8xf32>
    "tpu.trace_start"() <{level = 10 : i32, message = "nqd,nkd->nqk"}> : () -> ()
    %cst_9 = arith.constant dense<0.000000e+00> : vector<16x8x8xf32>
    %62 = tpu.matmul %27, %44, %cst_9 {dimension_numbers = #tpu.dot_dimension_numbers<[2], [2], [1], [1], [0, 0, 0, 1, 1, 1], [0], [0]>} : vector<16x8x8xf32>, vector<16x8x8xf32>, vector<16x8x8xf32> -> vector<16x8x8xf32>
    "tpu.trace_stop"() : () -> ()
    %cst_10 = arith.constant 0.353553385 : f32
    %63 = vector.broadcast %cst_10 : f32 to vector<16x8x8xf32>
    %64 = arith.mulf %62, %63 : vector<16x8x8xf32>
    %cst_11 = arith.constant dense<0xFF800000> : vector<16x8xf32>
    %65 = vector.multi_reduction <maximumf>, %64, %cst_11 [2] : vector<16x8x8xf32> to vector<16x8xf32>
    %66 = vector.shape_cast %65 : vector<16x8xf32> to vector<16x8x1xf32>
    %67 = vector.broadcast %66 : vector<16x8x1xf32> to vector<16x8x8xf32>
    %68 = arith.subf %64, %67 : vector<16x8x8xf32>
    %69 = math.exp %68 : vector<16x8x8xf32>
    %cst_12 = arith.constant dense<0.000000e+00> : vector<16x8xf32>
    %70 = vector.multi_reduction <add>, %69, %cst_12 [2] : vector<16x8x8xf32> to vector<16x8xf32>
    %71 = vector.shape_cast %70 : vector<16x8xf32> to vector<16x8x1xf32>
    %72 = tpu.reciprocal %71 {approx = true} : vector<16x8x1xf32> -> vector<16x8x1xf32>
    %73 = vector.broadcast %72 : vector<16x8x1xf32> to vector<16x8x8xf32>
    %74 = arith.mulf %69, %73 : vector<16x8x8xf32>
    "tpu.trace_start"() <{level = 10 : i32, message = "nqk,nkd->nqd"}> : () -> ()
    %cst_13 = arith.constant dense<0.000000e+00> : vector<16x8x8xf32>
    %75 = tpu.matmul %74, %61, %cst_13 {dimension_numbers = #tpu.dot_dimension_numbers<[2], [1], [1], [2], [0, 0, 0, 1, 1, 2], [0], [0]>} : vector<16x8x8xf32>, vector<16x8x8xf32>, vector<16x8x8xf32> -> vector<16x8x8xf32>
    "tpu.trace_stop"() : () -> ()
    %76 = vector.extract_strided_slice %75 {offsets = [0, 0, 0], sizes = [2, 8, 8], strides = [1, 1, 1]} : vector<16x8x8xf32> to vector<2x8x8xf32>
    %77 = vector.shape_cast %76 : vector<2x8x8xf32> to vector<16x8xf32>
    %78 = vector.extract_strided_slice %75 {offsets = [2, 0, 0], sizes = [2, 8, 8], strides = [1, 1, 1]} : vector<16x8x8xf32> to vector<2x8x8xf32>
    %79 = vector.shape_cast %78 : vector<2x8x8xf32> to vector<16x8xf32>
    %80 = vector.extract_strided_slice %75 {offsets = [4, 0, 0], sizes = [2, 8, 8], strides = [1, 1, 1]} : vector<16x8x8xf32> to vector<2x8x8xf32>
    %81 = vector.shape_cast %80 : vector<2x8x8xf32> to vector<16x8xf32>
    %82 = vector.extract_strided_slice %75 {offsets = [6, 0, 0], sizes = [2, 8, 8], strides = [1, 1, 1]} : vector<16x8x8xf32> to vector<2x8x8xf32>
    %83 = vector.shape_cast %82 : vector<2x8x8xf32> to vector<16x8xf32>
    %84 = vector.extract_strided_slice %75 {offsets = [8, 0, 0], sizes = [2, 8, 8], strides = [1, 1, 1]} : vector<16x8x8xf32> to vector<2x8x8xf32>
    %85 = vector.shape_cast %84 : vector<2x8x8xf32> to vector<16x8xf32>
    %86 = vector.extract_strided_slice %75 {offsets = [10, 0, 0], sizes = [2, 8, 8], strides = [1, 1, 1]} : vector<16x8x8xf32> to vector<2x8x8xf32>
    %87 = vector.shape_cast %86 : vector<2x8x8xf32> to vector<16x8xf32>
    %88 = vector.extract_strided_slice %75 {offsets = [12, 0, 0], sizes = [2, 8, 8], strides = [1, 1, 1]} : vector<16x8x8xf32> to vector<2x8x8xf32>
    %89 = vector.shape_cast %88 : vector<2x8x8xf32> to vector<16x8xf32>
    %90 = vector.extract_strided_slice %75 {offsets = [14, 0, 0], sizes = [2, 8, 8], strides = [1, 1, 1]} : vector<16x8x8xf32> to vector<2x8x8xf32>
    %91 = vector.shape_cast %90 : vector<2x8x8xf32> to vector<16x8xf32>
    %92 = tpu.concatenate %77, %79, %81, %83, %85, %87, %89, %91 in 1 : vector<16x8xf32>, vector<16x8xf32>, vector<16x8xf32>, vector<16x8xf32>, vector<16x8xf32>, vector<16x8xf32>, vector<16x8xf32>, vector<16x8xf32> -> vector<16x64xf32>
    %cst_14 = arith.constant dense<0.000000e+00> : vector<16x64xf32>
    %93 = tpu.matmul %92, %3, %cst_14 {dimension_numbers = #tpu.dot_dimension_numbers<[1], [0], [0], [1], [0, 0, 1, 1], [], []>} : vector<16x64xf32>, vector<64x64xf32>, vector<16x64xf32> -> vector<16x64xf32>
    %94 = vector.extract_strided_slice %4 {offsets = [0, 0], sizes = [1, 64], strides = [1, 1]} : vector<6x64xf32> to vector<1x64xf32>
    %95 = vector.broadcast %94 : vector<1x64xf32> to vector<16x64xf32>
    %96 = arith.addf %93, %95 : vector<16x64xf32>
    %97 = arith.addf %0, %96 : vector<16x64xf32>
    %98 = vector.extract_strided_slice %4 {offsets = [1, 0], sizes = [1, 64], strides = [1, 1]} : vector<6x64xf32> to vector<1x64xf32>
    %99 = vector.extract_strided_slice %4 {offsets = [2, 0], sizes = [1, 64], strides = [1, 1]} : vector<6x64xf32> to vector<1x64xf32>
    %cst_15 = arith.constant dense<0.000000e+00> : vector<16xf32>
    %100 = vector.multi_reduction <add>, %97, %cst_15 [1] : vector<16x64xf32> to vector<16xf32>
    %101 = vector.shape_cast %100 : vector<16xf32> to vector<16x1xf32>
    %cst_16 = arith.constant 6.400000e+01 : f32
    %102 = vector.broadcast %cst_16 : f32 to vector<16x1xf32>
    %103 = arith.divf %101, %102 : vector<16x1xf32>
    %104 = vector.broadcast %103 : vector<16x1xf32> to vector<16x64xf32>
    %105 = arith.subf %97, %104 : vector<16x64xf32>
    %106 = arith.mulf %105, %105 : vector<16x64xf32>
    %cst_17 = arith.constant dense<0.000000e+00> : vector<16xf32>
    %107 = vector.multi_reduction <add>, %106, %cst_17 [1] : vector<16x64xf32> to vector<16xf32>
    %108 = vector.shape_cast %107 : vector<16xf32> to vector<16x1xf32>
    %cst_18 = arith.constant 6.400000e+01 : f32
    %109 = vector.broadcast %cst_18 : f32 to vector<16x1xf32>
    %110 = arith.divf %108, %109 : vector<16x1xf32>
    %111 = vector.broadcast %103 : vector<16x1xf32> to vector<16x64xf32>
    %112 = arith.subf %97, %111 : vector<16x64xf32>
    %cst_19 = arith.constant 9.99999974E-6 : f32
    %113 = vector.broadcast %cst_19 : f32 to vector<16x1xf32>
    %114 = arith.addf %110, %113 : vector<16x1xf32>
    %115 = math.rsqrt %114 : vector<16x1xf32>
    %116 = vector.broadcast %115 : vector<16x1xf32> to vector<16x64xf32>
    %117 = arith.mulf %112, %116 : vector<16x64xf32>
    %118 = vector.broadcast %98 : vector<1x64xf32> to vector<16x64xf32>
    %119 = arith.mulf %117, %118 : vector<16x64xf32>
    %120 = vector.broadcast %99 : vector<1x64xf32> to vector<16x64xf32>
    %121 = arith.addf %119, %120 : vector<16x64xf32>
    %cst_20 = arith.constant dense<0.000000e+00> : vector<16x128xf32>
    %122 = tpu.matmul %121, %5, %cst_20 {dimension_numbers = #tpu.dot_dimension_numbers<[1], [0], [0], [1], [0, 0, 1, 1], [], []>} : vector<16x64xf32>, vector<64x128xf32>, vector<16x128xf32> -> vector<16x128xf32>
    %123 = vector.broadcast %6 : vector<1x128xf32> to vector<16x128xf32>
    %124 = arith.addf %122, %123 : vector<16x128xf32>
    %cst_21 = arith.constant 0.000000e+00 : f32
    %125 = vector.broadcast %cst_21 : f32 to vector<16x128xf32>
    %126 = arith.maximumf %124, %125 : vector<16x128xf32>
    %cst_22 = arith.constant dense<0.000000e+00> : vector<16x64xf32>
    %127 = tpu.matmul %126, %7, %cst_22 {dimension_numbers = #tpu.dot_dimension_numbers<[1], [0], [0], [1], [0, 0, 1, 1], [], []>} : vector<16x128xf32>, vector<128x64xf32>, vector<16x64xf32> -> vector<16x64xf32>
    %128 = vector.extract_strided_slice %4 {offsets = [3, 0], sizes = [1, 64], strides = [1, 1]} : vector<6x64xf32> to vector<1x64xf32>
    %129 = vector.broadcast %128 : vector<1x64xf32> to vector<16x64xf32>
    %130 = arith.addf %127, %129 : vector<16x64xf32>
    %131 = arith.addf %121, %130 : vector<16x64xf32>
    %132 = vector.extract_strided_slice %4 {offsets = [4, 0], sizes = [1, 64], strides = [1, 1]} : vector<6x64xf32> to vector<1x64xf32>
    %133 = vector.extract_strided_slice %4 {offsets = [5, 0], sizes = [1, 64], strides = [1, 1]} : vector<6x64xf32> to vector<1x64xf32>
    %cst_23 = arith.constant dense<0.000000e+00> : vector<16xf32>
    %134 = vector.multi_reduction <add>, %131, %cst_23 [1] : vector<16x64xf32> to vector<16xf32>
    %135 = vector.shape_cast %134 : vector<16xf32> to vector<16x1xf32>
    %cst_24 = arith.constant 6.400000e+01 : f32
    %136 = vector.broadcast %cst_24 : f32 to vector<16x1xf32>
    %137 = arith.divf %135, %136 : vector<16x1xf32>
    %138 = vector.broadcast %137 : vector<16x1xf32> to vector<16x64xf32>
    %139 = arith.subf %131, %138 : vector<16x64xf32>
    %140 = arith.mulf %139, %139 : vector<16x64xf32>
    %cst_25 = arith.constant dense<0.000000e+00> : vector<16xf32>
    %141 = vector.multi_reduction <add>, %140, %cst_25 [1] : vector<16x64xf32> to vector<16xf32>
    %142 = vector.shape_cast %141 : vector<16xf32> to vector<16x1xf32>
    %cst_26 = arith.constant 6.400000e+01 : f32
    %143 = vector.broadcast %cst_26 : f32 to vector<16x1xf32>
    %144 = arith.divf %142, %143 : vector<16x1xf32>
    %145 = vector.broadcast %137 : vector<16x1xf32> to vector<16x64xf32>
    %146 = arith.subf %131, %145 : vector<16x64xf32>
    %cst_27 = arith.constant 9.99999974E-6 : f32
    %147 = vector.broadcast %cst_27 : f32 to vector<16x1xf32>
    %148 = arith.addf %144, %147 : vector<16x1xf32>
    %149 = math.rsqrt %148 : vector<16x1xf32>
    %150 = vector.broadcast %149 : vector<16x1xf32> to vector<16x64xf32>
    %151 = arith.mulf %146, %150 : vector<16x64xf32>
    %152 = vector.broadcast %132 : vector<1x64xf32> to vector<16x64xf32>
    %153 = arith.mulf %151, %152 : vector<16x64xf32>
    %154 = vector.broadcast %133 : vector<1x64xf32> to vector<16x64xf32>
    %155 = arith.addf %153, %154 : vector<16x64xf32>
    %c344 = arith.constant 344 : index
    %c0_28 = arith.constant 0 : index
    %156 = vector.load %arg1[%c344, %c0_28] : memref<1472x192xf32, #tpu.memory_space<vmem>>, vector<64x192xf32>
    %c408 = arith.constant 408 : index
    %c0_29 = arith.constant 0 : index
    %157 = vector.load %arg1[%c408, %c0_29] : memref<1472x192xf32, #tpu.memory_space<vmem>>, vector<1x192xf32>
    %c416 = arith.constant 416 : index
    %c0_30 = arith.constant 0 : index
    %158 = vector.load %arg1[%c416, %c0_30] : memref<1472x192xf32, #tpu.memory_space<vmem>>, vector<64x64xf32>
    %c480 = arith.constant 480 : index
    %c0_31 = arith.constant 0 : index
    %159 = vector.load %arg1[%c480, %c0_31] : memref<1472x192xf32, #tpu.memory_space<vmem>>, vector<6x64xf32>
    %c488 = arith.constant 488 : index
    %c0_32 = arith.constant 0 : index
    %160 = vector.load %arg1[%c488, %c0_32] : memref<1472x192xf32, #tpu.memory_space<vmem>>, vector<64x128xf32>
    %c552 = arith.constant 552 : index
    %c0_33 = arith.constant 0 : index
    %161 = vector.load %arg1[%c552, %c0_33] : memref<1472x192xf32, #tpu.memory_space<vmem>>, vector<1x128xf32>
    %c560 = arith.constant 560 : index
    %c0_34 = arith.constant 0 : index
    %162 = vector.load %arg1[%c560, %c0_34] : memref<1472x192xf32, #tpu.memory_space<vmem>>, vector<128x64xf32>
    %cst_35 = arith.constant dense<0.000000e+00> : vector<16x192xf32>
    %163 = tpu.matmul %155, %156, %cst_35 {dimension_numbers = #tpu.dot_dimension_numbers<[1], [0], [0], [1], [0, 0, 1, 1], [], []>} : vector<16x64xf32>, vector<64x192xf32>, vector<16x192xf32> -> vector<16x192xf32>
    %164 = vector.broadcast %157 : vector<1x192xf32> to vector<16x192xf32>
    %165 = arith.addf %163, %164 : vector<16x192xf32>
    %166 = vector.extract_strided_slice %165 {offsets = [0, 0], sizes = [16, 8], strides = [1, 1]} : vector<16x192xf32> to vector<16x8xf32>
    %167 = vector.shape_cast %166 : vector<16x8xf32> to vector<2x8x8xf32>
    %168 = vector.extract_strided_slice %165 {offsets = [0, 8], sizes = [16, 8], strides = [1, 1]} : vector<16x192xf32> to vector<16x8xf32>
    %169 = vector.shape_cast %168 : vector<16x8xf32> to vector<2x8x8xf32>
    %170 = vector.extract_strided_slice %165 {offsets = [0, 16], sizes = [16, 8], strides = [1, 1]} : vector<16x192xf32> to vector<16x8xf32>
    %171 = vector.shape_cast %170 : vector<16x8xf32> to vector<2x8x8xf32>
    %172 = vector.extract_strided_slice %165 {offsets = [0, 24], sizes = [16, 8], strides = [1, 1]} : vector<16x192xf32> to vector<16x8xf32>
    %173 = vector.shape_cast %172 : vector<16x8xf32> to vector<2x8x8xf32>
    %174 = vector.extract_strided_slice %165 {offsets = [0, 32], sizes = [16, 8], strides = [1, 1]} : vector<16x192xf32> to vector<16x8xf32>
    %175 = vector.shape_cast %174 : vector<16x8xf32> to vector<2x8x8xf32>
    %176 = vector.extract_strided_slice %165 {offsets = [0, 40], sizes = [16, 8], strides = [1, 1]} : vector<16x192xf32> to vector<16x8xf32>
    %177 = vector.shape_cast %176 : vector<16x8xf32> to vector<2x8x8xf32>
    %178 = vector.extract_strided_slice %165 {offsets = [0, 48], sizes = [16, 8], strides = [1, 1]} : vector<16x192xf32> to vector<16x8xf32>
    %179 = vector.shape_cast %178 : vector<16x8xf32> to vector<2x8x8xf32>
    %180 = vector.extract_strided_slice %165 {offsets = [0, 56], sizes = [16, 8], strides = [1, 1]} : vector<16x192xf32> to vector<16x8xf32>
    %181 = vector.shape_cast %180 : vector<16x8xf32> to vector<2x8x8xf32>
    %182 = tpu.concatenate %167, %169, %171, %173, %175, %177, %179, %181 in 0 : vector<2x8x8xf32>, vector<2x8x8xf32>, vector<2x8x8xf32>, vector<2x8x8xf32>, vector<2x8x8xf32>, vector<2x8x8xf32>, vector<2x8x8xf32>, vector<2x8x8xf32> -> vector<16x8x8xf32>
    %183 = vector.extract_strided_slice %165 {offsets = [0, 64], sizes = [16, 8], strides = [1, 1]} : vector<16x192xf32> to vector<16x8xf32>
    %184 = vector.shape_cast %183 : vector<16x8xf32> to vector<2x8x8xf32>
    %185 = vector.extract_strided_slice %165 {offsets = [0, 72], sizes = [16, 8], strides = [1, 1]} : vector<16x192xf32> to vector<16x8xf32>
    %186 = vector.shape_cast %185 : vector<16x8xf32> to vector<2x8x8xf32>
    %187 = vector.extract_strided_slice %165 {offsets = [0, 80], sizes = [16, 8], strides = [1, 1]} : vector<16x192xf32> to vector<16x8xf32>
    %188 = vector.shape_cast %187 : vector<16x8xf32> to vector<2x8x8xf32>
    %189 = vector.extract_strided_slice %165 {offsets = [0, 88], sizes = [16, 8], strides = [1, 1]} : vector<16x192xf32> to vector<16x8xf32>
    %190 = vector.shape_cast %189 : vector<16x8xf32> to vector<2x8x8xf32>
    %191 = vector.extract_strided_slice %165 {offsets = [0, 96], sizes = [16, 8], strides = [1, 1]} : vector<16x192xf32> to vector<16x8xf32>
    %192 = vector.shape_cast %191 : vector<16x8xf32> to vector<2x8x8xf32>
    %193 = vector.extract_strided_slice %165 {offsets = [0, 104], sizes = [16, 8], strides = [1, 1]} : vector<16x192xf32> to vector<16x8xf32>
    %194 = vector.shape_cast %193 : vector<16x8xf32> to vector<2x8x8xf32>
    %195 = vector.extract_strided_slice %165 {offsets = [0, 112], sizes = [16, 8], strides = [1, 1]} : vector<16x192xf32> to vector<16x8xf32>
    %196 = vector.shape_cast %195 : vector<16x8xf32> to vector<2x8x8xf32>
    %197 = vector.extract_strided_slice %165 {offsets = [0, 120], sizes = [16, 8], strides = [1, 1]} : vector<16x192xf32> to vector<16x8xf32>
    %198 = vector.shape_cast %197 : vector<16x8xf32> to vector<2x8x8xf32>
    %199 = tpu.concatenate %184, %186, %188, %190, %192, %194, %196, %198 in 0 : vector<2x8x8xf32>, vector<2x8x8xf32>, vector<2x8x8xf32>, vector<2x8x8xf32>, vector<2x8x8xf32>, vector<2x8x8xf32>, vector<2x8x8xf32>, vector<2x8x8xf32> -> vector<16x8x8xf32>
    %200 = vector.extract_strided_slice %165 {offsets = [0, 128], sizes = [16, 8], strides = [1, 1]} : vector<16x192xf32> to vector<16x8xf32>
    %201 = vector.shape_cast %200 : vector<16x8xf32> to vector<2x8x8xf32>
    %202 = vector.extract_strided_slice %165 {offsets = [0, 136], sizes = [16, 8], strides = [1, 1]} : vector<16x192xf32> to vector<16x8xf32>
    %203 = vector.shape_cast %202 : vector<16x8xf32> to vector<2x8x8xf32>
    %204 = vector.extract_strided_slice %165 {offsets = [0, 144], sizes = [16, 8], strides = [1, 1]} : vector<16x192xf32> to vector<16x8xf32>
    %205 = vector.shape_cast %204 : vector<16x8xf32> to vector<2x8x8xf32>
    %206 = vector.extract_strided_slice %165 {offsets = [0, 152], sizes = [16, 8], strides = [1, 1]} : vector<16x192xf32> to vector<16x8xf32>
    %207 = vector.shape_cast %206 : vector<16x8xf32> to vector<2x8x8xf32>
    %208 = vector.extract_strided_slice %165 {offsets = [0, 160], sizes = [16, 8], strides = [1, 1]} : vector<16x192xf32> to vector<16x8xf32>
    %209 = vector.shape_cast %208 : vector<16x8xf32> to vector<2x8x8xf32>
    %210 = vector.extract_strided_slice %165 {offsets = [0, 168], sizes = [16, 8], strides = [1, 1]} : vector<16x192xf32> to vector<16x8xf32>
    %211 = vector.shape_cast %210 : vector<16x8xf32> to vector<2x8x8xf32>
    %212 = vector.extract_strided_slice %165 {offsets = [0, 176], sizes = [16, 8], strides = [1, 1]} : vector<16x192xf32> to vector<16x8xf32>
    %213 = vector.shape_cast %212 : vector<16x8xf32> to vector<2x8x8xf32>
    %214 = vector.extract_strided_slice %165 {offsets = [0, 184], sizes = [16, 8], strides = [1, 1]} : vector<16x192xf32> to vector<16x8xf32>
    %215 = vector.shape_cast %214 : vector<16x8xf32> to vector<2x8x8xf32>
    %216 = tpu.concatenate %201, %203, %205, %207, %209, %211, %213, %215 in 0 : vector<2x8x8xf32>, vector<2x8x8xf32>, vector<2x8x8xf32>, vector<2x8x8xf32>, vector<2x8x8xf32>, vector<2x8x8xf32>, vector<2x8x8xf32>, vector<2x8x8xf32> -> vector<16x8x8xf32>
    "tpu.trace_start"() <{level = 10 : i32, message = "nqd,nkd->nqk"}> : () -> ()
    %cst_36 = arith.constant dense<0.000000e+00> : vector<16x8x8xf32>
    %217 = tpu.matmul %182, %199, %cst_36 {dimension_numbers = #tpu.dot_dimension_numbers<[2], [2], [1], [1], [0, 0, 0, 1, 1, 1], [0], [0]>} : vector<16x8x8xf32>, vector<16x8x8xf32>, vector<16x8x8xf32> -> vector<16x8x8xf32>
    "tpu.trace_stop"() : () -> ()
    %cst_37 = arith.constant 0.353553385 : f32
    %218 = vector.broadcast %cst_37 : f32 to vector<16x8x8xf32>
    %219 = arith.mulf %217, %218 : vector<16x8x8xf32>
    %cst_38 = arith.constant dense<0xFF800000> : vector<16x8xf32>
    %220 = vector.multi_reduction <maximumf>, %219, %cst_38 [2] : vector<16x8x8xf32> to vector<16x8xf32>
    %221 = vector.shape_cast %220 : vector<16x8xf32> to vector<16x8x1xf32>
    %222 = vector.broadcast %221 : vector<16x8x1xf32> to vector<16x8x8xf32>
    %223 = arith.subf %219, %222 : vector<16x8x8xf32>
    %224 = math.exp %223 : vector<16x8x8xf32>
    %cst_39 = arith.constant dense<0.000000e+00> : vector<16x8xf32>
    %225 = vector.multi_reduction <add>, %224, %cst_39 [2] : vector<16x8x8xf32> to vector<16x8xf32>
    %226 = vector.shape_cast %225 : vector<16x8xf32> to vector<16x8x1xf32>
    %227 = tpu.reciprocal %226 {approx = true} : vector<16x8x1xf32> -> vector<16x8x1xf32>
    %228 = vector.broadcast %227 : vector<16x8x1xf32> to vector<16x8x8xf32>
    %229 = arith.mulf %224, %228 : vector<16x8x8xf32>
    "tpu.trace_start"() <{level = 10 : i32, message = "nqk,nkd->nqd"}> : () -> ()
    %cst_40 = arith.constant dense<0.000000e+00> : vector<16x8x8xf32>
    %230 = tpu.matmul %229, %216, %cst_40 {dimension_numbers = #tpu.dot_dimension_numbers<[2], [1], [1], [2], [0, 0, 0, 1, 1, 2], [0], [0]>} : vector<16x8x8xf32>, vector<16x8x8xf32>, vector<16x8x8xf32> -> vector<16x8x8xf32>
    "tpu.trace_stop"() : () -> ()
    %231 = vector.extract_strided_slice %230 {offsets = [0, 0, 0], sizes = [2, 8, 8], strides = [1, 1, 1]} : vector<16x8x8xf32> to vector<2x8x8xf32>
    %232 = vector.shape_cast %231 : vector<2x8x8xf32> to vector<16x8xf32>
    %233 = vector.extract_strided_slice %230 {offsets = [2, 0, 0], sizes = [2, 8, 8], strides = [1, 1, 1]} : vector<16x8x8xf32> to vector<2x8x8xf32>
    %234 = vector.shape_cast %233 : vector<2x8x8xf32> to vector<16x8xf32>
    %235 = vector.extract_strided_slice %230 {offsets = [4, 0, 0], sizes = [2, 8, 8], strides = [1, 1, 1]} : vector<16x8x8xf32> to vector<2x8x8xf32>
    %236 = vector.shape_cast %235 : vector<2x8x8xf32> to vector<16x8xf32>
    %237 = vector.extract_strided_slice %230 {offsets = [6, 0, 0], sizes = [2, 8, 8], strides = [1, 1, 1]} : vector<16x8x8xf32> to vector<2x8x8xf32>
    %238 = vector.shape_cast %237 : vector<2x8x8xf32> to vector<16x8xf32>
    %239 = vector.extract_strided_slice %230 {offsets = [8, 0, 0], sizes = [2, 8, 8], strides = [1, 1, 1]} : vector<16x8x8xf32> to vector<2x8x8xf32>
    %240 = vector.shape_cast %239 : vector<2x8x8xf32> to vector<16x8xf32>
    %241 = vector.extract_strided_slice %230 {offsets = [10, 0, 0], sizes = [2, 8, 8], strides = [1, 1, 1]} : vector<16x8x8xf32> to vector<2x8x8xf32>
    %242 = vector.shape_cast %241 : vector<2x8x8xf32> to vector<16x8xf32>
    %243 = vector.extract_strided_slice %230 {offsets = [12, 0, 0], sizes = [2, 8, 8], strides = [1, 1, 1]} : vector<16x8x8xf32> to vector<2x8x8xf32>
    %244 = vector.shape_cast %243 : vector<2x8x8xf32> to vector<16x8xf32>
    %245 = vector.extract_strided_slice %230 {offsets = [14, 0, 0], sizes = [2, 8, 8], strides = [1, 1, 1]} : vector<16x8x8xf32> to vector<2x8x8xf32>
    %246 = vector.shape_cast %245 : vector<2x8x8xf32> to vector<16x8xf32>
    %247 = tpu.concatenate %232, %234, %236, %238, %240, %242, %244, %246 in 1 : vector<16x8xf32>, vector<16x8xf32>, vector<16x8xf32>, vector<16x8xf32>, vector<16x8xf32>, vector<16x8xf32>, vector<16x8xf32>, vector<16x8xf32> -> vector<16x64xf32>
    %cst_41 = arith.constant dense<0.000000e+00> : vector<16x64xf32>
    %248 = tpu.matmul %247, %158, %cst_41 {dimension_numbers = #tpu.dot_dimension_numbers<[1], [0], [0], [1], [0, 0, 1, 1], [], []>} : vector<16x64xf32>, vector<64x64xf32>, vector<16x64xf32> -> vector<16x64xf32>
    %249 = vector.extract_strided_slice %159 {offsets = [0, 0], sizes = [1, 64], strides = [1, 1]} : vector<6x64xf32> to vector<1x64xf32>
    %250 = vector.broadcast %249 : vector<1x64xf32> to vector<16x64xf32>
    %251 = arith.addf %248, %250 : vector<16x64xf32>
    %252 = arith.addf %155, %251 : vector<16x64xf32>
    %253 = vector.extract_strided_slice %159 {offsets = [1, 0], sizes = [1, 64], strides = [1, 1]} : vector<6x64xf32> to vector<1x64xf32>
    %254 = vector.extract_strided_slice %159 {offsets = [2, 0], sizes = [1, 64], strides = [1, 1]} : vector<6x64xf32> to vector<1x64xf32>
    %cst_42 = arith.constant dense<0.000000e+00> : vector<16xf32>
    %255 = vector.multi_reduction <add>, %252, %cst_42 [1] : vector<16x64xf32> to vector<16xf32>
    %256 = vector.shape_cast %255 : vector<16xf32> to vector<16x1xf32>
    %cst_43 = arith.constant 6.400000e+01 : f32
    %257 = vector.broadcast %cst_43 : f32 to vector<16x1xf32>
    %258 = arith.divf %256, %257 : vector<16x1xf32>
    %259 = vector.broadcast %258 : vector<16x1xf32> to vector<16x64xf32>
    %260 = arith.subf %252, %259 : vector<16x64xf32>
    %261 = arith.mulf %260, %260 : vector<16x64xf32>
    %cst_44 = arith.constant dense<0.000000e+00> : vector<16xf32>
    %262 = vector.multi_reduction <add>, %261, %cst_44 [1] : vector<16x64xf32> to vector<16xf32>
    %263 = vector.shape_cast %262 : vector<16xf32> to vector<16x1xf32>
    %cst_45 = arith.constant 6.400000e+01 : f32
    %264 = vector.broadcast %cst_45 : f32 to vector<16x1xf32>
    %265 = arith.divf %263, %264 : vector<16x1xf32>
    %266 = vector.broadcast %258 : vector<16x1xf32> to vector<16x64xf32>
    %267 = arith.subf %252, %266 : vector<16x64xf32>
    %cst_46 = arith.constant 9.99999974E-6 : f32
    %268 = vector.broadcast %cst_46 : f32 to vector<16x1xf32>
    %269 = arith.addf %265, %268 : vector<16x1xf32>
    %270 = math.rsqrt %269 : vector<16x1xf32>
    %271 = vector.broadcast %270 : vector<16x1xf32> to vector<16x64xf32>
    %272 = arith.mulf %267, %271 : vector<16x64xf32>
    %273 = vector.broadcast %253 : vector<1x64xf32> to vector<16x64xf32>
    %274 = arith.mulf %272, %273 : vector<16x64xf32>
    %275 = vector.broadcast %254 : vector<1x64xf32> to vector<16x64xf32>
    %276 = arith.addf %274, %275 : vector<16x64xf32>
    %cst_47 = arith.constant dense<0.000000e+00> : vector<16x128xf32>
    %277 = tpu.matmul %276, %160, %cst_47 {dimension_numbers = #tpu.dot_dimension_numbers<[1], [0], [0], [1], [0, 0, 1, 1], [], []>} : vector<16x64xf32>, vector<64x128xf32>, vector<16x128xf32> -> vector<16x128xf32>
    %278 = vector.broadcast %161 : vector<1x128xf32> to vector<16x128xf32>
    %279 = arith.addf %277, %278 : vector<16x128xf32>
    %cst_48 = arith.constant 0.000000e+00 : f32
    %280 = vector.broadcast %cst_48 : f32 to vector<16x128xf32>
    %281 = arith.maximumf %279, %280 : vector<16x128xf32>
    %cst_49 = arith.constant dense<0.000000e+00> : vector<16x64xf32>
    %282 = tpu.matmul %281, %162, %cst_49 {dimension_numbers = #tpu.dot_dimension_numbers<[1], [0], [0], [1], [0, 0, 1, 1], [], []>} : vector<16x128xf32>, vector<128x64xf32>, vector<16x64xf32> -> vector<16x64xf32>
    %283 = vector.extract_strided_slice %159 {offsets = [3, 0], sizes = [1, 64], strides = [1, 1]} : vector<6x64xf32> to vector<1x64xf32>
    %284 = vector.broadcast %283 : vector<1x64xf32> to vector<16x64xf32>
    %285 = arith.addf %282, %284 : vector<16x64xf32>
    %286 = arith.addf %276, %285 : vector<16x64xf32>
    %287 = vector.extract_strided_slice %159 {offsets = [4, 0], sizes = [1, 64], strides = [1, 1]} : vector<6x64xf32> to vector<1x64xf32>
    %288 = vector.extract_strided_slice %159 {offsets = [5, 0], sizes = [1, 64], strides = [1, 1]} : vector<6x64xf32> to vector<1x64xf32>
    %cst_50 = arith.constant dense<0.000000e+00> : vector<16xf32>
    %289 = vector.multi_reduction <add>, %286, %cst_50 [1] : vector<16x64xf32> to vector<16xf32>
    %290 = vector.shape_cast %289 : vector<16xf32> to vector<16x1xf32>
    %cst_51 = arith.constant 6.400000e+01 : f32
    %291 = vector.broadcast %cst_51 : f32 to vector<16x1xf32>
    %292 = arith.divf %290, %291 : vector<16x1xf32>
    %293 = vector.broadcast %292 : vector<16x1xf32> to vector<16x64xf32>
    %294 = arith.subf %286, %293 : vector<16x64xf32>
    %295 = arith.mulf %294, %294 : vector<16x64xf32>
    %cst_52 = arith.constant dense<0.000000e+00> : vector<16xf32>
    %296 = vector.multi_reduction <add>, %295, %cst_52 [1] : vector<16x64xf32> to vector<16xf32>
    %297 = vector.shape_cast %296 : vector<16xf32> to vector<16x1xf32>
    %cst_53 = arith.constant 6.400000e+01 : f32
    %298 = vector.broadcast %cst_53 : f32 to vector<16x1xf32>
    %299 = arith.divf %297, %298 : vector<16x1xf32>
    %300 = vector.broadcast %292 : vector<16x1xf32> to vector<16x64xf32>
    %301 = arith.subf %286, %300 : vector<16x64xf32>
    %cst_54 = arith.constant 9.99999974E-6 : f32
    %302 = vector.broadcast %cst_54 : f32 to vector<16x1xf32>
    %303 = arith.addf %299, %302 : vector<16x1xf32>
    %304 = math.rsqrt %303 : vector<16x1xf32>
    %305 = vector.broadcast %304 : vector<16x1xf32> to vector<16x64xf32>
    %306 = arith.mulf %301, %305 : vector<16x64xf32>
    %307 = vector.broadcast %287 : vector<1x64xf32> to vector<16x64xf32>
    %308 = arith.mulf %306, %307 : vector<16x64xf32>
    %309 = vector.broadcast %288 : vector<1x64xf32> to vector<16x64xf32>
    %310 = arith.addf %308, %309 : vector<16x64xf32>
    %c688 = arith.constant 688 : index
    %c0_55 = arith.constant 0 : index
    %311 = vector.load %arg1[%c688, %c0_55] : memref<1472x192xf32, #tpu.memory_space<vmem>>, vector<64x192xf32>
    %c752 = arith.constant 752 : index
    %c0_56 = arith.constant 0 : index
    %312 = vector.load %arg1[%c752, %c0_56] : memref<1472x192xf32, #tpu.memory_space<vmem>>, vector<1x192xf32>
    %c760 = arith.constant 760 : index
    %c0_57 = arith.constant 0 : index
    %313 = vector.load %arg1[%c760, %c0_57] : memref<1472x192xf32, #tpu.memory_space<vmem>>, vector<64x64xf32>
    %c824 = arith.constant 824 : index
    %c0_58 = arith.constant 0 : index
    %314 = vector.load %arg1[%c824, %c0_58] : memref<1472x192xf32, #tpu.memory_space<vmem>>, vector<6x64xf32>
    %c832 = arith.constant 832 : index
    %c0_59 = arith.constant 0 : index
    %315 = vector.load %arg1[%c832, %c0_59] : memref<1472x192xf32, #tpu.memory_space<vmem>>, vector<64x128xf32>
    %c896 = arith.constant 896 : index
    %c0_60 = arith.constant 0 : index
    %316 = vector.load %arg1[%c896, %c0_60] : memref<1472x192xf32, #tpu.memory_space<vmem>>, vector<1x128xf32>
    %c904 = arith.constant 904 : index
    %c0_61 = arith.constant 0 : index
    %317 = vector.load %arg1[%c904, %c0_61] : memref<1472x192xf32, #tpu.memory_space<vmem>>, vector<128x64xf32>
    %cst_62 = arith.constant dense<0.000000e+00> : vector<16x192xf32>
    %318 = tpu.matmul %310, %311, %cst_62 {dimension_numbers = #tpu.dot_dimension_numbers<[1], [0], [0], [1], [0, 0, 1, 1], [], []>} : vector<16x64xf32>, vector<64x192xf32>, vector<16x192xf32> -> vector<16x192xf32>
    %319 = vector.broadcast %312 : vector<1x192xf32> to vector<16x192xf32>
    %320 = arith.addf %318, %319 : vector<16x192xf32>
    %321 = vector.extract_strided_slice %320 {offsets = [0, 0], sizes = [16, 8], strides = [1, 1]} : vector<16x192xf32> to vector<16x8xf32>
    %322 = vector.shape_cast %321 : vector<16x8xf32> to vector<2x8x8xf32>
    %323 = vector.extract_strided_slice %320 {offsets = [0, 8], sizes = [16, 8], strides = [1, 1]} : vector<16x192xf32> to vector<16x8xf32>
    %324 = vector.shape_cast %323 : vector<16x8xf32> to vector<2x8x8xf32>
    %325 = vector.extract_strided_slice %320 {offsets = [0, 16], sizes = [16, 8], strides = [1, 1]} : vector<16x192xf32> to vector<16x8xf32>
    %326 = vector.shape_cast %325 : vector<16x8xf32> to vector<2x8x8xf32>
    %327 = vector.extract_strided_slice %320 {offsets = [0, 24], sizes = [16, 8], strides = [1, 1]} : vector<16x192xf32> to vector<16x8xf32>
    %328 = vector.shape_cast %327 : vector<16x8xf32> to vector<2x8x8xf32>
    %329 = vector.extract_strided_slice %320 {offsets = [0, 32], sizes = [16, 8], strides = [1, 1]} : vector<16x192xf32> to vector<16x8xf32>
    %330 = vector.shape_cast %329 : vector<16x8xf32> to vector<2x8x8xf32>
    %331 = vector.extract_strided_slice %320 {offsets = [0, 40], sizes = [16, 8], strides = [1, 1]} : vector<16x192xf32> to vector<16x8xf32>
    %332 = vector.shape_cast %331 : vector<16x8xf32> to vector<2x8x8xf32>
    %333 = vector.extract_strided_slice %320 {offsets = [0, 48], sizes = [16, 8], strides = [1, 1]} : vector<16x192xf32> to vector<16x8xf32>
    %334 = vector.shape_cast %333 : vector<16x8xf32> to vector<2x8x8xf32>
    %335 = vector.extract_strided_slice %320 {offsets = [0, 56], sizes = [16, 8], strides = [1, 1]} : vector<16x192xf32> to vector<16x8xf32>
    %336 = vector.shape_cast %335 : vector<16x8xf32> to vector<2x8x8xf32>
    %337 = tpu.concatenate %322, %324, %326, %328, %330, %332, %334, %336 in 0 : vector<2x8x8xf32>, vector<2x8x8xf32>, vector<2x8x8xf32>, vector<2x8x8xf32>, vector<2x8x8xf32>, vector<2x8x8xf32>, vector<2x8x8xf32>, vector<2x8x8xf32> -> vector<16x8x8xf32>
    %338 = vector.extract_strided_slice %320 {offsets = [0, 64], sizes = [16, 8], strides = [1, 1]} : vector<16x192xf32> to vector<16x8xf32>
    %339 = vector.shape_cast %338 : vector<16x8xf32> to vector<2x8x8xf32>
    %340 = vector.extract_strided_slice %320 {offsets = [0, 72], sizes = [16, 8], strides = [1, 1]} : vector<16x192xf32> to vector<16x8xf32>
    %341 = vector.shape_cast %340 : vector<16x8xf32> to vector<2x8x8xf32>
    %342 = vector.extract_strided_slice %320 {offsets = [0, 80], sizes = [16, 8], strides = [1, 1]} : vector<16x192xf32> to vector<16x8xf32>
    %343 = vector.shape_cast %342 : vector<16x8xf32> to vector<2x8x8xf32>
    %344 = vector.extract_strided_slice %320 {offsets = [0, 88], sizes = [16, 8], strides = [1, 1]} : vector<16x192xf32> to vector<16x8xf32>
    %345 = vector.shape_cast %344 : vector<16x8xf32> to vector<2x8x8xf32>
    %346 = vector.extract_strided_slice %320 {offsets = [0, 96], sizes = [16, 8], strides = [1, 1]} : vector<16x192xf32> to vector<16x8xf32>
    %347 = vector.shape_cast %346 : vector<16x8xf32> to vector<2x8x8xf32>
    %348 = vector.extract_strided_slice %320 {offsets = [0, 104], sizes = [16, 8], strides = [1, 1]} : vector<16x192xf32> to vector<16x8xf32>
    %349 = vector.shape_cast %348 : vector<16x8xf32> to vector<2x8x8xf32>
    %350 = vector.extract_strided_slice %320 {offsets = [0, 112], sizes = [16, 8], strides = [1, 1]} : vector<16x192xf32> to vector<16x8xf32>
    %351 = vector.shape_cast %350 : vector<16x8xf32> to vector<2x8x8xf32>
    %352 = vector.extract_strided_slice %320 {offsets = [0, 120], sizes = [16, 8], strides = [1, 1]} : vector<16x192xf32> to vector<16x8xf32>
    %353 = vector.shape_cast %352 : vector<16x8xf32> to vector<2x8x8xf32>
    %354 = tpu.concatenate %339, %341, %343, %345, %347, %349, %351, %353 in 0 : vector<2x8x8xf32>, vector<2x8x8xf32>, vector<2x8x8xf32>, vector<2x8x8xf32>, vector<2x8x8xf32>, vector<2x8x8xf32>, vector<2x8x8xf32>, vector<2x8x8xf32> -> vector<16x8x8xf32>
    %355 = vector.extract_strided_slice %320 {offsets = [0, 128], sizes = [16, 8], strides = [1, 1]} : vector<16x192xf32> to vector<16x8xf32>
    %356 = vector.shape_cast %355 : vector<16x8xf32> to vector<2x8x8xf32>
    %357 = vector.extract_strided_slice %320 {offsets = [0, 136], sizes = [16, 8], strides = [1, 1]} : vector<16x192xf32> to vector<16x8xf32>
    %358 = vector.shape_cast %357 : vector<16x8xf32> to vector<2x8x8xf32>
    %359 = vector.extract_strided_slice %320 {offsets = [0, 144], sizes = [16, 8], strides = [1, 1]} : vector<16x192xf32> to vector<16x8xf32>
    %360 = vector.shape_cast %359 : vector<16x8xf32> to vector<2x8x8xf32>
    %361 = vector.extract_strided_slice %320 {offsets = [0, 152], sizes = [16, 8], strides = [1, 1]} : vector<16x192xf32> to vector<16x8xf32>
    %362 = vector.shape_cast %361 : vector<16x8xf32> to vector<2x8x8xf32>
    %363 = vector.extract_strided_slice %320 {offsets = [0, 160], sizes = [16, 8], strides = [1, 1]} : vector<16x192xf32> to vector<16x8xf32>
    %364 = vector.shape_cast %363 : vector<16x8xf32> to vector<2x8x8xf32>
    %365 = vector.extract_strided_slice %320 {offsets = [0, 168], sizes = [16, 8], strides = [1, 1]} : vector<16x192xf32> to vector<16x8xf32>
    %366 = vector.shape_cast %365 : vector<16x8xf32> to vector<2x8x8xf32>
    %367 = vector.extract_strided_slice %320 {offsets = [0, 176], sizes = [16, 8], strides = [1, 1]} : vector<16x192xf32> to vector<16x8xf32>
    %368 = vector.shape_cast %367 : vector<16x8xf32> to vector<2x8x8xf32>
    %369 = vector.extract_strided_slice %320 {offsets = [0, 184], sizes = [16, 8], strides = [1, 1]} : vector<16x192xf32> to vector<16x8xf32>
    %370 = vector.shape_cast %369 : vector<16x8xf32> to vector<2x8x8xf32>
    %371 = tpu.concatenate %356, %358, %360, %362, %364, %366, %368, %370 in 0 : vector<2x8x8xf32>, vector<2x8x8xf32>, vector<2x8x8xf32>, vector<2x8x8xf32>, vector<2x8x8xf32>, vector<2x8x8xf32>, vector<2x8x8xf32>, vector<2x8x8xf32> -> vector<16x8x8xf32>
    "tpu.trace_start"() <{level = 10 : i32, message = "nqd,nkd->nqk"}> : () -> ()
    %cst_63 = arith.constant dense<0.000000e+00> : vector<16x8x8xf32>
    %372 = tpu.matmul %337, %354, %cst_63 {dimension_numbers = #tpu.dot_dimension_numbers<[2], [2], [1], [1], [0, 0, 0, 1, 1, 1], [0], [0]>} : vector<16x8x8xf32>, vector<16x8x8xf32>, vector<16x8x8xf32> -> vector<16x8x8xf32>
    "tpu.trace_stop"() : () -> ()
    %cst_64 = arith.constant 0.353553385 : f32
    %373 = vector.broadcast %cst_64 : f32 to vector<16x8x8xf32>
    %374 = arith.mulf %372, %373 : vector<16x8x8xf32>
    %cst_65 = arith.constant dense<0xFF800000> : vector<16x8xf32>
    %375 = vector.multi_reduction <maximumf>, %374, %cst_65 [2] : vector<16x8x8xf32> to vector<16x8xf32>
    %376 = vector.shape_cast %375 : vector<16x8xf32> to vector<16x8x1xf32>
    %377 = vector.broadcast %376 : vector<16x8x1xf32> to vector<16x8x8xf32>
    %378 = arith.subf %374, %377 : vector<16x8x8xf32>
    %379 = math.exp %378 : vector<16x8x8xf32>
    %cst_66 = arith.constant dense<0.000000e+00> : vector<16x8xf32>
    %380 = vector.multi_reduction <add>, %379, %cst_66 [2] : vector<16x8x8xf32> to vector<16x8xf32>
    %381 = vector.shape_cast %380 : vector<16x8xf32> to vector<16x8x1xf32>
    %382 = tpu.reciprocal %381 {approx = true} : vector<16x8x1xf32> -> vector<16x8x1xf32>
    %383 = vector.broadcast %382 : vector<16x8x1xf32> to vector<16x8x8xf32>
    %384 = arith.mulf %379, %383 : vector<16x8x8xf32>
    "tpu.trace_start"() <{level = 10 : i32, message = "nqk,nkd->nqd"}> : () -> ()
    %cst_67 = arith.constant dense<0.000000e+00> : vector<16x8x8xf32>
    %385 = tpu.matmul %384, %371, %cst_67 {dimension_numbers = #tpu.dot_dimension_numbers<[2], [1], [1], [2], [0, 0, 0, 1, 1, 2], [0], [0]>} : vector<16x8x8xf32>, vector<16x8x8xf32>, vector<16x8x8xf32> -> vector<16x8x8xf32>
    "tpu.trace_stop"() : () -> ()
    %386 = vector.extract_strided_slice %385 {offsets = [0, 0, 0], sizes = [2, 8, 8], strides = [1, 1, 1]} : vector<16x8x8xf32> to vector<2x8x8xf32>
    %387 = vector.shape_cast %386 : vector<2x8x8xf32> to vector<16x8xf32>
    %388 = vector.extract_strided_slice %385 {offsets = [2, 0, 0], sizes = [2, 8, 8], strides = [1, 1, 1]} : vector<16x8x8xf32> to vector<2x8x8xf32>
    %389 = vector.shape_cast %388 : vector<2x8x8xf32> to vector<16x8xf32>
    %390 = vector.extract_strided_slice %385 {offsets = [4, 0, 0], sizes = [2, 8, 8], strides = [1, 1, 1]} : vector<16x8x8xf32> to vector<2x8x8xf32>
    %391 = vector.shape_cast %390 : vector<2x8x8xf32> to vector<16x8xf32>
    %392 = vector.extract_strided_slice %385 {offsets = [6, 0, 0], sizes = [2, 8, 8], strides = [1, 1, 1]} : vector<16x8x8xf32> to vector<2x8x8xf32>
    %393 = vector.shape_cast %392 : vector<2x8x8xf32> to vector<16x8xf32>
    %394 = vector.extract_strided_slice %385 {offsets = [8, 0, 0], sizes = [2, 8, 8], strides = [1, 1, 1]} : vector<16x8x8xf32> to vector<2x8x8xf32>
    %395 = vector.shape_cast %394 : vector<2x8x8xf32> to vector<16x8xf32>
    %396 = vector.extract_strided_slice %385 {offsets = [10, 0, 0], sizes = [2, 8, 8], strides = [1, 1, 1]} : vector<16x8x8xf32> to vector<2x8x8xf32>
    %397 = vector.shape_cast %396 : vector<2x8x8xf32> to vector<16x8xf32>
    %398 = vector.extract_strided_slice %385 {offsets = [12, 0, 0], sizes = [2, 8, 8], strides = [1, 1, 1]} : vector<16x8x8xf32> to vector<2x8x8xf32>
    %399 = vector.shape_cast %398 : vector<2x8x8xf32> to vector<16x8xf32>
    %400 = vector.extract_strided_slice %385 {offsets = [14, 0, 0], sizes = [2, 8, 8], strides = [1, 1, 1]} : vector<16x8x8xf32> to vector<2x8x8xf32>
    %401 = vector.shape_cast %400 : vector<2x8x8xf32> to vector<16x8xf32>
    %402 = tpu.concatenate %387, %389, %391, %393, %395, %397, %399, %401 in 1 : vector<16x8xf32>, vector<16x8xf32>, vector<16x8xf32>, vector<16x8xf32>, vector<16x8xf32>, vector<16x8xf32>, vector<16x8xf32>, vector<16x8xf32> -> vector<16x64xf32>
    %cst_68 = arith.constant dense<0.000000e+00> : vector<16x64xf32>
    %403 = tpu.matmul %402, %313, %cst_68 {dimension_numbers = #tpu.dot_dimension_numbers<[1], [0], [0], [1], [0, 0, 1, 1], [], []>} : vector<16x64xf32>, vector<64x64xf32>, vector<16x64xf32> -> vector<16x64xf32>
    %404 = vector.extract_strided_slice %314 {offsets = [0, 0], sizes = [1, 64], strides = [1, 1]} : vector<6x64xf32> to vector<1x64xf32>
    %405 = vector.broadcast %404 : vector<1x64xf32> to vector<16x64xf32>
    %406 = arith.addf %403, %405 : vector<16x64xf32>
    %407 = arith.addf %310, %406 : vector<16x64xf32>
    %408 = vector.extract_strided_slice %314 {offsets = [1, 0], sizes = [1, 64], strides = [1, 1]} : vector<6x64xf32> to vector<1x64xf32>
    %409 = vector.extract_strided_slice %314 {offsets = [2, 0], sizes = [1, 64], strides = [1, 1]} : vector<6x64xf32> to vector<1x64xf32>
    %cst_69 = arith.constant dense<0.000000e+00> : vector<16xf32>
    %410 = vector.multi_reduction <add>, %407, %cst_69 [1] : vector<16x64xf32> to vector<16xf32>
    %411 = vector.shape_cast %410 : vector<16xf32> to vector<16x1xf32>
    %cst_70 = arith.constant 6.400000e+01 : f32
    %412 = vector.broadcast %cst_70 : f32 to vector<16x1xf32>
    %413 = arith.divf %411, %412 : vector<16x1xf32>
    %414 = vector.broadcast %413 : vector<16x1xf32> to vector<16x64xf32>
    %415 = arith.subf %407, %414 : vector<16x64xf32>
    %416 = arith.mulf %415, %415 : vector<16x64xf32>
    %cst_71 = arith.constant dense<0.000000e+00> : vector<16xf32>
    %417 = vector.multi_reduction <add>, %416, %cst_71 [1] : vector<16x64xf32> to vector<16xf32>
    %418 = vector.shape_cast %417 : vector<16xf32> to vector<16x1xf32>
    %cst_72 = arith.constant 6.400000e+01 : f32
    %419 = vector.broadcast %cst_72 : f32 to vector<16x1xf32>
    %420 = arith.divf %418, %419 : vector<16x1xf32>
    %421 = vector.broadcast %413 : vector<16x1xf32> to vector<16x64xf32>
    %422 = arith.subf %407, %421 : vector<16x64xf32>
    %cst_73 = arith.constant 9.99999974E-6 : f32
    %423 = vector.broadcast %cst_73 : f32 to vector<16x1xf32>
    %424 = arith.addf %420, %423 : vector<16x1xf32>
    %425 = math.rsqrt %424 : vector<16x1xf32>
    %426 = vector.broadcast %425 : vector<16x1xf32> to vector<16x64xf32>
    %427 = arith.mulf %422, %426 : vector<16x64xf32>
    %428 = vector.broadcast %408 : vector<1x64xf32> to vector<16x64xf32>
    %429 = arith.mulf %427, %428 : vector<16x64xf32>
    %430 = vector.broadcast %409 : vector<1x64xf32> to vector<16x64xf32>
    %431 = arith.addf %429, %430 : vector<16x64xf32>
    %cst_74 = arith.constant dense<0.000000e+00> : vector<16x128xf32>
    %432 = tpu.matmul %431, %315, %cst_74 {dimension_numbers = #tpu.dot_dimension_numbers<[1], [0], [0], [1], [0, 0, 1, 1], [], []>} : vector<16x64xf32>, vector<64x128xf32>, vector<16x128xf32> -> vector<16x128xf32>
    %433 = vector.broadcast %316 : vector<1x128xf32> to vector<16x128xf32>
    %434 = arith.addf %432, %433 : vector<16x128xf32>
    %cst_75 = arith.constant 0.000000e+00 : f32
    %435 = vector.broadcast %cst_75 : f32 to vector<16x128xf32>
    %436 = arith.maximumf %434, %435 : vector<16x128xf32>
    %cst_76 = arith.constant dense<0.000000e+00> : vector<16x64xf32>
    %437 = tpu.matmul %436, %317, %cst_76 {dimension_numbers = #tpu.dot_dimension_numbers<[1], [0], [0], [1], [0, 0, 1, 1], [], []>} : vector<16x128xf32>, vector<128x64xf32>, vector<16x64xf32> -> vector<16x64xf32>
    %438 = vector.extract_strided_slice %314 {offsets = [3, 0], sizes = [1, 64], strides = [1, 1]} : vector<6x64xf32> to vector<1x64xf32>
    %439 = vector.broadcast %438 : vector<1x64xf32> to vector<16x64xf32>
    %440 = arith.addf %437, %439 : vector<16x64xf32>
    %441 = arith.addf %431, %440 : vector<16x64xf32>
    %442 = vector.extract_strided_slice %314 {offsets = [4, 0], sizes = [1, 64], strides = [1, 1]} : vector<6x64xf32> to vector<1x64xf32>
    %443 = vector.extract_strided_slice %314 {offsets = [5, 0], sizes = [1, 64], strides = [1, 1]} : vector<6x64xf32> to vector<1x64xf32>
    %cst_77 = arith.constant dense<0.000000e+00> : vector<16xf32>
    %444 = vector.multi_reduction <add>, %441, %cst_77 [1] : vector<16x64xf32> to vector<16xf32>
    %445 = vector.shape_cast %444 : vector<16xf32> to vector<16x1xf32>
    %cst_78 = arith.constant 6.400000e+01 : f32
    %446 = vector.broadcast %cst_78 : f32 to vector<16x1xf32>
    %447 = arith.divf %445, %446 : vector<16x1xf32>
    %448 = vector.broadcast %447 : vector<16x1xf32> to vector<16x64xf32>
    %449 = arith.subf %441, %448 : vector<16x64xf32>
    %450 = arith.mulf %449, %449 : vector<16x64xf32>
    %cst_79 = arith.constant dense<0.000000e+00> : vector<16xf32>
    %451 = vector.multi_reduction <add>, %450, %cst_79 [1] : vector<16x64xf32> to vector<16xf32>
    %452 = vector.shape_cast %451 : vector<16xf32> to vector<16x1xf32>
    %cst_80 = arith.constant 6.400000e+01 : f32
    %453 = vector.broadcast %cst_80 : f32 to vector<16x1xf32>
    %454 = arith.divf %452, %453 : vector<16x1xf32>
    %455 = vector.broadcast %447 : vector<16x1xf32> to vector<16x64xf32>
    %456 = arith.subf %441, %455 : vector<16x64xf32>
    %cst_81 = arith.constant 9.99999974E-6 : f32
    %457 = vector.broadcast %cst_81 : f32 to vector<16x1xf32>
    %458 = arith.addf %454, %457 : vector<16x1xf32>
    %459 = math.rsqrt %458 : vector<16x1xf32>
    %460 = vector.broadcast %459 : vector<16x1xf32> to vector<16x64xf32>
    %461 = arith.mulf %456, %460 : vector<16x64xf32>
    %462 = vector.broadcast %442 : vector<1x64xf32> to vector<16x64xf32>
    %463 = arith.mulf %461, %462 : vector<16x64xf32>
    %464 = vector.broadcast %443 : vector<1x64xf32> to vector<16x64xf32>
    %465 = arith.addf %463, %464 : vector<16x64xf32>
    %c1096 = arith.constant 1096 : index
    %c0_82 = arith.constant 0 : index
    %466 = vector.load %arg1[%c1096, %c0_82] : memref<1472x192xf32, #tpu.memory_space<vmem>>, vector<2x32xf32>
    %c1032 = arith.constant 1032 : index
    %c0_83 = arith.constant 0 : index
    %467 = vector.load %arg1[%c1032, %c0_83] : memref<1472x192xf32, #tpu.memory_space<vmem>>, vector<64x32xf32>
    %cst_84 = arith.constant dense<0.000000e+00> : vector<16x32xf32>
    %468 = tpu.matmul %465, %467, %cst_84 {dimension_numbers = #tpu.dot_dimension_numbers<[1], [0], [0], [1], [0, 0, 1, 1], [], []>} : vector<16x64xf32>, vector<64x32xf32>, vector<16x32xf32> -> vector<16x32xf32>
    %469 = vector.extract_strided_slice %466 {offsets = [0, 0], sizes = [1, 32], strides = [1, 1]} : vector<2x32xf32> to vector<1x32xf32>
    %470 = vector.broadcast %469 : vector<1x32xf32> to vector<16x32xf32>
    %471 = arith.addf %468, %470 : vector<16x32xf32>
    %472 = math.tanh %471 : vector<16x32xf32>
    %473 = vector.shape_cast %472 : vector<16x32xf32> to vector<2x8x32xf32>
    %474 = vector.extract_strided_slice %466 {offsets = [1, 0], sizes = [1, 32], strides = [1, 1]} : vector<2x32xf32> to vector<1x32xf32>
    %475 = vector.shape_cast %474 : vector<1x32xf32> to vector<1x1x32xf32>
    %476 = vector.broadcast %475 : vector<1x1x32xf32> to vector<2x8x32xf32>
    %477 = arith.mulf %473, %476 : vector<2x8x32xf32>
    %cst_85 = arith.constant dense<0.000000e+00> : vector<2x8xf32>
    %478 = vector.multi_reduction <add>, %477, %cst_85 [2] : vector<2x8x32xf32> to vector<2x8xf32>
    %cst_86 = arith.constant dense<0xFF800000> : vector<2xf32>
    %479 = vector.multi_reduction <maximumf>, %478, %cst_86 [1] : vector<2x8xf32> to vector<2xf32>
    %480 = vector.shape_cast %479 : vector<2xf32> to vector<2x1xf32>
    %481 = vector.broadcast %480 : vector<2x1xf32> to vector<2x8xf32>
    %482 = arith.subf %478, %481 : vector<2x8xf32>
    %483 = math.exp %482 : vector<2x8xf32>
    %cst_87 = arith.constant dense<0.000000e+00> : vector<2xf32>
    %484 = vector.multi_reduction <add>, %483, %cst_87 [1] : vector<2x8xf32> to vector<2xf32>
    %485 = vector.shape_cast %484 : vector<2xf32> to vector<2x1xf32>
    %486 = tpu.reciprocal %485 {approx = true} : vector<2x1xf32> -> vector<2x1xf32>
    %487 = vector.broadcast %486 : vector<2x1xf32> to vector<2x8xf32>
    %488 = arith.mulf %483, %487 : vector<2x8xf32>
    %489 = vector.shape_cast %488 : vector<2x8xf32> to vector<2x8x1xf32>
    %490 = vector.shape_cast %465 : vector<16x64xf32> to vector<2x8x64xf32>
    %491 = vector.broadcast %489 : vector<2x8x1xf32> to vector<2x8x64xf32>
    %492 = arith.mulf %491, %490 : vector<2x8x64xf32>
    %cst_88 = arith.constant dense<0.000000e+00> : vector<2x64xf32>
    %493 = vector.multi_reduction <add>, %492, %cst_88 [1] : vector<2x8x64xf32> to vector<2x64xf32>
    %c1168 = arith.constant 1168 : index
    %c0_89 = arith.constant 0 : index
    %494 = vector.load %arg1[%c1168, %c0_89] : memref<1472x192xf32, #tpu.memory_space<vmem>>, vector<6x32xf32>
    %c1104 = arith.constant 1104 : index
    %c0_90 = arith.constant 0 : index
    %495 = vector.load %arg1[%c1104, %c0_90] : memref<1472x192xf32, #tpu.memory_space<vmem>>, vector<64x32xf32>
    %cst_91 = arith.constant dense<0.000000e+00> : vector<2x32xf32>
    %496 = tpu.matmul %493, %495, %cst_91 {dimension_numbers = #tpu.dot_dimension_numbers<[1], [0], [0], [1], [0, 0, 1, 1], [], []>} : vector<2x64xf32>, vector<64x32xf32>, vector<2x32xf32> -> vector<2x32xf32>
    %497 = vector.extract_strided_slice %494 {offsets = [0, 0], sizes = [1, 32], strides = [1, 1]} : vector<6x32xf32> to vector<1x32xf32>
    %498 = vector.broadcast %497 : vector<1x32xf32> to vector<2x32xf32>
    %499 = arith.addf %496, %498 : vector<2x32xf32>
    %500 = vector.extract_strided_slice %494 {offsets = [1, 0], sizes = [1, 32], strides = [1, 1]} : vector<6x32xf32> to vector<1x32xf32>
    %501 = vector.extract_strided_slice %494 {offsets = [2, 0], sizes = [1, 32], strides = [1, 1]} : vector<6x32xf32> to vector<1x32xf32>
    %cst_92 = arith.constant dense<0.000000e+00> : vector<2xf32>
    %502 = vector.multi_reduction <add>, %499, %cst_92 [1] : vector<2x32xf32> to vector<2xf32>
    %503 = vector.shape_cast %502 : vector<2xf32> to vector<2x1xf32>
    %cst_93 = arith.constant 3.200000e+01 : f32
    %504 = vector.broadcast %cst_93 : f32 to vector<2x1xf32>
    %505 = arith.divf %503, %504 : vector<2x1xf32>
    %506 = vector.broadcast %505 : vector<2x1xf32> to vector<2x32xf32>
    %507 = arith.subf %499, %506 : vector<2x32xf32>
    %508 = arith.mulf %507, %507 : vector<2x32xf32>
    %cst_94 = arith.constant dense<0.000000e+00> : vector<2xf32>
    %509 = vector.multi_reduction <add>, %508, %cst_94 [1] : vector<2x32xf32> to vector<2xf32>
    %510 = vector.shape_cast %509 : vector<2xf32> to vector<2x1xf32>
    %cst_95 = arith.constant 3.200000e+01 : f32
    %511 = vector.broadcast %cst_95 : f32 to vector<2x1xf32>
    %512 = arith.divf %510, %511 : vector<2x1xf32>
    %513 = vector.broadcast %505 : vector<2x1xf32> to vector<2x32xf32>
    %514 = arith.subf %499, %513 : vector<2x32xf32>
    %cst_96 = arith.constant 9.99999974E-6 : f32
    %515 = vector.broadcast %cst_96 : f32 to vector<2x1xf32>
    %516 = arith.addf %512, %515 : vector<2x1xf32>
    %517 = math.rsqrt %516 : vector<2x1xf32>
    %518 = vector.broadcast %517 : vector<2x1xf32> to vector<2x32xf32>
    %519 = arith.mulf %514, %518 : vector<2x32xf32>
    %520 = vector.broadcast %500 : vector<1x32xf32> to vector<2x32xf32>
    %521 = arith.mulf %519, %520 : vector<2x32xf32>
    %522 = vector.broadcast %501 : vector<1x32xf32> to vector<2x32xf32>
    %523 = arith.addf %521, %522 : vector<2x32xf32>
    %cst_97 = arith.constant 0.000000e+00 : f32
    %524 = vector.broadcast %cst_97 : f32 to vector<2x32xf32>
    %525 = arith.maximumf %523, %524 : vector<2x32xf32>
    %c1176 = arith.constant 1176 : index
    %c0_98 = arith.constant 0 : index
    %526 = vector.load %arg1[%c1176, %c0_98] : memref<1472x192xf32, #tpu.memory_space<vmem>>, vector<32x32xf32>
    %cst_99 = arith.constant dense<0.000000e+00> : vector<2x32xf32>
    %527 = tpu.matmul %525, %526, %cst_99 {dimension_numbers = #tpu.dot_dimension_numbers<[1], [0], [0], [1], [0, 0, 1, 1], [], []>} : vector<2x32xf32>, vector<32x32xf32>, vector<2x32xf32> -> vector<2x32xf32>
    %528 = vector.extract_strided_slice %494 {offsets = [3, 0], sizes = [1, 32], strides = [1, 1]} : vector<6x32xf32> to vector<1x32xf32>
    %529 = vector.broadcast %528 : vector<1x32xf32> to vector<2x32xf32>
    %530 = arith.addf %527, %529 : vector<2x32xf32>
    %531 = vector.extract_strided_slice %494 {offsets = [4, 0], sizes = [1, 32], strides = [1, 1]} : vector<6x32xf32> to vector<1x32xf32>
    %532 = vector.extract_strided_slice %494 {offsets = [5, 0], sizes = [1, 32], strides = [1, 1]} : vector<6x32xf32> to vector<1x32xf32>
    %cst_100 = arith.constant dense<0.000000e+00> : vector<2xf32>
    %533 = vector.multi_reduction <add>, %530, %cst_100 [1] : vector<2x32xf32> to vector<2xf32>
    %534 = vector.shape_cast %533 : vector<2xf32> to vector<2x1xf32>
    %cst_101 = arith.constant 3.200000e+01 : f32
    %535 = vector.broadcast %cst_101 : f32 to vector<2x1xf32>
    %536 = arith.divf %534, %535 : vector<2x1xf32>
    %537 = vector.broadcast %536 : vector<2x1xf32> to vector<2x32xf32>
    %538 = arith.subf %530, %537 : vector<2x32xf32>
    %539 = arith.mulf %538, %538 : vector<2x32xf32>
    %cst_102 = arith.constant dense<0.000000e+00> : vector<2xf32>
    %540 = vector.multi_reduction <add>, %539, %cst_102 [1] : vector<2x32xf32> to vector<2xf32>
    %541 = vector.shape_cast %540 : vector<2xf32> to vector<2x1xf32>
    %cst_103 = arith.constant 3.200000e+01 : f32
    %542 = vector.broadcast %cst_103 : f32 to vector<2x1xf32>
    %543 = arith.divf %541, %542 : vector<2x1xf32>
    %544 = vector.broadcast %536 : vector<2x1xf32> to vector<2x32xf32>
    %545 = arith.subf %530, %544 : vector<2x32xf32>
    %cst_104 = arith.constant 9.99999974E-6 : f32
    %546 = vector.broadcast %cst_104 : f32 to vector<2x1xf32>
    %547 = arith.addf %543, %546 : vector<2x1xf32>
    %548 = math.rsqrt %547 : vector<2x1xf32>
    %549 = vector.broadcast %548 : vector<2x1xf32> to vector<2x32xf32>
    %550 = arith.mulf %545, %549 : vector<2x32xf32>
    %551 = vector.broadcast %531 : vector<1x32xf32> to vector<2x32xf32>
    %552 = arith.mulf %550, %551 : vector<2x32xf32>
    %553 = vector.broadcast %532 : vector<1x32xf32> to vector<2x32xf32>
    %554 = arith.addf %552, %553 : vector<2x32xf32>
    %cst_105 = arith.constant 0.000000e+00 : f32
    %555 = vector.broadcast %cst_105 : f32 to vector<2x32xf32>
    %556 = arith.maximumf %554, %555 : vector<2x32xf32>
    %c1240 = arith.constant 1240 : index
    %c0_106 = arith.constant 0 : index
    %557 = vector.load %arg1[%c1240, %c0_106] : memref<1472x192xf32, #tpu.memory_space<vmem>>, vector<5x32xf32>
    %c1208 = arith.constant 1208 : index
    %c0_107 = arith.constant 0 : index
    %558 = vector.load %arg1[%c1208, %c0_107] : memref<1472x192xf32, #tpu.memory_space<vmem>>, vector<32x32xf32>
    %cst_108 = arith.constant dense<0.000000e+00> : vector<2x32xf32>
    %559 = tpu.matmul %556, %558, %cst_108 {dimension_numbers = #tpu.dot_dimension_numbers<[1], [0], [0], [1], [0, 0, 1, 1], [], []>} : vector<2x32xf32>, vector<32x32xf32>, vector<2x32xf32> -> vector<2x32xf32>
    %560 = vector.extract_strided_slice %557 {offsets = [0, 0], sizes = [1, 32], strides = [1, 1]} : vector<5x32xf32> to vector<1x32xf32>
    %561 = vector.broadcast %560 : vector<1x32xf32> to vector<2x32xf32>
    %562 = arith.addf %559, %561 : vector<2x32xf32>
    %563 = vector.extract_strided_slice %557 {offsets = [1, 0], sizes = [1, 32], strides = [1, 1]} : vector<5x32xf32> to vector<1x32xf32>
    %564 = vector.extract_strided_slice %557 {offsets = [2, 0], sizes = [1, 32], strides = [1, 1]} : vector<5x32xf32> to vector<1x32xf32>
    %cst_109 = arith.constant dense<0.000000e+00> : vector<2xf32>
    %565 = vector.multi_reduction <add>, %562, %cst_109 [1] : vector<2x32xf32> to vector<2xf32>
    %566 = vector.shape_cast %565 : vector<2xf32> to vector<2x1xf32>
    %cst_110 = arith.constant 3.200000e+01 : f32
    %567 = vector.broadcast %cst_110 : f32 to vector<2x1xf32>
    %568 = arith.divf %566, %567 : vector<2x1xf32>
    %569 = vector.broadcast %568 : vector<2x1xf32> to vector<2x32xf32>
    %570 = arith.subf %562, %569 : vector<2x32xf32>
    %571 = arith.mulf %570, %570 : vector<2x32xf32>
    %cst_111 = arith.constant dense<0.000000e+00> : vector<2xf32>
    %572 = vector.multi_reduction <add>, %571, %cst_111 [1] : vector<2x32xf32> to vector<2xf32>
    %573 = vector.shape_cast %572 : vector<2xf32> to vector<2x1xf32>
    %cst_112 = arith.constant 3.200000e+01 : f32
    %574 = vector.broadcast %cst_112 : f32 to vector<2x1xf32>
    %575 = arith.divf %573, %574 : vector<2x1xf32>
    %576 = vector.broadcast %568 : vector<2x1xf32> to vector<2x32xf32>
    %577 = arith.subf %562, %576 : vector<2x32xf32>
    %cst_113 = arith.constant 9.99999974E-6 : f32
    %578 = vector.broadcast %cst_113 : f32 to vector<2x1xf32>
    %579 = arith.addf %575, %578 : vector<2x1xf32>
    %580 = math.rsqrt %579 : vector<2x1xf32>
    %581 = vector.broadcast %580 : vector<2x1xf32> to vector<2x32xf32>
    %582 = arith.mulf %577, %581 : vector<2x32xf32>
    %583 = vector.broadcast %563 : vector<1x32xf32> to vector<2x32xf32>
    %584 = arith.mulf %582, %583 : vector<2x32xf32>
    %585 = vector.broadcast %564 : vector<1x32xf32> to vector<2x32xf32>
    %586 = arith.addf %584, %585 : vector<2x32xf32>
    %cst_114 = arith.constant 0.000000e+00 : f32
    %587 = vector.broadcast %cst_114 : f32 to vector<2x32xf32>
    %588 = arith.maximumf %586, %587 : vector<2x32xf32>
    %c1248 = arith.constant 1248 : index
    %c0_115 = arith.constant 0 : index
    %589 = vector.load %arg1[%c1248, %c0_115] : memref<1472x192xf32, #tpu.memory_space<vmem>>, vector<32x16xf32>
    %cst_116 = arith.constant dense<0.000000e+00> : vector<2x16xf32>
    %590 = tpu.matmul %588, %589, %cst_116 {dimension_numbers = #tpu.dot_dimension_numbers<[1], [0], [0], [1], [0, 0, 1, 1], [], []>} : vector<2x32xf32>, vector<32x16xf32>, vector<2x16xf32> -> vector<2x16xf32>
    %591 = vector.extract_strided_slice %557 {offsets = [3, 0], sizes = [1, 16], strides = [1, 1]} : vector<5x32xf32> to vector<1x16xf32>
    %592 = vector.broadcast %591 : vector<1x16xf32> to vector<2x16xf32>
    %593 = arith.addf %590, %592 : vector<2x16xf32>
    %cst_117 = arith.constant 0.000000e+00 : f32
    %594 = vector.broadcast %cst_117 : f32 to vector<2x16xf32>
    %595 = arith.maximumf %593, %594 : vector<2x16xf32>
    %c1280 = arith.constant 1280 : index
    %c0_118 = arith.constant 0 : index
    %596 = vector.load %arg1[%c1280, %c0_118] : memref<1472x192xf32, #tpu.memory_space<vmem>>, vector<16x8xf32>
    %cst_119 = arith.constant dense<0.000000e+00> : vector<2x8xf32>
    %597 = tpu.matmul %595, %596, %cst_119 {dimension_numbers = #tpu.dot_dimension_numbers<[1], [0], [0], [1], [0, 0, 1, 1], [], []>} : vector<2x16xf32>, vector<16x8xf32>, vector<2x8xf32> -> vector<2x8xf32>
    %598 = vector.extract_strided_slice %557 {offsets = [4, 0], sizes = [1, 8], strides = [1, 1]} : vector<5x32xf32> to vector<1x8xf32>
    %599 = vector.broadcast %598 : vector<1x8xf32> to vector<2x8xf32>
    %600 = arith.addf %597, %599 : vector<2x8xf32>
    %c1328 = arith.constant 1328 : index
    %c0_120 = arith.constant 0 : index
    %601 = vector.load %arg1[%c1328, %c0_120] : memref<1472x192xf32, #tpu.memory_space<vmem>>, vector<5x32xf32>
    %c1296 = arith.constant 1296 : index
    %c0_121 = arith.constant 0 : index
    %602 = vector.load %arg1[%c1296, %c0_121] : memref<1472x192xf32, #tpu.memory_space<vmem>>, vector<32x32xf32>
    %cst_122 = arith.constant dense<0.000000e+00> : vector<2x32xf32>
    %603 = tpu.matmul %556, %602, %cst_122 {dimension_numbers = #tpu.dot_dimension_numbers<[1], [0], [0], [1], [0, 0, 1, 1], [], []>} : vector<2x32xf32>, vector<32x32xf32>, vector<2x32xf32> -> vector<2x32xf32>
    %604 = vector.extract_strided_slice %601 {offsets = [0, 0], sizes = [1, 32], strides = [1, 1]} : vector<5x32xf32> to vector<1x32xf32>
    %605 = vector.broadcast %604 : vector<1x32xf32> to vector<2x32xf32>
    %606 = arith.addf %603, %605 : vector<2x32xf32>
    %607 = vector.extract_strided_slice %601 {offsets = [1, 0], sizes = [1, 32], strides = [1, 1]} : vector<5x32xf32> to vector<1x32xf32>
    %608 = vector.extract_strided_slice %601 {offsets = [2, 0], sizes = [1, 32], strides = [1, 1]} : vector<5x32xf32> to vector<1x32xf32>
    %cst_123 = arith.constant dense<0.000000e+00> : vector<2xf32>
    %609 = vector.multi_reduction <add>, %606, %cst_123 [1] : vector<2x32xf32> to vector<2xf32>
    %610 = vector.shape_cast %609 : vector<2xf32> to vector<2x1xf32>
    %cst_124 = arith.constant 3.200000e+01 : f32
    %611 = vector.broadcast %cst_124 : f32 to vector<2x1xf32>
    %612 = arith.divf %610, %611 : vector<2x1xf32>
    %613 = vector.broadcast %612 : vector<2x1xf32> to vector<2x32xf32>
    %614 = arith.subf %606, %613 : vector<2x32xf32>
    %615 = arith.mulf %614, %614 : vector<2x32xf32>
    %cst_125 = arith.constant dense<0.000000e+00> : vector<2xf32>
    %616 = vector.multi_reduction <add>, %615, %cst_125 [1] : vector<2x32xf32> to vector<2xf32>
    %617 = vector.shape_cast %616 : vector<2xf32> to vector<2x1xf32>
    %cst_126 = arith.constant 3.200000e+01 : f32
    %618 = vector.broadcast %cst_126 : f32 to vector<2x1xf32>
    %619 = arith.divf %617, %618 : vector<2x1xf32>
    %620 = vector.broadcast %612 : vector<2x1xf32> to vector<2x32xf32>
    %621 = arith.subf %606, %620 : vector<2x32xf32>
    %cst_127 = arith.constant 9.99999974E-6 : f32
    %622 = vector.broadcast %cst_127 : f32 to vector<2x1xf32>
    %623 = arith.addf %619, %622 : vector<2x1xf32>
    %624 = math.rsqrt %623 : vector<2x1xf32>
    %625 = vector.broadcast %624 : vector<2x1xf32> to vector<2x32xf32>
    %626 = arith.mulf %621, %625 : vector<2x32xf32>
    %627 = vector.broadcast %607 : vector<1x32xf32> to vector<2x32xf32>
    %628 = arith.mulf %626, %627 : vector<2x32xf32>
    %629 = vector.broadcast %608 : vector<1x32xf32> to vector<2x32xf32>
    %630 = arith.addf %628, %629 : vector<2x32xf32>
    %cst_128 = arith.constant 0.000000e+00 : f32
    %631 = vector.broadcast %cst_128 : f32 to vector<2x32xf32>
    %632 = arith.maximumf %630, %631 : vector<2x32xf32>
    %c1336 = arith.constant 1336 : index
    %c0_129 = arith.constant 0 : index
    %633 = vector.load %arg1[%c1336, %c0_129] : memref<1472x192xf32, #tpu.memory_space<vmem>>, vector<32x16xf32>
    %cst_130 = arith.constant dense<0.000000e+00> : vector<2x16xf32>
    %634 = tpu.matmul %632, %633, %cst_130 {dimension_numbers = #tpu.dot_dimension_numbers<[1], [0], [0], [1], [0, 0, 1, 1], [], []>} : vector<2x32xf32>, vector<32x16xf32>, vector<2x16xf32> -> vector<2x16xf32>
    %635 = vector.extract_strided_slice %601 {offsets = [3, 0], sizes = [1, 16], strides = [1, 1]} : vector<5x32xf32> to vector<1x16xf32>
    %636 = vector.broadcast %635 : vector<1x16xf32> to vector<2x16xf32>
    %637 = arith.addf %634, %636 : vector<2x16xf32>
    %cst_131 = arith.constant 0.000000e+00 : f32
    %638 = vector.broadcast %cst_131 : f32 to vector<2x16xf32>
    %639 = arith.maximumf %637, %638 : vector<2x16xf32>
    %c1368 = arith.constant 1368 : index
    %c0_132 = arith.constant 0 : index
    %640 = vector.load %arg1[%c1368, %c0_132] : memref<1472x192xf32, #tpu.memory_space<vmem>>, vector<16x8xf32>
    %cst_133 = arith.constant dense<0.000000e+00> : vector<2x8xf32>
    %641 = tpu.matmul %639, %640, %cst_133 {dimension_numbers = #tpu.dot_dimension_numbers<[1], [0], [0], [1], [0, 0, 1, 1], [], []>} : vector<2x16xf32>, vector<16x8xf32>, vector<2x8xf32> -> vector<2x8xf32>
    %642 = vector.extract_strided_slice %601 {offsets = [4, 0], sizes = [1, 8], strides = [1, 1]} : vector<5x32xf32> to vector<1x8xf32>
    %643 = vector.broadcast %642 : vector<1x8xf32> to vector<2x8xf32>
    %644 = arith.addf %641, %643 : vector<2x8xf32>
    %c1416 = arith.constant 1416 : index
    %c0_134 = arith.constant 0 : index
    %645 = vector.load %arg1[%c1416, %c0_134] : memref<1472x192xf32, #tpu.memory_space<vmem>>, vector<5x32xf32>
    %c1384 = arith.constant 1384 : index
    %c0_135 = arith.constant 0 : index
    %646 = vector.load %arg1[%c1384, %c0_135] : memref<1472x192xf32, #tpu.memory_space<vmem>>, vector<32x32xf32>
    %cst_136 = arith.constant dense<0.000000e+00> : vector<2x32xf32>
    %647 = tpu.matmul %556, %646, %cst_136 {dimension_numbers = #tpu.dot_dimension_numbers<[1], [0], [0], [1], [0, 0, 1, 1], [], []>} : vector<2x32xf32>, vector<32x32xf32>, vector<2x32xf32> -> vector<2x32xf32>
    %648 = vector.extract_strided_slice %645 {offsets = [0, 0], sizes = [1, 32], strides = [1, 1]} : vector<5x32xf32> to vector<1x32xf32>
    %649 = vector.broadcast %648 : vector<1x32xf32> to vector<2x32xf32>
    %650 = arith.addf %647, %649 : vector<2x32xf32>
    %651 = vector.extract_strided_slice %645 {offsets = [1, 0], sizes = [1, 32], strides = [1, 1]} : vector<5x32xf32> to vector<1x32xf32>
    %652 = vector.extract_strided_slice %645 {offsets = [2, 0], sizes = [1, 32], strides = [1, 1]} : vector<5x32xf32> to vector<1x32xf32>
    %cst_137 = arith.constant dense<0.000000e+00> : vector<2xf32>
    %653 = vector.multi_reduction <add>, %650, %cst_137 [1] : vector<2x32xf32> to vector<2xf32>
    %654 = vector.shape_cast %653 : vector<2xf32> to vector<2x1xf32>
    %cst_138 = arith.constant 3.200000e+01 : f32
    %655 = vector.broadcast %cst_138 : f32 to vector<2x1xf32>
    %656 = arith.divf %654, %655 : vector<2x1xf32>
    %657 = vector.broadcast %656 : vector<2x1xf32> to vector<2x32xf32>
    %658 = arith.subf %650, %657 : vector<2x32xf32>
    %659 = arith.mulf %658, %658 : vector<2x32xf32>
    %cst_139 = arith.constant dense<0.000000e+00> : vector<2xf32>
    %660 = vector.multi_reduction <add>, %659, %cst_139 [1] : vector<2x32xf32> to vector<2xf32>
    %661 = vector.shape_cast %660 : vector<2xf32> to vector<2x1xf32>
    %cst_140 = arith.constant 3.200000e+01 : f32
    %662 = vector.broadcast %cst_140 : f32 to vector<2x1xf32>
    %663 = arith.divf %661, %662 : vector<2x1xf32>
    %664 = vector.broadcast %656 : vector<2x1xf32> to vector<2x32xf32>
    %665 = arith.subf %650, %664 : vector<2x32xf32>
    %cst_141 = arith.constant 9.99999974E-6 : f32
    %666 = vector.broadcast %cst_141 : f32 to vector<2x1xf32>
    %667 = arith.addf %663, %666 : vector<2x1xf32>
    %668 = math.rsqrt %667 : vector<2x1xf32>
    %669 = vector.broadcast %668 : vector<2x1xf32> to vector<2x32xf32>
    %670 = arith.mulf %665, %669 : vector<2x32xf32>
    %671 = vector.broadcast %651 : vector<1x32xf32> to vector<2x32xf32>
    %672 = arith.mulf %670, %671 : vector<2x32xf32>
    %673 = vector.broadcast %652 : vector<1x32xf32> to vector<2x32xf32>
    %674 = arith.addf %672, %673 : vector<2x32xf32>
    %cst_142 = arith.constant 0.000000e+00 : f32
    %675 = vector.broadcast %cst_142 : f32 to vector<2x32xf32>
    %676 = arith.maximumf %674, %675 : vector<2x32xf32>
    %c1424 = arith.constant 1424 : index
    %c0_143 = arith.constant 0 : index
    %677 = vector.load %arg1[%c1424, %c0_143] : memref<1472x192xf32, #tpu.memory_space<vmem>>, vector<32x16xf32>
    %cst_144 = arith.constant dense<0.000000e+00> : vector<2x16xf32>
    %678 = tpu.matmul %676, %677, %cst_144 {dimension_numbers = #tpu.dot_dimension_numbers<[1], [0], [0], [1], [0, 0, 1, 1], [], []>} : vector<2x32xf32>, vector<32x16xf32>, vector<2x16xf32> -> vector<2x16xf32>
    %679 = vector.extract_strided_slice %645 {offsets = [3, 0], sizes = [1, 16], strides = [1, 1]} : vector<5x32xf32> to vector<1x16xf32>
    %680 = vector.broadcast %679 : vector<1x16xf32> to vector<2x16xf32>
    %681 = arith.addf %678, %680 : vector<2x16xf32>
    %cst_145 = arith.constant 0.000000e+00 : f32
    %682 = vector.broadcast %cst_145 : f32 to vector<2x16xf32>
    %683 = arith.maximumf %681, %682 : vector<2x16xf32>
    %c1456 = arith.constant 1456 : index
    %c0_146 = arith.constant 0 : index
    %684 = vector.load %arg1[%c1456, %c0_146] : memref<1472x192xf32, #tpu.memory_space<vmem>>, vector<16x8xf32>
    %cst_147 = arith.constant dense<0.000000e+00> : vector<2x8xf32>
    %685 = tpu.matmul %683, %684, %cst_147 {dimension_numbers = #tpu.dot_dimension_numbers<[1], [0], [0], [1], [0, 0, 1, 1], [], []>} : vector<2x16xf32>, vector<16x8xf32>, vector<2x8xf32> -> vector<2x8xf32>
    %686 = vector.extract_strided_slice %645 {offsets = [4, 0], sizes = [1, 8], strides = [1, 1]} : vector<5x32xf32> to vector<1x8xf32>
    %687 = vector.broadcast %686 : vector<1x8xf32> to vector<2x8xf32>
    %688 = arith.addf %685, %687 : vector<2x8xf32>
    %689 = tpu.concatenate %600, %644, %688 in 1 : vector<2x8xf32>, vector<2x8xf32>, vector<2x8xf32> -> vector<2x24xf32>
    %c0_148 = arith.constant 0 : index
    %c0_149 = arith.constant 0 : index
    %690 = vector.load %arg2[%c0_148, %c0_149] : memref<2x24xf32, #tpu.memory_space<vmem>>, vector<2x24xf32>
    tpu.vector_store %arg2[%c0_148, %c0_149], %689 {strides = array<i32>} : memref<2x24xf32, #tpu.memory_space<vmem>>, vector<2x24xf32>,
    return
  }
}

</mosaic_0001>

<bundles_post_ra>
// kernel: hierarchical_classifier_forward.1
= control target key start
LH: loop header
LB: loop body
LE: loop exit
PB: predicated region body
PF: predicated region fallthrough
CT: control target
= control target key end

     0   :  { %vm70_vm0 = vcmask 523264   ;;  %s5395_s5 = smov 104   ;;  %s5396_s6 = smov 112   ;;  %vm199_vm1 = vcmask 64512   ;;  %vm1232_vm2 = vcmask 130048   ;;  %vm1235_vm3 = vcmask 195584   ;;  %s7241_s1 = inlined_call_operand.vmem [shape: f32[1472,192], index: 1, kind: input, shape index: {}]   ;;  %s7242_s0 = inlined_call_operand.vmem [shape: f32[16,64], index: 0, kind: input, shape index: {}]   ;;  %s7243_s2 = inlined_call_operand.vmem [shape: f32[2,24], index: 2, kind: output, shape index: {}]  }
   0x1   :  { %v27_v0 = vld [vmem:[%s7241_s1 + $0x70] sm:$0xff]  ;;  %v25_v1 = vld [vmem:[%s7241_s1 + $0x60] sm:$0xff]  ;;  %v12_v9 = vld [vmem:[%s7242_s0 + $0x8] sm:$0xff]  ;;  %s5397_s11 = smov 120   ;;  %s5398_s22 = smov 88   ;;  %vm1238_vm4 = vcmask 261120  }
   0x2   :  { %85 = vmatpush.msra.mxu0 %v27_v0  ;;  %v23_v2 = vld [vmem:[%s7241_s1 + $0x50] sm:$0xff]  ;;  %v21_v3 = vld [vmem:[%s7241_s1 + $0x40] sm:$0xff]  ;;  %v28_v11 = vld [vmem:[%s7241_s1 + $0x78] sm:$0xff]  ;;  %s5399_s23 = smov 64   ;;  %s5400_s24 = smov 96   ;;  %vm1241_vm5 = vcmask 326656  }
   0x3   :  { %v19_v4 = vld [vmem:[%s7241_s1 + $0x30] sm:$0xff]  ;;  %v17_v5 = vld [vmem:[%s7241_s1 + $0x20] sm:$0xff]  ;;  %108 = vmatpush.msra.mxu1 %v28_v11  ;;  %v26_v15 = vld [vmem:[%s7241_s1 + $0x68] sm:$0xff]  ;;  %s5401_s25 = smov 72   ;;  %s5402_s26 = smov 80   ;;  %vm1244_vm6 = vcmask 392192  }
   0x4   :  { %86 = vmatpush.msra.mxu0 %v25_v1  ;;  %v15_v6 = vld [vmem:[%s7241_s1 + $0x10] sm:$0xff]  ;;  %v13_v7 = vld [vmem:[%s7241_s1] sm:$0xff]  ;;  %v24_v16 = vld [vmem:[%s7241_s1 + $0x58] sm:$0xff]  ;;  %s5403_s27 = smov 8   ;;  %s5404_s28 = smov 16   ;;  %vm1247_vm7 = vcmask 457728  }
   0x5   :  { %v11_v8 = vld [vmem:[%s7242_s0] sm:$0xff]  ;;  %109 = vmatpush.msra.mxu1 %v26_v15  ;;  %v22_v17 = vld [vmem:[%s7241_s1 + $0x48] sm:$0xff]  ;;  %v20_v18 = vld [vmem:[%s7241_s1 + $0x38] sm:$0xff]  ;;  %s5405_s29 = smov 24   ;;  %s5406_s30 = smov 40  }
   0x6   :  { %87 = vmatpush.msra.mxu0 %v23_v2  ;;  %v5463_v10 = vld [vmem:[%s7241_s1 + $0x80] ss:$8 sm:$0x3]  ;;  %v16_v22 = vld [vmem:[%s7241_s1 + $0x18] sm:$0xff]  ;;  %s5407_s3 = smov 32   ;;  %s5408_s4 = smov 56  }
   0x7   :  { %v66_v12 = vperm.slane %v5463_v10, 0  ;;  %110 = vmatpush.msra.mxu1 %v24_v16  ;;  %v18_v21 = vld [vmem:[%s7241_s1 + $0x28] sm:$0xff]  ;;  %v67_v39 = vperm.slane %v5463_v10, 1  ;;  %s5409_s7 = smov 48  }
   0x8   :  { %88 = vmatpush.msra.mxu0 %v21_v3  ;;  %v14_v23 = vld [vmem:[%s7241_s1 + $0x8] sm:$0xff] }
   0x9   :  { %111 = vmatpush.msra.mxu1 %v22_v17 }
   0xa   :  { %89 = vmatpush.msra.mxu0 %v19_v4 }
   0xb   :  { %112 = vmatpush.msra.mxu1 %v20_v18 }
   0xc   :  { %90 = vmatpush.msra.mxu0 %v17_v5 }
   0xd   :  { %113 = vmatpush.msra.mxu1 %v18_v21 }
   0xe   :  { %91 = vmatpush.msra.mxu0 %v15_v6 }
   0xf   :  { %114 = vmatpush.msra.mxu1 %v16_v22 }
  0x10   :  { %92 = vmatpush.msra.mxu0 %v13_v7 }
  0x11   :  { %4874 = vmatmul.msk.f32.vlgmr.msra.gmra.mxu0 %vm70_vm0, %v11_v8  ;;  %115 = vmatpush.msra.mxu1 %v14_v23 }
  0x12   :  { %4876 = vmatmul.msk.f32.vlgmr.msra.gmra.mxu1 %vm70_vm0, %v11_v8 }
  0x19   :  { %4875 = vmatmul.msk.f32.gmra.mxu0 %vm70_vm0, %v12_v9 }
  0x1a   :  { %4877 = vmatmul.msk.f32.gmra.mxu1 %vm70_vm0, %v12_v9 }
  0x8e   :  { %v94_v13 = vpop.f32.mrf.mxu0 }
  0x8f   :  { %v95_v14 = vadd.f32 %v94_v13, %v66_v12  ;;  %v117_v38 = vpop.f32.mrf.mxu1 }
  0x90   :  { %v5534_v40 = vadd.f32 %v117_v38, %v67_v39 }
  0x91   :  { %133 = vrot.lane.b32.xlu2 %v95_v14, %s5395_s5  ;;  %129 = vrot.lane.b32.xlu1 %v95_v14, %s5396_s6 }
  0x92   :  { %125 = vrot.lane.b32.xlu0 %v95_v14, %s5397_s11 }
  0x96   :  { %v97_v19 = vpop.f32.mrf.mxu0 }
  0x97   :  { %v98_v20 = vadd.f32 %v97_v19, %v66_v12  ;;  %v120_v41 = vpop.f32.mrf.mxu1 }
  0x98   :  { %v5536_v42 = vadd.f32 %v120_v41, %v67_v39 }
  0x99   :  { %135 = vrot.lane.b32.xlu2 %v98_v20, %s5395_s5  ;;  %131 = vrot.lane.b32.xlu1 %v98_v20, %s5396_s6 }
  0x9a   :  { %127 = vrot.lane.b32.xlu0 %v98_v20, %s5397_s11  ;;  %v5540_v43 = vpack.i.bf16 %v5536_v42, %v5534_v40 }
  0xa1   :  { %143 = vrot.lane.b32.xlu2 %v98_v20, %s5398_s22  ;;  %197 = vrot.lane.b32.xlu1 %v95_v14, %s5399_s23 }
  0xa2   :  { %141 = vrot.lane.b32.xlu0 %v95_v14, %s5398_s22 }
  0xa9   :  { %224 = vrot.lane.b32.xlu2 %v98_v20, %s5399_s23  ;;  %137 = vrot.lane.b32.xlu1 %v95_v14, %s5400_s24 }
  0xaa   :  { %149 = vrot.lane.b32.xlu0 %v95_v14, %s5401_s25 }
  0xb1   :  { %139 = vrot.lane.b32.xlu2 %v98_v20, %s5400_s24  ;;  %151 = vrot.lane.b32.xlu1 %v98_v20, %s5401_s25 }
  0xeb   :  { %v5506_v24 = vpop.permute.xlu2 %133 }
  0xf3   :  { %v5508_v25 = vpop.permute.xlu2 %135 }
  0xfb   :  { %v5510_v26 = vpop.permute.xlu2 %143 }
 0x103   :  { %v225_v27 = vpop.permute.xlu2 %224  ;;  %v130_v28 = vpop.permute.xlu1 %129 }
 0x104   :  { %v126_v29 = vpop.permute.xlu0 %125  ;;  %4880 = vmatpush.xpose.msk.msra.mxu3 %vm199_vm1, %v225_v27  ;;  %302 = vrot.lane.b32.xlu2 %v130_v28, %s5399_s23 }
 0x105   :  { %250 = vrot.lane.b32.xlu0 %v126_v29, %s5399_s23 }
 0x107   :  { %4881 = vmatmul.msk.f32.vlgmr.msra.gmra.mxu3 %vm199_vm1, %v98_v20 }
 0x10b   :  { %v132_v30 = vpop.permute.xlu1 %131  ;;  %v140_v37 = vpop.permute.xlu2 %139 }
 0x10c   :  { %v128_v31 = vpop.permute.xlu0 %127  ;;  %354 = vrot.lane.b32.xlu2 %v5506_v24, %s5399_s23 }
 0x10d   :  { %145 = vrot.lane.b32.xlu0 %v95_v14, %s5402_s26  ;;  %276 = vrot.lane.b32.xlu1 %v128_v31, %s5399_s23 }
 0x113   :  { %v198_v32 = vpop.permute.xlu1 %197 }
 0x114   :  { %4878 = vmatpush.xpose.msk.msra.mxu2 %vm199_vm1, %v198_v32  ;;  %484 = vrot.lane.b32.xlu2 %v5510_v26, %s5399_s23  ;;  %v142_v33 = vpop.permute.xlu0 %141 }
 0x115   :  { %147 = vrot.lane.b32.xlu0 %v98_v20, %s5402_s26  ;;  %328 = vrot.lane.b32.xlu1 %v132_v30, %s5399_s23 }
 0x117   :  { %4879 = vmatmul.msk.f32.vlgmr.msra.gmra.mxu2 %vm199_vm1, %v95_v14 }
 0x11b   :  { %v138_v34 = vpop.permute.xlu1 %137 }
 0x11c   :  { %v150_v36 = vpop.permute.xlu0 %149 }
 0x11d   :  { %380 = vrot.lane.b32.xlu0 %v5508_v25, %s5399_s23  ;;  %458 = vrot.lane.b32.xlu1 %v142_v33, %s5399_s23 }
 0x123   :  { %v152_v35 = vpop.permute.xlu1 %151 }
 0x124   :  { %588 = vrot.lane.b32.xlu2 %v152_v35, %s5399_s23 }
 0x125   :  { %406 = vrot.lane.b32.xlu1 %v138_v34, %s5399_s23  ;;  %562 = vrot.lane.b32.xlu0 %v150_v36, %s5399_s23 }
 0x12d   :  { %432 = vrot.lane.b32.xlu0 %v140_v37, %s5399_s23 }
 0x135   :  { %5086 = vrot.lane.b32.xlu0 %v5540_v43, %s5396_s6 }
 0x15e   :  { %v303_v44 = vpop.permute.xlu2 %302 }
 0x166   :  { %v355_v46 = vpop.permute.xlu2 %354 }
 0x16e   :  { %v485_v51 = vpop.permute.xlu2 %484 }
 0x177   :  { %v251_v45 = vpop.permute.xlu0 %250 }
 0x178   :  { %4882 = vmatpush.xpose.msk.msrb.mxu2 %vm199_vm1, %v251_v45 }
 0x17b   :  { %4883 = vmatmul.msk.f32.vlgmr.msrb.gmra.mxu2 %vm199_vm1, %v126_v29 }
 0x17c   :  { %4886 = vmatpush.xpose.msk.msra.mxu2 %vm199_vm1, %v303_v44 }
 0x17e   :  { %v589_v57 = vpop.permute.xlu2 %588 }
 0x17f   :  { %v277_v47 = vpop.permute.xlu1 %276  ;;  %v146_v48 = vpop.permute.xlu0 %145 }
 0x180   :  { %4890 = vmatpush.xpose.msk.msrb.mxu2 %vm199_vm1, %v355_v46  ;;  %4884 = vmatpush.xpose.msk.msrb.mxu3 %vm199_vm1, %v277_v47 }
 0x181   :  { %510 = vrot.lane.b32.xlu1 %v146_v48, %s5399_s23 }
 0x183   :  { %4885 = vmatmul.msk.f32.vlgmr.msrb.gmra.mxu3 %vm199_vm1, %v128_v31  ;;  %4887 = vmatmul.msk.f32.vlgmr.msra.gmra.mxu2 %vm199_vm1, %v130_v28 }
 0x187   :  { %v329_v49 = vpop.permute.xlu1 %328  ;;  %v148_v50 = vpop.permute.xlu0 %147 }
 0x188   :  { %4888 = vmatpush.xpose.msk.msra.mxu3 %vm199_vm1, %v329_v49  ;;  %536 = vrot.lane.b32.xlu2 %v148_v50, %s5399_s23 }
 0x189   :  { %5076 = vrot.lane.b32.xlu1 %v5540_v43, %s5397_s11 }
 0x18a   :  { %v247_v52 = vpop.f32.mrf.mxu3 }
 0x18b   :  { %v5556_v53 = vmul.f32 0.35355338, %v247_v52  ;;  %4889 = vmatmul.msk.f32.vlgmr.msra.gmra.mxu3 %vm199_vm1, %v132_v30  ;;  %4891 = vmatmul.msk.f32.vlgmr.msrb.gmra.mxu2 %vm199_vm1, %v5506_v24 }
 0x18d   :  { %v633_v54 = vsel %vm199_vm1, %v5556_v53, -inf }
 0x18e   :  { %634 = vmax.xlane.f32.xlu0 %v633_v54 }
 0x18f   :  { %v459_v55 = vpop.permute.xlu1 %458  ;;  %v381_v56 = vpop.permute.xlu0 %380 }
 0x190   :  { %4892 = vmatpush.xpose.msk.msrb.mxu3 %vm199_vm1, %v381_v56  ;;  %4898 = vmatpush.xpose.msk.msra.mxu2 %vm199_vm1, %v459_v55 }
 0x191   :  { %5081 = vrot.lane.b32.xlu2 %v5540_v43, %s5395_s5 }
 0x193   :  { %4893 = vmatmul.msk.f32.vlgmr.msrb.gmra.mxu3 %vm199_vm1, %v5508_v25  ;;  %4899 = vmatmul.msk.f32.vlgmr.msra.gmra.mxu2 %vm199_vm1, %v142_v33 }
 0x194   :  { %4900 = vmatpush.xpose.msk.msra.mxu3 %vm199_vm1, %v485_v51 }
 0x197   :  { %v407_v58 = vpop.permute.xlu1 %406  ;;  %v563_v59 = vpop.permute.xlu0 %562 }
 0x198   :  { %4908 = vmatpush.xpose.msk.msrb.mxu3 %vm199_vm1, %v589_v57  ;;  %4894 = vmatpush.xpose.msk.msrb.mxu0 %vm199_vm1, %v407_v58 }
 0x199   :  { %4906 = vmatpush.xpose.msk.msrb.mxu2 %vm199_vm1, %v563_v59 }
 0x19a   :  { %v221_v61 = vpop.f32.mrf.mxu2 }
 0x19b   :  { %4895 = vmatmul.msk.f32.vlgmr.msrb.gmra.mxu0 %vm199_vm1, %v138_v34  ;;  %4901 = vmatmul.msk.f32.vlgmr.msra.gmra.mxu3 %vm199_vm1, %v5510_v26  ;;  %v614_v62 = vmul.f32 0.35355338, %v221_v61 }
 0x19c   :  { %4907 = vmatmul.msk.f32.vlgmr.msrb.gmra.mxu2 %vm199_vm1, %v150_v36 }
 0x19d   :  { %v630_v63 = vsel %vm199_vm1, %v614_v62, -inf }
 0x19f   :  { %v433_v60 = vpop.permute.xlu0 %432 }
 0x1a0   :  { %4896 = vmatpush.xpose.msk.msrb.mxu1 %vm199_vm1, %v433_v60 }
 0x1a3   :  { %4897 = vmatmul.msk.f32.vlgmr.msrb.gmra.mxu1 %vm199_vm1, %v140_v37  ;;  %4909 = vmatmul.msk.f32.vlgmr.msrb.gmra.mxu3 %vm199_vm1, %v152_v35 }
 0x1a7   :  { %v5087_v1 = vpop.permute.xlu0 %5086 }
 0x1a8   :  { %v5089_v2 = vunpack.i.h.bf16 %v5087_v1  ;;  %v5088_v4 = vunpack.i.l.bf16 %v5087_v1 }
 0x1b3   :  { %631 = vmax.xlane.f32.xlu1 %v630_v63 }
 0x1e2   :  { %v537_v0 = vpop.permute.xlu2 %536 }
 0x1e3   :  { %4904 = vmatpush.xpose.msk.msra.mxu1 %vm199_vm1, %v537_v0 }
 0x1e6   :  { %4905 = vmatmul.msk.f32.vlgmr.msra.gmra.mxu1 %vm199_vm1, %v148_v50 }
 0x1e7   :  { %847 = vmatpush.msrb.mxu1 %v5536_v42 }
 0x1e9   :  { %939 = vmatpush.msra.mxu1 %v5089_v2 }
 0x1eb   :  { %v5082_v10 = vpop.permute.xlu2 %5081 }
 0x1ec   :  { %v5084_v12 = vunpack.i.h.bf16 %v5082_v10  ;;  %v5083_v13 = vunpack.i.l.bf16 %v5082_v10 }
 0x1f3   :  { %v511_v3 = vpop.permute.xlu1 %510 }
 0x1f4   :  { %4902 = vmatpush.xpose.msk.msra.mxu0 %vm199_vm1, %v511_v3 }
 0x1f7   :  { %4903 = vmatmul.msk.f32.vlgmr.msra.gmra.mxu0 %vm199_vm1, %v146_v48 }
 0x1f8   :  { %824 = vmatpush.msrb.mxu0 %v5534_v40 }
 0x1fa   :  { %916 = vmatpush.msra.mxu0 %v5088_v4 }
 0x1fb   :  { %v5077_v5 = vpop.permute.xlu1 %5076 }
 0x1fc   :  { %v5079_v6 = vunpack.i.h.bf16 %v5077_v5  ;;  %v5078_v7 = vunpack.i.l.bf16 %v5077_v5 }
 0x1fe   :  { %v273_v8 = vpop.f32.mrf.mxu2  ;;  %870 = vmatpush.msra.mxu2 %v5078_v7  ;;  %893 = vmatpush.msra.mxu3 %v5079_v6 }
 0x1ff   :  { %v5588_v9 = vmul.f32 0.35355338, %v273_v8 }
 0x200   :  { %962 = vmatpush.msrb.mxu2 %v5083_v13  ;;  %985 = vmatpush.msrb.mxu3 %v5084_v12 }
 0x201   :  { %v636_v11 = vsel %vm199_vm1, %v5588_v9, -inf  ;;  %v635_v47 = vpop.xlane.xlu0 %634 }
 0x202   :  { %637 = vmax.xlane.f32.xlu0 %v636_v11  ;;  %v679_v50 = vsub.f32 %v5556_v53, %v635_v47 }
 0x204   :  { %v696_v52 = vmul.f32 1.442695, %v679_v50 }
 0x206   :  { %v325_v14 = vpop.f32.mrf.mxu2  ;;  %v299_v19 = vpop.f32.mrf.mxu3 }
 0x207   :  { %v5592_v15 = vmul.f32 0.35355338, %v325_v14  ;;  %v5604_v28 = vmul.f32 0.35355338, %v299_v19 }
 0x209   :  { %v642_v16 = vsel %vm199_vm1, %v5592_v15, -inf  ;;  %v639_v30 = vsel %vm199_vm1, %v5604_v28, -inf }
 0x20a   :  { %643 = vmax.xlane.f32.xlu1 %v642_v16 }
 0x20e   :  { %v351_v24 = vpop.f32.mrf.mxu3  ;;  %v377_v26 = vpop.f32.mrf.mxu2 }
 0x20f   :  { %v5612_v35 = vmul.f32 0.35355338, %v351_v24  ;;  %v5631_v54 = vmul.f32 0.35355338, %v377_v26 }
 0x211   :  { %v645_v37 = vsel %vm199_vm1, %v5612_v35, -inf  ;;  %v648_v55 = vsel %vm199_vm1, %v5631_v54, -inf }
 0x216   :  { %v403_v31 = vpop.f32.mrf.mxu3  ;;  %v481_v33 = vpop.f32.mrf.mxu2 }
 0x217   :  { %v5643_v60 = vmul.f32 0.35355338, %v481_v33 }
 0x218   :  { %v429_v17 = vpop.f32.mrf.mxu0 }
 0x219   :  { %v5596_v18 = vmul.f32 0.35355338, %v429_v17  ;;  %v660_v0 = vsel %vm199_vm1, %v5643_v60, -inf }
 0x21b   :  { %v654_v20 = vsel %vm199_vm1, %v5596_v18, -inf }
 0x21c   :  { %655 = vmax.xlane.f32.xlu2 %v654_v20 }
 0x21e   :  { %v507_v36 = vpop.f32.mrf.mxu3 }
 0x21f   :  { %v585_v38 = vpop.f32.mrf.mxu2  ;;  %v5652_v3 = vmul.f32 0.35355338, %v507_v36 }
 0x220   :  { %v455_v21 = vpop.f32.mrf.mxu1  ;;  %v5616_v39 = vmul.f32 0.35355338, %v585_v38 }
 0x221   :  { %v5600_v22 = vmul.f32 0.35355338, %v455_v21  ;;  %v663_v6 = vsel %vm199_vm1, %v5652_v3, -inf }
 0x222   :  { %v672_v41 = vsel %vm199_vm1, %v5616_v39, -inf }
 0x223   :  { %v657_v23 = vsel %vm199_vm1, %v5600_v22, -inf }
 0x224   :  { %658 = vmax.xlane.f32.xlu2 %v657_v23 }
 0x226   :  { %v632_v25 = vpop.xlane.xlu1 %631  ;;  %v611_v44 = vpop.f32.mrf.mxu3 }
 0x227   :  { %v678_v27 = vsub.f32 %v614_v62, %v632_v25  ;;  %v5620_v45 = vmul.f32 0.35355338, %v611_v44  ;;  %v5645_v62 = vmul.f32 0.35355338, %v403_v31 }
 0x229   :  { %v694_v29 = vmul.f32 1.442695, %v678_v27  ;;  %v675_v46 = vsel %vm199_vm1, %v5620_v45, -inf  ;;  %v651_v1 = vsel %vm199_vm1, %v5645_v62, -inf }
 0x22b   :  { %5153 = vpow2.f32 %v694_v29 }
 0x22c   :  { %640 = vmax.xlane.f32.xlu2 %v639_v30  ;;  %5155 = vpow2.f32 %v696_v52 }
 0x231   :  { %v5608_v32 = vpop.eup %5153 }
 0x232   :  { %v726_v34 = vsel %vm199_vm1, %v5608_v32, 0.0  ;;  %v5635_v57 = vpop.eup %5155 }
 0x233   :  { %727 = vadd.xlane.f32.xlu1 %v726_v34  ;;  %v729_v59 = vsel %vm199_vm1, %v5635_v57, 0.0 }
 0x23b   :  { %646 = vmax.xlane.f32.xlu1 %v645_v37 }
 0x243   :  { %673 = vmax.xlane.f32.xlu1 %v672_v41 }
 0x24b   :  { %676 = vmax.xlane.f32.xlu1 %v675_v46 }
 0x263   :  { %v559_v48 = vpop.f32.mrf.mxu1 }
 0x264   :  { %5091 = vrot.lane.b32.xlu1 %v5540_v43, %s5398_s22  ;;  %v5626_v49 = vmul.f32 0.35355338, %v559_v48 }
 0x266   :  { %v669_v51 = vsel %vm199_vm1, %v5626_v49, -inf }
 0x267   :  { %670 = vmax.xlane.f32.xlu2 %v669_v51 }
 0x26f   :  { %649 = vmax.xlane.f32.xlu2 %v648_v55 }
 0x274   :  { %v533_v56 = vpop.f32.mrf.mxu0 }
 0x275   :  { %v5637_v58 = vmul.f32 0.35355338, %v533_v56  ;;  %v638_v61 = vpop.xlane.xlu0 %637 }
 0x276   :  { %v680_v63 = vsub.f32 %v5588_v9, %v638_v61 }
 0x277   :  { %v666_v53 = vsel %vm199_vm1, %v5637_v58, -inf  ;;  %730 = vadd.xlane.f32.xlu2 %v729_v59 }
 0x278   :  { %667 = vmax.xlane.f32.xlu0 %v666_v53  ;;  %v698_v2 = vmul.f32 1.442695, %v680_v63 }
 0x27a   :  { %5157 = vpow2.f32 %v698_v2 }
 0x27d   :  { %v644_v4 = vpop.xlane.xlu1 %643 }
 0x27e   :  { %v682_v5 = vsub.f32 %v5592_v15, %v644_v4 }
 0x27f   :  { %652 = vmax.xlane.f32.xlu2 %v651_v1 }
 0x280   :  { %661 = vmax.xlane.f32.xlu0 %v660_v0  ;;  %v702_v7 = vmul.f32 1.442695, %v682_v5  ;;  %v5657_v8 = vpop.eup %5157 }
 0x281   :  { %v732_v9 = vsel %vm199_vm1, %v5657_v8, 0.0 }
 0x282   :  { %5159 = vpow2.f32 %v702_v7 }
 0x288   :  { %664 = vmax.xlane.f32.xlu0 %v663_v6  ;;  %v5662_v13 = vpop.eup %5159 }
 0x289   :  { %v738_v14 = vsel %vm199_vm1, %v5662_v13, 0.0 }
 0x28f   :  { %v656_v10 = vpop.xlane.xlu2 %655 }
 0x290   :  { %733 = vadd.xlane.f32.xlu0 %v732_v9  ;;  %v686_v11 = vsub.f32 %v5596_v18, %v656_v10 }
 0x292   :  { %v710_v12 = vmul.f32 1.442695, %v686_v11 }
 0x294   :  { %5161 = vpow2.f32 %v710_v12 }
 0x297   :  { %v659_v15 = vpop.xlane.xlu2 %658 }
 0x298   :  { %739 = vadd.xlane.f32.xlu0 %v738_v14  ;;  %v687_v16 = vsub.f32 %v5600_v22, %v659_v15 }
 0x29a   :  { %v5667_v17 = vpop.eup %5161  ;;  %v712_v19 = vmul.f32 1.442695, %v687_v16 }
 0x29b   :  { %v750_v20 = vsel %vm199_vm1, %v5667_v17, 0.0 }
 0x29c   :  { %5163 = vpow2.f32 %v712_v19  ;;  %751 = vadd.xlane.f32.xlu1 %v750_v20 }
 0x29f   :  { %v641_v18 = vpop.xlane.xlu2 %640 }
 0x2a0   :  { %v681_v21 = vsub.f32 %v5604_v28, %v641_v18 }
 0x2a2   :  { %v5672_v23 = vpop.eup %5163  ;;  %v700_v24 = vmul.f32 1.442695, %v681_v21 }
 0x2a3   :  { %v753_v25 = vsel %vm199_vm1, %v5672_v23, 0.0 }
 0x2a4   :  { %5165 = vpow2.f32 %v700_v24  ;;  %754 = vadd.xlane.f32.xlu2 %v753_v25 }
 0x2a6   :  { %v728_v22 = vpop.xlane.xlu1 %727 }
 0x2a7   :  { %5167 = vrcp.f32 %v728_v22 }
 0x2aa   :  { %v5676_v26 = vpop.eup %5165 }
 0x2ab   :  { %v735_v27 = vsel %vm199_vm1, %v5676_v26, 0.0 }
 0x2ac   :  { %736 = vadd.xlane.f32.xlu2 %v735_v27 }
 0x2ad   :  { %v5168_v29 = vpop.eup %5167 }
 0x2ae   :  { %v790_v30 = vmul.f32 %v5168_v29, %v5608_v32  ;;  %v647_v31 = vpop.xlane.xlu1 %646 }
 0x2af   :  { %v683_v36 = vsub.f32 %v5612_v35, %v647_v31 }
 0x2b0   :  { %4910 = vmatmul.msk.f32.vlgmr.msrb.gmra.mxu0 %vm199_vm1, %v790_v30 }
 0x2b1   :  { %v704_v38 = vmul.f32 1.442695, %v683_v36 }
 0x2b6   :  { %v674_v35 = vpop.xlane.xlu1 %673 }
 0x2b7   :  { %v692_v61 = vsub.f32 %v5616_v39, %v674_v35 }
 0x2be   :  { %v677_v7 = vpop.xlane.xlu1 %676 }
 0x2d6   :  { %v5092_v14 = vpop.permute.xlu1 %5091 }
 0x2d7   :  { %v5093_v20 = vunpack.i.l.bf16 %v5092_v14  ;;  %v5094_v27 = vunpack.i.h.bf16 %v5092_v14 }
 0x2da   :  { %v5682_v28 = vpop.xlane.xlu2 %670 }
 0x2e2   :  { %v650_v33 = vpop.xlane.xlu2 %649 }
 0x2e3   :  { %v684_v34 = vsub.f32 %v5631_v54, %v650_v33 }
 0x2e5   :  { %v706_v37 = vmul.f32 1.442695, %v684_v34 }
 0x2e7   :  { %5169 = vpow2.f32 %v706_v37 }
 0x2ea   :  { %v731_v44 = vpop.xlane.xlu2 %730 }
 0x2eb   :  { %v668_v41 = vpop.xlane.xlu0 %667  ;;  %5171 = vrcp.f32 %v731_v44 }
 0x2ec   :  { %v690_v46 = vsub.f32 %v5637_v58, %v668_v41  ;;  %5173 = vpow2.f32 %v704_v38 }
 0x2ed   :  { %v5687_v32 = vpop.eup %5169 }
 0x2ee   :  { %v718_v47 = vmul.f32 1.442695, %v690_v46  ;;  %v744_v48 = vsel %vm199_vm1, %v5687_v32, 0.0 }
 0x2ef   :  { %745 = vadd.xlane.f32.xlu0 %v744_v48 }
 0x2f0   :  { %5175 = vpow2.f32 %v718_v47 }
 0x2f1   :  { %v5172_v50 = vpop.eup %5171 }
 0x2f2   :  { %v791_v52 = vmul.f32 %v5172_v50, %v5635_v57  ;;  %v653_v54 = vpop.xlane.xlu2 %652  ;;  %v5693_v56 = vpop.eup %5173 }
 0x2f3   :  { %v662_v51 = vpop.xlane.xlu0 %661  ;;  %v685_v58 = vsub.f32 %v5645_v62, %v653_v54  ;;  %v741_v57 = vsel %vm199_vm1, %v5693_v56, 0.0 }
 0x2f4   :  { %v688_v55 = vsub.f32 %v5643_v60, %v662_v51  ;;  %4911 = vmatmul.msk.f32.vlgmr.msrb.gmra.mxu1 %vm199_vm1, %v791_v52  ;;  %v722_v60 = vmul.f32 1.442695, %v692_v61 }
 0x2f5   :  { %v708_v63 = vmul.f32 1.442695, %v685_v58 }
 0x2f6   :  { %v5696_v53 = vpop.eup %5175  ;;  %v714_v59 = vmul.f32 1.442695, %v688_v55 }
 0x2f7   :  { %v762_v0 = vsel %vm199_vm1, %v5696_v53, 0.0  ;;  %742 = vadd.xlane.f32.xlu0 %v741_v57 }
 0x2f8   :  { %5177 = vpow2.f32 %v714_v59  ;;  %763 = vadd.xlane.f32.xlu1 %v762_v0 }
 0x2f9   :  { %5179 = vpow2.f32 %v708_v63 }
 0x2fa   :  { %5181 = vpow2.f32 %v722_v60 }
 0x2fb   :  { %v665_v62 = vpop.xlane.xlu0 %664 }
 0x2fc   :  { %v689_v1 = vsub.f32 %v5652_v3, %v665_v62 }
 0x2fe   :  { %v5705_v2 = vpop.eup %5177  ;;  %v716_v4 = vmul.f32 1.442695, %v689_v1 }
 0x2ff   :  { %v5707_v5 = vpop.eup %5179  ;;  %v756_v39 = vsel %vm199_vm1, %v5705_v2, 0.0 }
 0x300   :  { %5183 = vpow2.f32 %v716_v4  ;;  %v747_v6 = vsel %vm199_vm1, %v5707_v5, 0.0  ;;  %757 = vadd.xlane.f32.xlu0 %v756_v39  ;;  %v5713_v10 = vpop.eup %5181 }
 0x301   :  { %748 = vadd.xlane.f32.xlu2 %v747_v6  ;;  %v768_v12 = vsel %vm199_vm1, %v5713_v10, 0.0 }
 0x303   :  { %v734_v9 = vpop.xlane.xlu0 %733 }
 0x304   :  { %5185 = vrcp.f32 %v734_v9 }
 0x306   :  { %v5715_v3 = vpop.eup %5183 }
 0x307   :  { %v759_v11 = vsel %vm199_vm1, %v5715_v3, 0.0 }
 0x308   :  { %769 = vadd.xlane.f32.xlu0 %v768_v12 }
 0x309   :  { %760 = vadd.xlane.f32.xlu2 %v759_v11 }
 0x30a   :  { %v5186_v15 = vpop.eup %5185 }
 0x30b   :  { %v792_v16 = vmul.f32 %v5186_v15, %v5657_v8  ;;  %v740_v19 = vpop.xlane.xlu0 %739 }
 0x30c   :  { %5187 = vrcp.f32 %v740_v19 }
 0x30d   :  { %4912 = vmatmul.msk.f32.vlgmr.msra.gmra.mxu2 %vm199_vm1, %v792_v16 }
 0x30e   :  { %1054 = vmatpush.msra.mxu2 %v5093_v20 }
 0x30f   :  { %v752_v37 = vpop.xlane.xlu1 %751 }
 0x311   :  { %193 = vrot.lane.b32.xlu1 %v5536_v42, %s5401_s25 }
 0x312   :  { %v5188_v18 = vpop.eup %5187 }
 0x313   :  { %v794_v21 = vmul.f32 %v5188_v18, %v5662_v13  ;;  %v691_v13 = vsub.f32 %v5626_v49, %v5682_v28 }
 0x315   :  { %4914 = vmatmul.msk.f32.vlgmr.msra.gmra.mxu0 %vm199_vm1, %v794_v21  ;;  %v720_v29 = vmul.f32 1.442695, %v691_v13  ;;  %v37_v13 = vld [vmem:[%s7241_s1 + $0xf0] sm:$0xff] }
 0x317   :  { %v755_v24 = vpop.xlane.xlu2 %754 }
 0x31c   :  { %5096 = vrot.lane.b32.xlu0 %v5540_v43, %s5400_s24  ;;  %v693_v43 = vsub.f32 %v5620_v45, %v677_v7 }
 0x31e   :  { %v724_v31 = vmul.f32 1.442695, %v693_v43  ;;  %v35_v43 = vld [vmem:[%s7241_s1 + $0xd0] sm:$0xff] }
 0x31f   :  { %v737_v25 = vpop.xlane.xlu2 %736 }
 0x320   :  { %5189 = vrcp.f32 %v737_v25 }
 0x321   :  { %191 = vrot.lane.b32.xlu2 %v5534_v40, %s5401_s25  ;;  %5191 = vpow2.f32 %v720_v29  ;;  %v36_v29 = vld [vmem:[%s7241_s1 + $0xe0] sm:$0xff] }
 0x322   :  { %5193 = vpow2.f32 %v724_v31 }
 0x326   :  { %v5190_v8 = vpop.eup %5189 }
 0x327   :  { %v793_v22 = vmul.f32 %v5190_v8, %v5676_v26  ;;  %v5738_v30 = vpop.eup %5191 }
 0x328   :  { %v765_v26 = vsel %vm199_vm1, %v5738_v30, 0.0  ;;  %v5742_v33 = vpop.eup %5193 }
 0x329   :  { %185 = vrot.lane.b32.xlu2 %v5534_v40, %s5402_s26  ;;  %4913 = vmatmul.msk.f32.vlgmr.msra.gmra.mxu3 %vm199_vm1, %v793_v22  ;;  %v771_v40 = vsel %vm199_vm1, %v5742_v33, 0.0 }
 0x32a   :  { %1077 = vmatpush.msra.mxu3 %v5094_v27  ;;  %v38_v27 = vld [vmem:[%s7241_s1 + $0x100] sm:$0xff] }
 0x32d   :  { %v5760_v0 = vpop.f32.mrf.mxu0 }
 0x346   :  { %766 = vadd.xlane.f32.xlu0 %v765_v26  ;;  %v33_v26 = vld [vmem:[%s7241_s1 + $0xb0] sm:$0xff] }
 0x352   :  { %772 = vadd.xlane.f32.xlu2 %v771_v40  ;;  %v31_v40 = vld [vmem:[%s7241_s1 + $0x90] sm:$0xff] }
 0x362   :  { %v746_v34 = vpop.xlane.xlu0 %745 }
 0x363   :  { %5195 = vrcp.f32 %v746_v34 }
 0x369   :  { %v5196_v45 = vpop.eup %5195 }
 0x36a   :  { %187 = vrot.lane.b32.xlu2 %v5536_v42, %s5402_s26  ;;  %v796_v49 = vmul.f32 %v5196_v45, %v5687_v32  ;;  %v743_v28 = vpop.xlane.xlu0 %742 }
 0x36b   :  { %5197 = vrcp.f32 %v743_v28  ;;  %v764_v47 = vpop.xlane.xlu1 %763 }
 0x36c   :  { %4916 = vmatmul.msk.f32.vlgmr.msrb.gmra.mxu2 %vm199_vm1, %v796_v49 }
 0x371   :  { %v5198_v36 = vpop.eup %5197 }
 0x372   :  { %v795_v38 = vmul.f32 %v5198_v36, %v5693_v56 }
 0x373   :  { %v758_v44 = vpop.xlane.xlu0 %757 }
 0x374   :  { %v749_v41 = vpop.xlane.xlu2 %748  ;;  %4915 = vmatmul.msk.f32.vlgmr.msra.gmra.mxu1 %vm199_vm1, %v795_v38 }
 0x375   :  { %5199 = vrcp.f32 %v749_v41 }
 0x376   :  { %5201 = vrcp.f32 %v758_v44 }
 0x37b   :  { %v5200_v46 = vpop.eup %5199  ;;  %v770_v50 = vpop.xlane.xlu0 %769 }
 0x37c   :  { %v5202_v42 = vpop.eup %5201  ;;  %v797_v48 = vmul.f32 %v5200_v46, %v5707_v5  ;;  %v761_v32 = vpop.xlane.xlu2 %760 }
 0x37d   :  { %v800_v51 = vmul.f32 %v5202_v42, %v5705_v2  ;;  %5203 = vrcp.f32 %v761_v32 }
 0x37e   :  { %5205 = vrcp.f32 %v770_v50  ;;  %4917 = vmatmul.msk.f32.vlgmr.msrb.gmra.mxu3 %vm199_vm1, %v797_v48 }
 0x37f   :  { %4920 = vmatmul.msk.f32.vlgmr.msra.gmra.mxu2 %vm199_vm1, %v800_v51  ;;  %5207 = vrcp.f32 %v752_v37 }
 0x380   :  { %5209 = vrcp.f32 %v755_v24 }
 0x381   :  { %5211 = vrcp.f32 %v764_v47 }
 0x383   :  { %v5204_v35 = vpop.eup %5203  ;;  %v194_v52 = vpop.permute.xlu1 %193 }
 0x384   :  { %v5206_v54 = vpop.eup %5205  ;;  %v801_v55 = vmul.f32 %v5204_v35, %v5715_v3  ;;  %v192_v56 = vpop.permute.xlu2 %191  ;;  %1169 = vmatpush.msrb.mxu3 %v194_v52 }
 0x385   :  { %v804_v58 = vmul.f32 %v5206_v54, %v5713_v10  ;;  %1146 = vmatpush.msrb.mxu2 %v192_v56  ;;  %v5208_v59 = vpop.eup %5207 }
 0x386   :  { %4921 = vmatmul.msk.f32.vlgmr.msra.gmra.mxu3 %vm199_vm1, %v801_v55  ;;  %v5210_v61 = vpop.eup %5209  ;;  %v798_v1 = vmul.f32 %v5208_v59, %v5667_v17 }
 0x387   :  { %4924 = vmatmul.msk.f32.vlgmr.msrb.gmra.mxu2 %vm199_vm1, %v804_v58  ;;  %v799_v2 = vmul.f32 %v5210_v61, %v5672_v23  ;;  %v5212_v5 = vpop.eup %5211 }
 0x388   :  { %v802_v6 = vmul.f32 %v5212_v5, %v5696_v53  ;;  %v5775_v53 = vpop.f32.mrf.mxu1 }
 0x38c   :  { %v186_v4 = vpop.permute.xlu2 %185 }
 0x38e   :  { %v5097_v63 = vpop.permute.xlu0 %5096 }
 0x38f   :  { %v5099_v57 = vunpack.i.h.bf16 %v5097_v63  ;;  %v5098_v60 = vunpack.i.l.bf16 %v5097_v63 }
 0x390   :  { %v872_v62 = vpop.f32.mrf.mxu2 }
 0x391   :  { %1176 = vrot.lane.b32.xlu2 %v872_v62, %s5403_s27  ;;  %1008 = vmatpush.msrb.mxu0 %v5098_v60  ;;  %v5833_v60 = vld [vmem:[%s7241_s1 + $0x110] sm:$0x3f] }
 0x392   :  { %1031 = vmatpush.msrb.mxu1 %v5099_v57  ;;  %4918 = vmatmul.msk.f32.vlgmr.msrb.gmra.mxu0 %vm199_vm1, %v798_v1  ;;  %v918_v39 = vpop.f32.mrf.mxu0  ;;  %v1250_v62 = vperm.slane %v5833_v60, 0 }
 0x393   :  { %4919 = vmatmul.msk.f32.vlgmr.msrb.gmra.mxu1 %vm199_vm1, %v799_v2  ;;  %1100 = vmatpush.msra.mxu0 %v186_v4  ;;  %v5393_v4 = vld [vmem:[%s7242_s0] sm:$0xff] }
 0x395   :  { %1265 = vmatpush.msrb.mxu0 %v38_v27 }
 0x397   :  { %1266 = vmatpush.msrb.mxu0 %v37_v13  ;;  %v47_v13 = vld [vmem:[%s7241_s1 + $0x190] sm:$0xff] }
 0x399   :  { %1184 = vrot.lane.b32.xlu2 %v918_v39, %s5404_s28  ;;  %1267 = vmatpush.msrb.mxu0 %v36_v29  ;;  %v46_v29 = vld [vmem:[%s7241_s1 + $0x180] sm:$0xff] }
 0x39a   :  { %4922 = vmatmul.msk.f32.vlgmr.msra.gmra.mxu0 %vm199_vm1, %v802_v6 }
 0x39b   :  { %1268 = vmatpush.msrb.mxu0 %v35_v43  ;;  %v45_v43 = vld [vmem:[%s7241_s1 + $0x170] sm:$0xff] }
 0x3ac   :  { %v895_v17 = vpop.f32.mrf.mxu3 }
 0x3ad   :  { %1178 = vrot.lane.b32.xlu1 %v895_v17, %s5403_s27 }
 0x3b9   :  { %v767_v23 = vpop.xlane.xlu0 %766 }
 0x3ba   :  { %5213 = vrcp.f32 %v767_v23  ;;  %v5394_v23 = vld [vmem:[%s7242_s0 + $0x8] sm:$0xff] }
 0x3c0   :  { %v5214_v9 = vpop.eup %5213 }
 0x3c1   :  { %v803_v3 = vmul.f32 %v5214_v9, %v5738_v30  ;;  %v34_v30 = vld [vmem:[%s7241_s1 + $0xc0] sm:$0xff] }
 0x3c2   :  { %1269 = vmatpush.msrb.mxu0 %v34_v30  ;;  %v44_v30 = vld [vmem:[%s7241_s1 + $0x160] sm:$0xff] }
 0x3c4   :  { %1270 = vmatpush.msrb.mxu0 %v33_v26  ;;  %v42_v26 = vld [vmem:[%s7241_s1 + $0x140] sm:$0xff] }
 0x3c5   :  { %v773_v7 = vpop.xlane.xlu2 %772 }
 0x3c6   :  { %5215 = vrcp.f32 %v773_v7 }
 0x3cc   :  { %v5216_v10 = vpop.eup %5215 }
 0x3cd   :  { %v805_v11 = vmul.f32 %v5216_v10, %v5742_v33  ;;  %v188_v12 = vpop.permute.xlu2 %187  ;;  %v32_v33 = vld [vmem:[%s7241_s1 + $0xa0] sm:$0xff]  ;;  %v5410_v10 = vmov 64.0  }
 0x3ce   :  { %1123 = vmatpush.msra.mxu1 %v188_v12  ;;  %1271 = vmatpush.msrb.mxu0 %v32_v33  ;;  %5217 = vrcp.f32 %v5410_v10  ;;  %v41_v33 = vld [vmem:[%s7241_s1 + $0x130] sm:$0xff] }
 0x3cf   :  { %4923 = vmatmul.msk.f32.vlgmr.msra.gmra.mxu1 %vm199_vm1, %v803_v3  ;;  %4925 = vmatmul.msk.f32.vlgmr.msrb.gmra.mxu3 %vm199_vm1, %v805_v11 }
 0x3d0   :  { %1272 = vmatpush.msrb.mxu0 %v31_v40  ;;  %1353 = vmatpush.msrb.mxu1 %v47_v13  ;;  %v40_v40 = vld [vmem:[%s7241_s1 + $0x120] sm:$0xff] }
 0x3d2   :  { %1354 = vmatpush.msrb.mxu1 %v46_v29 }
 0x3d4   :  { %v5218_v3 = vpop.eup %5217  ;;  %1355 = vmatpush.msrb.mxu1 %v45_v43 }
 0x3d5   :  { %v1289_v11 = vmul.f32 64.0, %v5218_v3  ;;  %vm1293_vm8 = vweird.f32 %v5218_v3 }
 0x3d6   :  { %1356 = vmatpush.msrb.mxu1 %v44_v30 }
 0x3d7   :  { %v1290_v12 = vsub.f32 1.0, %v1289_v11 }
 0x3eb   :  { %v1177_v31 = vpop.permute.xlu2 %1176 }
 0x3ec   :  { %v1230_v38 = vsel %vm199_vm1, %v5760_v0, %v1177_v31  ;;  %v43_v31 = vld [vmem:[%s7241_s1 + $0x150] sm:$0xff] }
 0x3ed   :  { %1357 = vmatpush.msrb.mxu1 %v43_v31 }
 0x3ef   :  { %v964_v14 = vpop.f32.mrf.mxu2  ;;  %1358 = vmatpush.msrb.mxu1 %v42_v26 }
 0x3f0   :  { %1192 = vrot.lane.b32.xlu0 %v964_v14, %s5405_s29 }
 0x3f1   :  { %v941_v15 = vpop.f32.mrf.mxu1  ;;  %1359 = vmatpush.msrb.mxu1 %v41_v33 }
 0x3f3   :  { %v1185_v34 = vpop.permute.xlu2 %1184  ;;  %1360 = vmatpush.msrb.mxu1 %v40_v40 }
 0x3f4   :  { %v1233_v41 = vsel %vm1232_vm2, %v1230_v38, %v1185_v34 }
 0x3f8   :  { %1186 = vrot.lane.b32.xlu0 %v941_v15, %s5404_s28 }
 0x401   :  { %v987_v16 = vpop.f32.mrf.mxu3 }
 0x402   :  { %v1056_v19 = vpop.f32.mrf.mxu2 }
 0x403   :  { %1208 = vrot.lane.b32.xlu2 %v1056_v19, %s5406_s30 }
 0x409   :  { %v1079_v20 = vpop.f32.mrf.mxu3 }
 0x40a   :  { %1210 = vrot.lane.b32.xlu0 %v1079_v20, %s5406_s30  ;;  %v1148_v21 = vpop.f32.mrf.mxu2 }
 0x40b   :  { %1194 = vrot.lane.b32.xlu2 %v987_v16, %s5405_s29 }
 0x40f   :  { %v1010_v18 = vpop.f32.mrf.mxu0 }
 0x410   :  { %1200 = vrot.lane.b32.xlu1 %v1010_v18, %s5407_s3  ;;  %v1033_v25 = vpop.f32.mrf.mxu1 }
 0x413   :  { %1224 = vrot.lane.b32.xlu2 %v1148_v21, %s5408_s4 }
 0x417   :  { %v1102_v24 = vpop.f32.mrf.mxu0 }
 0x418   :  { %1216 = vrot.lane.b32.xlu1 %v1102_v24, %s5409_s7 }
 0x41f   :  { %v1179_v49 = vpop.permute.xlu1 %1178 }
 0x420   :  { %1202 = vrot.lane.b32.xlu1 %v1033_v25, %s5407_s3  ;;  %v1231_v35 = vsel %vm199_vm1, %v5775_v53, %v1179_v49  ;;  %v1291_v53 = vmul.f32 %v5218_v3, %v1290_v12  ;;  %v51_v12 = vld [vmem:[%s7241_s1 + $0x1d0] sm:$0xff] }
 0x422   :  { %v1292_v14 = vadd.f32 %v5218_v3, %v1291_v53  ;;  %v50_v53 = vld [vmem:[%s7241_s1 + $0x1c0] sm:$0xff] }
 0x424   :  { %v5844_v15 = vsel %vm1293_vm8, %v5218_v3, %v1292_v14  ;;  %v49_v14 = vld [vmem:[%s7241_s1 + $0x1b0] sm:$0xff] }
 0x44c   :  { %v1125_v8 = vpop.f32.mrf.mxu1 }
 0x44d   :  { %1218 = vrot.lane.b32.xlu2 %v1125_v8, %s5409_s7 }
 0x452   :  { %v1171_v22 = vpop.f32.mrf.mxu3 }
 0x453   :  { %1226 = vrot.lane.b32.xlu1 %v1171_v22, %s5408_s4 }
 0x45d   :  { %v1209_v45 = vpop.permute.xlu2 %1208 }
 0x462   :  { %v1193_v37 = vpop.permute.xlu0 %1192 }
 0x463   :  { %v1236_v44 = vsel %vm1235_vm3, %v1233_v41, %v1193_v37 }
 0x465   :  { %v1195_v28 = vpop.permute.xlu2 %1194 }
 0x46a   :  { %v1187_v51 = vpop.permute.xlu0 %1186 }
 0x46b   :  { %v1234_v52 = vsel %vm1232_vm2, %v1231_v35, %v1187_v51  ;;  %v64_v51 = vld [vmem:[%s7241_s1 + $0x2a0] sm:$0xff]  ;;  %v63_v35 = vld [vmem:[%s7241_s1 + $0x290] sm:$0xff] }
 0x46c   :  { %v1237_v55 = vsel %vm1235_vm3, %v1234_v52, %v1195_v28  ;;  %1371 = vmatpush.msra.mxu2 %v64_v51  ;;  %v62_v52 = vld [vmem:[%s7241_s1 + $0x280] sm:$0xff]  ;;  %v1455_v51 = vld [vmem:[%s7241_s1 + $0x2f8] sm:$0xff] }
 0x46d   :  { %v1225_v48 = vpop.permute.xlu2 %1224 }
 0x46e   :  { %1372 = vmatpush.msra.mxu2 %v63_v35  ;;  %v1452_v35 = vld [vmem:[%s7241_s1 + $0x2e0] sm:$0xff] }
 0x470   :  { %1373 = vmatpush.msra.mxu2 %v62_v52  ;;  %v1453_v52 = vld [vmem:[%s7241_s1 + $0x2e8] sm:$0xff] }
 0x47c   :  { %v1211_v59 = vpop.permute.xlu0 %1210 }
 0x482   :  { %v1201_v36 = vpop.permute.xlu1 %1200 }
 0x483   :  { %v1239_v46 = vsel %vm1238_vm4, %v1236_v44, %v1201_v36 }
 0x484   :  { %v1242_v47 = vsel %vm1241_vm5, %v1239_v46, %v1209_v45  ;;  %v1333_v46 = vperm.slane %v5833_v60, 1 }
 0x48a   :  { %v1217_v42 = vpop.permute.xlu1 %1216 }
 0x48b   :  { %v1245_v32 = vsel %vm1244_vm6, %v1242_v47, %v1217_v42 }
 0x48c   :  { %v1248_v50 = vsel %vm1247_vm7, %v1245_v32, %v1225_v48  ;;  %v1336_v48 = vperm.slane %v5833_v60, 2 }
 0x48d   :  { %4926 = vmatmul.msk.f32.vlgmr.msrb.gmra.mxu0 %vm70_vm0, %v1248_v50 }
 0x492   :  { %v1203_v54 = vpop.permute.xlu1 %1202 }
 0x493   :  { %v1240_v56 = vsel %vm1238_vm4, %v1237_v55, %v1203_v54 }
 0x494   :  { %v1243_v61 = vsel %vm1241_vm5, %v1240_v56, %v1211_v59  ;;  %v61_v56 = vld [vmem:[%s7241_s1 + $0x270] sm:$0xff]  ;;  %v60_v59 = vld [vmem:[%s7241_s1 + $0x260] sm:$0xff] }
 0x495   :  { %1374 = vmatpush.msra.mxu2 %v61_v56  ;;  %v1448_v56 = vld [vmem:[%s7241_s1 + $0x2c0] sm:$0xff] }
 0x497   :  { %1375 = vmatpush.msra.mxu2 %v60_v59  ;;  %v1446_v59 = vld [vmem:[%s7241_s1 + $0x2b0] sm:$0xff] }
 0x4a7   :  { %v1219_v58 = vpop.permute.xlu2 %1218 }
 0x4a8   :  { %v1246_v63 = vsel %vm1244_vm6, %v1243_v61, %v1219_v58  ;;  %v59_v61 = vld [vmem:[%s7241_s1 + $0x250] sm:$0xff] }
 0x4a9   :  { %1376 = vmatpush.msra.mxu2 %v59_v61  ;;  %v1447_v61 = vld [vmem:[%s7241_s1 + $0x2b8] sm:$0xff] }
 0x4c5   :  { %v1227_v0 = vpop.permute.xlu1 %1226 }
 0x4c6   :  { %v1249_v57 = vsel %vm1247_vm7, %v1246_v63, %v1227_v0  ;;  %v58_v63 = vld [vmem:[%s7241_s1 + $0x240] sm:$0xff]  ;;  %v57_v0 = vld [vmem:[%s7241_s1 + $0x230] sm:$0xff] }
 0x4c7   :  { %4927 = vmatmul.msk.f32.gmra.mxu0 %vm70_vm0, %v1249_v57  ;;  %1377 = vmatpush.msra.mxu2 %v58_v63 }
 0x4c9   :  { %1378 = vmatpush.msra.mxu2 %v57_v0 }
 0x50a   :  { %v1274_v1 = vpop.f32.mrf.mxu0 }
 0x50b   :  { %v1275_v2 = vadd.f32 %v1274_v1, %v1250_v62 }
 0x50d   :  { %v1280_v5 = vadd.f32 %v5393_v4, %v1275_v2  ;;  %v55_v2 = vld [vmem:[%s7241_s1 + $0x210] sm:$0xff] }
 0x50f   :  { %v1282_v39 = vsel %vm70_vm0, %v1280_v5, 0.0 }
 0x510   :  { %1283 = vadd.xlane.f32.xlu0 %v1282_v39 }
 0x544   :  { %v1277_v6 = vpop.f32.mrf.mxu0 }
 0x545   :  { %v1278_v17 = vadd.f32 %v1277_v6, %v1250_v62  ;;  %v56_v62 = vld [vmem:[%s7241_s1 + $0x220] sm:$0xff]  ;;  %v53_v6 = vld [vmem:[%s7241_s1 + $0x1f0] sm:$0xff] }
 0x546   :  { %1379 = vmatpush.msra.mxu2 %v56_v62 }
 0x547   :  { %v1281_v7 = vadd.f32 %v5394_v23, %v1278_v17  ;;  %v52_v23 = vld [vmem:[%s7241_s1 + $0x1e0] sm:$0xff] }
 0x548   :  { %1380 = vmatpush.msra.mxu2 %v55_v2 }
 0x549   :  { %v1285_v9 = vsel %vm70_vm0, %v1281_v7, 0.0 }
 0x54a   :  { %1286 = vadd.xlane.f32.xlu2 %v1285_v9 }
 0x583   :  { %v1284_v16 = vpop.xlane.xlu0 %1283 }
 0x584   :  { %v1295_v19 = vmul.f32 %v5844_v15, %v1284_v16  ;;  %v48_v16 = vld [vmem:[%s7241_s1 + $0x1a0] ss:$0 sm:$0xff] }
 0x586   :  { %v1297_v20 = vsub.f32 %v1280_v5, %v1295_v19  ;;  %v54_v5 = vld [vmem:[%s7241_s1 + $0x200] sm:$0xff] }
 0x587   :  { %1381 = vmatpush.msra.mxu2 %v54_v5 }
 0x588   :  { %v1299_v18 = vmul.f32 %v1297_v20, %v1297_v20 }
 0x589   :  { %1382 = vmatpush.msra.mxu2 %v53_v6  ;;  %v1440_v6 = vperm.slane %v5833_v60, 4 }
 0x58a   :  { %v1301_v21 = vsel %vm70_vm0, %v1299_v18, 0.0 }
 0x58b   :  { %1302 = vadd.xlane.f32.xlu1 %v1301_v21  ;;  %1383 = vmatpush.msra.mxu2 %v52_v23 }
 0x58d   :  { %1384 = vmatpush.msra.mxu2 %v51_v12 }
 0x58f   :  { %1385 = vmatpush.msra.mxu2 %v50_v53 }
 0x591   :  { %1386 = vmatpush.msra.mxu2 %v49_v14 }
 0x5bd   :  { %v1287_v24 = vpop.xlane.xlu2 %1286 }
 0x5be   :  { %v1296_v25 = vmul.f32 %v5844_v15, %v1287_v24 }
 0x5c0   :  { %v5849_v8 = vsub.f32 %v1281_v7, %v1296_v25 }
 0x5c2   :  { %v1300_v22 = vmul.f32 %v5849_v8, %v5849_v8 }
 0x5c4   :  { %v1304_v27 = vsel %vm70_vm0, %v1300_v22, 0.0 }
 0x5c5   :  { %1305 = vadd.xlane.f32.xlu2 %v1304_v27 }
 0x5fe   :  { %v1303_v34 = vpop.xlane.xlu1 %1302 }
 0x5ff   :  { %v1307_v45 = vmul.f32 %v1303_v34, %v5844_v15 }
 0x601   :  { %v1309_v49 = vadd.f32 1e-05, %v1307_v45 }
 0x603   :  { %5219 = vrsqrt.f32 %v1309_v49  ;;  %vm1317_vm10 = vweird.f32 %v1309_v49 }
 0x609   :  { %v5220_v28 = vpop.eup %5219 }
 0x60a   :  { %v1312_v36 = vmul.f32 %v5220_v28, %v1309_v49  ;;  %vm1318_vm9 = vweird.f32 %v5220_v28 }
 0x60b   :  { %vm1319_vm11 = vmor %vm1317_vm10, %vm1318_vm9 }
 0x60c   :  { %v1313_v37 = vmul.f32 %v5220_v28, %v1312_v36 }
 0x60e   :  { %v1314_v38 = vmul.f32 0.5, %v1313_v37 }
 0x610   :  { %v1315_v41 = vsub.f32 1.5, %v1314_v38 }
 0x612   :  { %v1316_v44 = vmul.f32 %v5220_v28, %v1315_v41 }
 0x614   :  { %v1320_v47 = vsel %vm1319_vm11, %v5220_v28, %v1316_v44  ;;  %v1460_v44 = vld [vmem:[%s7241_s1 + $0x320] sm:$0xff] }
 0x615   :  { %v1331_v42 = vmul.f32 %v1320_v47, %v1297_v20  ;;  %1517 = vmatpush.msra.mxu3 %v1460_v44  ;;  %v1458_v47 = vld [vmem:[%s7241_s1 + $0x310] sm:$0xff] }
 0x617   :  { %v1334_v32 = vmul.f32 %v1333_v46, %v1331_v42  ;;  %v1459_v42 = vld [vmem:[%s7241_s1 + $0x318] sm:$0xff]  ;;  %1518 = vmatpush.msra.mxu3 %v1458_v47 }
 0x619   :  { %v5881_v50 = vadd.f32 %v1336_v48, %v1334_v32  ;;  %v1457_v32 = vld [vmem:[%s7241_s1 + $0x308] sm:$0xff] }
 0x61b   :  { %4928 = vmatmul.msk.f32.vlgmr.msrb.gmra.mxu1 %vm70_vm0, %v5881_v50 }
 0x638   :  { %v1306_v54 = vpop.xlane.xlu2 %1305 }
 0x639   :  { %v1308_v55 = vmul.f32 %v1306_v54, %v5844_v15  ;;  %v1450_v54 = vld [vmem:[%s7241_s1 + $0x2d0] sm:$0xff] }
 0x63b   :  { %v1310_v58 = vadd.f32 1e-05, %v1308_v55  ;;  %v1451_v55 = vld [vmem:[%s7241_s1 + $0x2d8] sm:$0xff] }
 0x63d   :  { %5221 = vrsqrt.f32 %v1310_v58  ;;  %vm1327_vm13 = vweird.f32 %v1310_v58 }
 0x643   :  { %v5222_v57 = vpop.eup %5221 }
 0x644   :  { %v1322_v1 = vmul.f32 %v5222_v57, %v1310_v58  ;;  %vm1328_vm12 = vweird.f32 %v5222_v57  ;;  %v1449_v58 = vld [vmem:[%s7241_s1 + $0x2c8] sm:$0xff] }
 0x645   :  { %vm1329_vm14 = vmor %vm1327_vm13, %vm1328_vm12 }
 0x646   :  { %v1323_v4 = vmul.f32 %v5222_v57, %v1322_v1 }
 0x648   :  { %v1324_v39 = vmul.f32 0.5, %v1323_v4 }
 0x64a   :  { %v1325_v17 = vsub.f32 1.5, %v1324_v39 }
 0x64c   :  { %v1326_v7 = vmul.f32 %v5222_v57, %v1325_v17 }
 0x64e   :  { %v1330_v9 = vsel %vm1329_vm14, %v5222_v57, %v1326_v7  ;;  %v1443_v7 = vperm.slane %v5833_v60, 5 }
 0x64f   :  { %v1332_v10 = vmul.f32 %v1330_v9, %v5849_v8  ;;  %v1370_v8 = vperm.slane %v5833_v60, 3 }
 0x651   :  { %v1335_v3 = vmul.f32 %v1333_v46, %v1332_v10  ;;  %v1461_v46 = vld [vmem:[%s7241_s1 + $0x328] sm:$0xff] }
 0x652   :  { %1540 = vmatpush.msra.mxu0 %v1461_v46 }
 0x653   :  { %v1338_v11 = vadd.f32 %v1336_v48, %v1335_v3  ;;  %v1456_v48 = vld [vmem:[%s7241_s1 + $0x300] sm:$0xff] }
 0x654   :  { %1541 = vmatpush.msra.mxu0 %v1459_v42  ;;  %1519 = vmatpush.msra.mxu3 %v1456_v48 }
 0x655   :  { %4929 = vmatmul.msk.f32.gmra.mxu1 %vm70_vm0, %v1338_v11 }
 0x656   :  { %1542 = vmatpush.msra.mxu0 %v1457_v32 }
 0x658   :  { %1543 = vmatpush.msra.mxu0 %v1455_v51 }
 0x65a   :  { %1544 = vmatpush.msra.mxu0 %v1453_v52 }
 0x65c   :  { %1545 = vmatpush.msra.mxu0 %v1451_v55 }
 0x65e   :  { %1546 = vmatpush.msra.mxu0 %v1449_v58 }
 0x660   :  { %1547 = vmatpush.msra.mxu0 %v1447_v61 }
 0x698   :  { %v1362_v19 = vpop.f32.mrf.mxu1 }
 0x699   :  { %v1363_v20 = vadd.f32 %v1362_v19, %v48_v16 }
 0x69b   :  { %v1368_v18 = vmax.f32 %v1363_v20, 0.0 }
 0x69d   :  { %1387 = vmatmul.f32.vlgmr.msra.gmra.mxu2 %v1368_v18 }
 0x6d2   :  { %v1365_v21 = vpop.f32.mrf.mxu1 }
 0x6d3   :  { %v1366_v24 = vadd.f32 %v1365_v21, %v48_v16 }
 0x6d5   :  { %v1369_v25 = vmax.f32 %v1366_v24, 0.0 }
 0x6d7   :  { %1390 = vmatmul.f32.gmra.mxu2 %v1369_v25 }
 0x720   :  { %v1388_v22 = vpop.f32.mrf.mxu2 }
 0x721   :  { %v1389_v27 = vadd.f32 %v1388_v22, %v1370_v8 }
 0x723   :  { %v1394_v13 = vadd.f32 %v1389_v27, %v5881_v50  ;;  %v1454_v50 = vld [vmem:[%s7241_s1 + $0x2f0] sm:$0xff] }
 0x724   :  { %1520 = vmatpush.msra.mxu3 %v1454_v50 }
 0x725   :  { %v1396_v29 = vsel %vm70_vm0, %v1394_v13, 0.0 }
 0x726   :  { %1397 = vadd.xlane.f32.xlu0 %v1396_v29  ;;  %1521 = vmatpush.msra.mxu3 %v1452_v35 }
 0x728   :  { %1522 = vmatpush.msra.mxu3 %v1450_v54 }
 0x72a   :  { %1523 = vmatpush.msra.mxu3 %v1448_v56 }
 0x72c   :  { %1524 = vmatpush.msra.mxu3 %v1446_v59 }
 0x75a   :  { %v1391_v43 = vpop.f32.mrf.mxu2 }
 0x75b   :  { %v1392_v30 = vadd.f32 %v1391_v43, %v1370_v8  ;;  %v4930_v8 = vld [vmem:[%s7241_s1 + $0x330] ss:$8 sm:$0x3] }
 0x75c   :  { %v1499_v22 = vperm.slane %v4930_v8, 0  ;;  %v1500_v46 = vperm.slane %v4930_v8, 1 }
 0x75d   :  { %v1395_v31 = vadd.f32 %v1392_v30, %v1338_v11 }
 0x75f   :  { %v1399_v26 = vsel %vm70_vm0, %v1395_v31, 0.0 }
 0x760   :  { %1400 = vadd.xlane.f32.xlu1 %v1399_v26 }
 0x799   :  { %v1398_v33 = vpop.xlane.xlu0 %1397 }
 0x79a   :  { %v1402_v40 = vmul.f32 %v1398_v33, %v5844_v15 }
 0x79c   :  { %v1404_v34 = vsub.f32 %v1394_v13, %v1402_v40 }
 0x79e   :  { %v1406_v45 = vmul.f32 %v1404_v34, %v1404_v34 }
 0x7a0   :  { %v1408_v49 = vsel %vm70_vm0, %v1406_v45, 0.0 }
 0x7a1   :  { %1409 = vadd.xlane.f32.xlu2 %v1408_v49 }
 0x7d3   :  { %v1401_v28 = vpop.xlane.xlu1 %1400 }
 0x7d4   :  { %v1403_v36 = vmul.f32 %v1401_v28, %v5844_v15 }
 0x7d6   :  { %v5946_v37 = vsub.f32 %v1395_v31, %v1403_v36 }
 0x7d8   :  { %v1407_v38 = vmul.f32 %v5946_v37, %v5946_v37 }
 0x7da   :  { %v1411_v41 = vsel %vm70_vm0, %v1407_v38, 0.0 }
 0x7db   :  { %1412 = vadd.xlane.f32.xlu0 %v1411_v41 }
 0x814   :  { %v1410_v63 = vpop.xlane.xlu2 %1409 }
 0x815   :  { %v1414_v0 = vmul.f32 %v1410_v63, %v5844_v15 }
 0x817   :  { %v1416_v57 = vadd.f32 1e-05, %v1414_v0 }
 0x819   :  { %5223 = vrsqrt.f32 %v1416_v57  ;;  %vm1424_vm8 = vweird.f32 %v1416_v57 }
 0x81f   :  { %v5224_v62 = vpop.eup %5223 }
 0x820   :  { %v1419_v1 = vmul.f32 %v5224_v62, %v1416_v57  ;;  %vm1425_vm15 = vweird.f32 %v5224_v62 }
 0x821   :  { %vm1426_vm9 = vmor %vm1424_vm8, %vm1425_vm15 }
 0x822   :  { %v1420_v2 = vmul.f32 %v5224_v62, %v1419_v1 }
 0x824   :  { %v1421_v4 = vmul.f32 0.5, %v1420_v2 }
 0x826   :  { %v1422_v5 = vsub.f32 1.5, %v1421_v4 }
 0x828   :  { %v1423_v39 = vmul.f32 %v5224_v62, %v1422_v5 }
 0x82a   :  { %v1427_v17 = vsel %vm1426_vm9, %v5224_v62, %v1423_v39 }
 0x82b   :  { %v1438_v23 = vmul.f32 %v1427_v17, %v1404_v34 }
 0x82d   :  { %v1441_v9 = vmul.f32 %v1440_v6, %v1438_v23 }
 0x82f   :  { %v6002_v10 = vadd.f32 %v1443_v7, %v1441_v9 }
 0x831   :  { %4931 = vmatmul.msk.f32.vlgmr.msra.gmra.mxu3 %vm70_vm0, %v6002_v10  ;;  %4933 = vmatmul.msk.f32.vlgmr.msra.gmra.mxu0 %vm70_vm0, %v6002_v10 }
 0x84e   :  { %v1413_v3 = vpop.xlane.xlu0 %1412 }
 0x84f   :  { %v1415_v11 = vmul.f32 %v1413_v3, %v5844_v15 }
 0x851   :  { %v1417_v12 = vadd.f32 1e-05, %v1415_v11 }
 0x853   :  { %5225 = vrsqrt.f32 %v1417_v12  ;;  %vm1434_vm11 = vweird.f32 %v1417_v12 }
 0x859   :  { %v5226_v53 = vpop.eup %5225 }
 0x85a   :  { %v1429_v14 = vmul.f32 %v5226_v53, %v1417_v12  ;;  %vm1435_vm10 = vweird.f32 %v5226_v53 }
 0x85b   :  { %vm1436_vm12 = vmor %vm1434_vm11, %vm1435_vm10 }
 0x85c   :  { %v1430_v16 = vmul.f32 %v5226_v53, %v1429_v14 }
 0x85e   :  { %v1431_v19 = vmul.f32 0.5, %v1430_v16 }
 0x860   :  { %v1432_v20 = vsub.f32 1.5, %v1431_v19 }
 0x862   :  { %v1433_v60 = vmul.f32 %v5226_v53, %v1432_v20 }
 0x864   :  { %v1437_v18 = vsel %vm1436_vm12, %v5226_v53, %v1433_v60 }
 0x865   :  { %v1439_v21 = vmul.f32 %v1437_v18, %v5946_v37 }
 0x867   :  { %v1442_v24 = vmul.f32 %v1440_v6, %v1439_v21 }
 0x869   :  { %v6010_v25 = vadd.f32 %v1443_v7, %v1442_v24 }
 0x86b   :  { %4932 = vmatmul.msk.f32.gmra.mxu3 %vm70_vm0, %v6010_v25  ;;  %4934 = vmatmul.msk.f32.gmra.mxu0 %vm70_vm0, %v6010_v25 }
 0x8ae   :  { %v1549_v49 = vpop.f32.mrf.mxu0 }
 0x8af   :  { %v6058_v48 = vadd.f32 %v1549_v49, %v1500_v46 }
 0x8b4   :  { %v1526_v27 = vpop.f32.mrf.mxu3 }
 0x8b5   :  { %v1527_v13 = vadd.f32 %v1526_v27, %v1499_v22 }
 0x8b7   :  { %1565 = vrot.lane.b32.xlu0 %v1527_v13, %s5395_s5  ;;  %1557 = vrot.lane.b32.xlu1 %v1527_v13, %s5397_s11 }
 0x8bf   :  { %1569 = vrot.lane.b32.xlu0 %v1527_v13, %s5400_s24  ;;  %1561 = vrot.lane.b32.xlu1 %v1527_v13, %s5396_s6 }
 0x8e8   :  { %v1552_v38 = vpop.f32.mrf.mxu0 }
 0x8e9   :  { %v6056_v42 = vadd.f32 %v1552_v38, %v1500_v46 }
 0x8eb   :  { %v6063_v32 = vpack.i.bf16 %v6056_v42, %v6058_v48 }
 0x8ee   :  { %v1529_v29 = vpop.f32.mrf.mxu3 }
 0x8ef   :  { %v1530_v43 = vadd.f32 %v1529_v29, %v1499_v22 }
 0x8f1   :  { %1563 = vrot.lane.b32.xlu1 %v1530_v43, %s5396_s6  ;;  %1567 = vrot.lane.b32.xlu0 %v1530_v43, %s5395_s5 }
 0x8f2   :  { %1559 = vrot.lane.b32.xlu2 %v1530_v43, %s5397_s11 }
 0x8f9   :  { %1571 = vrot.lane.b32.xlu1 %v1530_v43, %s5400_s24  ;;  %1575 = vrot.lane.b32.xlu0 %v1530_v43, %s5398_s22 }
 0x8fa   :  { %1573 = vrot.lane.b32.xlu2 %v1527_v13, %s5398_s22 }
 0x901   :  { %1655 = vrot.lane.b32.xlu1 %v1530_v43, %s5399_s23  ;;  %1577 = vrot.lane.b32.xlu0 %v1527_v13, %s5402_s26 }
 0x902   :  { %1581 = vrot.lane.b32.xlu2 %v1527_v13, %s5401_s25 }
 0x909   :  { %1579 = vrot.lane.b32.xlu0 %v1530_v43, %s5402_s26 }
 0x90a   :  { %1583 = vrot.lane.b32.xlu2 %v1530_v43, %s5401_s25 }
 0x912   :  { %1629 = vrot.lane.b32.xlu2 %v1527_v13, %s5399_s23 }
 0x929   :  { %v1558_v30 = vpop.permute.xlu1 %1557  ;;  %v1566_v31 = vpop.permute.xlu0 %1565 }
 0x92a   :  { %1681 = vrot.lane.b32.xlu2 %v1558_v30, %s5399_s23  ;;  %1785 = vrot.lane.b32.xlu0 %v1566_v31, %s5399_s23 }
 0x931   :  { %v1562_v26 = vpop.permute.xlu1 %1561  ;;  %v1570_v34 = vpop.permute.xlu0 %1569 }
 0x932   :  { %1733 = vrot.lane.b32.xlu0 %v1562_v26, %s5399_s23 }
 0x94c   :  { %v1560_v33 = vpop.permute.xlu2 %1559 }
 0x94d   :  { %1707 = vrot.lane.b32.xlu1 %v1560_v33, %s5399_s23 }
 0x954   :  { %v1574_v40 = vpop.permute.xlu2 %1573 }
 0x955   :  { %1889 = vrot.lane.b32.xlu1 %v1574_v40, %s5399_s23 }
 0x95c   :  { %v1582_v45 = vpop.permute.xlu2 %1581 }
 0x95d   :  { %1993 = vrot.lane.b32.xlu1 %v1582_v45, %s5399_s23 }
 0x963   :  { %v6041_v28 = vpop.permute.xlu1 %1563  ;;  %v1568_v36 = vpop.permute.xlu0 %1567 }
 0x964   :  { %v6043_v37 = vpop.permute.xlu2 %1583  ;;  %1759 = vrot.lane.b32.xlu0 %v6041_v28, %s5399_s23  ;;  %1811 = vrot.lane.b32.xlu2 %v1568_v36, %s5399_s23 }
 0x965   :  { %2019 = vrot.lane.b32.xlu1 %v6043_v37, %s5399_s23 }
 0x96b   :  { %v6050_v41 = vpop.permute.xlu1 %1571  ;;  %v1576_v44 = vpop.permute.xlu0 %1575 }
 0x96c   :  { %v1630_v47 = vpop.permute.xlu2 %1629  ;;  %1863 = vrot.lane.b32.xlu0 %v6050_v41, %s5399_s23  ;;  %1915 = vrot.lane.b32.xlu2 %v1576_v44, %s5399_s23 }
 0x96d   :  { %4935 = vmatpush.xpose.msk.msra.mxu1 %vm199_vm1, %v1630_v47 }
 0x970   :  { %4936 = vmatmul.msk.f32.vlgmr.msra.gmra.mxu1 %vm199_vm1, %v1527_v13 }
 0x973   :  { %v1656_v50 = vpop.permute.xlu1 %1655  ;;  %v1578_v51 = vpop.permute.xlu0 %1577 }
 0x974   :  { %4937 = vmatpush.xpose.msk.msrb.mxu3 %vm199_vm1, %v1656_v50  ;;  %5106 = vrot.lane.b32.xlu0 %v6063_v32, %s5395_s5 }
 0x975   :  { %1837 = vrot.lane.b32.xlu2 %v1570_v34, %s5399_s23 }
 0x977   :  { %4938 = vmatmul.msk.f32.vlgmr.msrb.gmra.mxu3 %vm199_vm1, %v1530_v43 }
 0x97b   :  { %v1580_v35 = vpop.permute.xlu0 %1579 }
 0x97c   :  { %1967 = vrot.lane.b32.xlu1 %v1580_v35, %s5399_s23 }
 0x97d   :  { %1941 = vrot.lane.b32.xlu2 %v1578_v51, %s5399_s23 }
 0x984   :  { %5101 = vrot.lane.b32.xlu1 %v6063_v32, %s5397_s11  ;;  %v1682_v52 = vpop.permute.xlu2 %1681 }
 0x985   :  { %5111 = vrot.lane.b32.xlu2 %v6063_v32, %s5396_s6  ;;  %4939 = vmatpush.xpose.msk.msrb.mxu1 %vm199_vm1, %v1682_v52 }
 0x988   :  { %4940 = vmatmul.msk.f32.vlgmr.msrb.gmra.mxu1 %vm199_vm1, %v1558_v30 }
 0x98c   :  { %5116 = vrot.lane.b32.xlu1 %v6063_v32, %s5398_s22 }
 0x99c   :  { %v1786_v54 = vpop.permute.xlu0 %1785 }
 0x99d   :  { %4947 = vmatpush.xpose.msk.msrb.mxu2 %vm199_vm1, %v1786_v54 }
 0x9a0   :  { %4948 = vmatmul.msk.f32.vlgmr.msrb.gmra.mxu2 %vm199_vm1, %v1566_v31 }
 0x9a4   :  { %v1734_v55 = vpop.permute.xlu0 %1733 }
 0x9a5   :  { %4943 = vmatpush.xpose.msk.msrb.mxu0 %vm199_vm1, %v1734_v55 }
 0x9a8   :  { %4944 = vmatmul.msk.f32.vlgmr.msrb.gmra.mxu0 %vm199_vm1, %v1562_v26 }
 0x9be   :  { %v1812_v56 = vpop.permute.xlu2 %1811 }
 0x9bf   :  { %v1708_v58 = vpop.permute.xlu1 %1707 }
 0x9c0   :  { %4941 = vmatpush.xpose.msk.msra.mxu3 %vm199_vm1, %v1708_v58 }
 0x9c3   :  { %4942 = vmatmul.msk.f32.vlgmr.msra.gmra.mxu3 %vm199_vm1, %v1560_v33 }
 0x9c4   :  { %4949 = vmatpush.xpose.msk.msrb.mxu3 %vm199_vm1, %v1812_v56 }
 0x9c6   :  { %v1916_v59 = vpop.permute.xlu2 %1915 }
 0x9c7   :  { %v1890_v61 = vpop.permute.xlu1 %1889 }
 0x9c8   :  { %4957 = vmatpush.xpose.msk.msra.mxu3 %vm199_vm1, %v1916_v59  ;;  %4955 = vmatpush.xpose.msk.msra.mxu2 %vm199_vm1, %v1890_v61 }
 0x9cb   :  { %4950 = vmatmul.msk.f32.vlgmr.msrb.gmra.mxu3 %vm199_vm1, %v1568_v36  ;;  %4956 = vmatmul.msk.f32.vlgmr.msra.gmra.mxu2 %vm199_vm1, %v1574_v40 }
 0x9cf   :  { %v1994_v63 = vpop.permute.xlu1 %1993  ;;  %v1838_v0 = vpop.permute.xlu2 %1837 }
 0x9d0   :  { %4951 = vmatpush.xpose.msk.msra.mxu0 %vm199_vm1, %v1838_v0  ;;  %4963 = vmatpush.xpose.msk.msrb.mxu2 %vm199_vm1, %v1994_v63 }
 0x9d3   :  { %4952 = vmatmul.msk.f32.vlgmr.msra.gmra.mxu0 %vm199_vm1, %v1570_v34  ;;  %4958 = vmatmul.msk.f32.vlgmr.msra.gmra.mxu3 %vm199_vm1, %v1576_v44 }
 0x9d4   :  { %4964 = vmatmul.msk.f32.vlgmr.msrb.gmra.mxu2 %vm199_vm1, %v1582_v45 }
 0x9d6   :  { %v1760_v57 = vpop.permute.xlu0 %1759 }
 0x9d7   :  { %v2020_v62 = vpop.permute.xlu1 %2019  ;;  %v1942_v1 = vpop.permute.xlu2 %1941  ;;  %4945 = vmatpush.xpose.msk.msra.mxu1 %vm199_vm1, %v1760_v57 }
 0x9d8   :  { %4959 = vmatpush.xpose.msk.msrb.mxu0 %vm199_vm1, %v1942_v1  ;;  %4965 = vmatpush.xpose.msk.msrb.mxu3 %vm199_vm1, %v2020_v62 }
 0x9da   :  { %4946 = vmatmul.msk.f32.vlgmr.msra.gmra.mxu1 %vm199_vm1, %v6041_v28 }
 0x9db   :  { %4960 = vmatmul.msk.f32.vlgmr.msrb.gmra.mxu0 %vm199_vm1, %v1578_v51  ;;  %4966 = vmatmul.msk.f32.vlgmr.msrb.gmra.mxu3 %vm199_vm1, %v6043_v37 }
 0x9dc   :  { %2255 = vmatpush.msra.mxu0 %v6058_v48 }
 0x9de   :  { %v1864_v2 = vpop.permute.xlu0 %1863 }
 0x9df   :  { %v5112_v4 = vpop.permute.xlu2 %5111  ;;  %4953 = vmatpush.xpose.msk.msrb.mxu1 %vm199_vm1, %v1864_v2 }
 0x9e0   :  { %v5113_v5 = vunpack.i.l.bf16 %v5112_v4  ;;  %v5114_v7 = vunpack.i.h.bf16 %v5112_v4 }
 0x9e2   :  { %2347 = vmatpush.msrb.mxu0 %v5113_v5  ;;  %4954 = vmatmul.msk.f32.vlgmr.msrb.gmra.mxu1 %vm199_vm1, %v6050_v41 }
 0x9e6   :  { %v5107_v9 = vpop.permute.xlu0 %5106 }
 0x9e7   :  { %v5109_v53 = vunpack.i.h.bf16 %v5107_v9  ;;  %v5108_v14 = vunpack.i.l.bf16 %v5107_v9 }
 0x9ed   :  { %v1652_v39 = vpop.f32.mrf.mxu1 }
 0x9ee   :  { %v6108_v6 = vmul.f32 0.35355338, %v1652_v39  ;;  %v1968_v17 = vpop.permute.xlu1 %1967 }
 0x9ef   :  { %4961 = vmatpush.xpose.msk.msra.mxu1 %vm199_vm1, %v1968_v17 }
 0x9f0   :  { %v2061_v23 = vsel %vm199_vm1, %v6108_v6, -inf }
 0x9f1   :  { %2062 = vmax.xlane.f32.xlu2 %v2061_v23 }
 0x9f2   :  { %4962 = vmatmul.msk.f32.vlgmr.msra.gmra.mxu1 %vm199_vm1, %v1580_v35 }
 0x9f3   :  { %2278 = vmatpush.msrb.mxu1 %v6056_v42 }
 0x9f5   :  { %2370 = vmatpush.msra.mxu1 %v5114_v7 }
 0x9f6   :  { %v5102_v3 = vpop.permute.xlu1 %5101 }
 0x9f7   :  { %v5104_v11 = vunpack.i.h.bf16 %v5102_v3  ;;  %v5103_v12 = vunpack.i.l.bf16 %v5102_v3 }
 0x9f9   :  { %2301 = vmatpush.msra.mxu2 %v5103_v12  ;;  %2324 = vmatpush.msra.mxu3 %v5104_v11 }
 0x9fa   :  { %v1678_v16 = vpop.f32.mrf.mxu3 }
 0x9fb   :  { %2393 = vmatpush.msrb.mxu2 %v5108_v14  ;;  %2416 = vmatpush.msrb.mxu3 %v5109_v53  ;;  %v2046_v19 = vmul.f32 0.35355338, %v1678_v16 }
 0x9fd   :  { %v2064_v20 = vsel %vm199_vm1, %v2046_v19, -inf }
 0x9fe   :  { %2065 = vmax.xlane.f32.xlu2 %v2064_v20  ;;  %v6188_v20 = vpop.permute.xlu1 %5116 }
 0xa05   :  { %v1704_v60 = vpop.f32.mrf.mxu1 }
 0xa06   :  { %v6116_v18 = vmul.f32 0.35355338, %v1704_v60 }
 0xa08   :  { %v2067_v21 = vsel %vm199_vm1, %v6116_v18, -inf }
 0xa09   :  { %2068 = vmax.xlane.f32.xlu0 %v2067_v21 }
 0xa23   :  { %v1808_v24 = vpop.f32.mrf.mxu2 }
 0xa24   :  { %v6120_v8 = vmul.f32 0.35355338, %v1808_v24 }
 0xa25   :  { %v1756_v22 = vpop.f32.mrf.mxu0 }
 0xa26   :  { %v6122_v27 = vmul.f32 0.35355338, %v1756_v22  ;;  %v2079_v13 = vsel %vm199_vm1, %v6120_v8, -inf }
 0xa27   :  { %2080 = vmax.xlane.f32.xlu0 %v2079_v13 }
 0xa28   :  { %v2073_v29 = vsel %vm199_vm1, %v6122_v27, -inf }
 0xa29   :  { %2074 = vmax.xlane.f32.xlu1 %v2073_v29 }
 0xa46   :  { %v1730_v43 = vpop.f32.mrf.mxu3 }
 0xa47   :  { %v6165_v2 = vmul.f32 0.35355338, %v1730_v43 }
 0xa49   :  { %v2070_v5 = vsel %vm199_vm1, %v6165_v2, -inf }
 0xa4e   :  { %v1912_v30 = vpop.f32.mrf.mxu2  ;;  %v1834_v34 = vpop.f32.mrf.mxu3 }
 0xa4f   :  { %v6128_v31 = vmul.f32 0.35355338, %v1912_v30  ;;  %v6153_v55 = vmul.f32 0.35355338, %v1834_v34 }
 0xa50   :  { %v1860_v26 = vpop.f32.mrf.mxu0 }
 0xa51   :  { %v6130_v33 = vmul.f32 0.35355338, %v1860_v26  ;;  %v2091_v40 = vsel %vm199_vm1, %v6128_v31, -inf  ;;  %v2082_v58 = vsel %vm199_vm1, %v6153_v55, -inf }
 0xa52   :  { %2092 = vmax.xlane.f32.xlu2 %v2091_v40 }
 0xa53   :  { %v2085_v45 = vsel %vm199_vm1, %v6130_v33, -inf }
 0xa54   :  { %2086 = vmax.xlane.f32.xlu0 %v2085_v45 }
 0xa56   :  { %v1938_v44 = vpop.f32.mrf.mxu3 }
 0xa57   :  { %v1782_v49 = vpop.f32.mrf.mxu1  ;;  %v6144_v46 = vmul.f32 0.35355338, %v1938_v44  ;;  %v2016_v39 = vpop.f32.mrf.mxu2 }
 0xa58   :  { %v6136_v28 = vmul.f32 0.35355338, %v1782_v49  ;;  %v1964_v36 = vpop.f32.mrf.mxu0  ;;  %v6171_v17 = vmul.f32 0.35355338, %v2016_v39 }
 0xa59   :  { %v6138_v37 = vmul.f32 0.35355338, %v1964_v36  ;;  %v2094_v35 = vsel %vm199_vm1, %v6144_v46, -inf }
 0xa5a   :  { %v2076_v38 = vsel %vm199_vm1, %v6136_v28, -inf  ;;  %v2103_v11 = vsel %vm199_vm1, %v6171_v17, -inf }
 0xa5b   :  { %v2097_v41 = vsel %vm199_vm1, %v6138_v37, -inf  ;;  %2077 = vmax.xlane.f32.xlu1 %v2076_v38 }
 0xa5c   :  { %2098 = vmax.xlane.f32.xlu2 %v2097_v41 }
 0xa5e   :  { %v2042_v12 = vpop.f32.mrf.mxu3 }
 0xa5f   :  { %v1886_v47 = vpop.f32.mrf.mxu1  ;;  %v6178_v53 = vmul.f32 0.35355338, %v2042_v12 }
 0xa60   :  { %v6146_v50 = vmul.f32 0.35355338, %v1886_v47 }
 0xa61   :  { %v2106_v16 = vsel %vm199_vm1, %v6178_v53, -inf }
 0xa62   :  { %v2088_v51 = vsel %vm199_vm1, %v6146_v50, -inf }
 0xa63   :  { %2089 = vmax.xlane.f32.xlu0 %v2088_v51 }
 0xa64   :  { %v2063_v52 = vpop.xlane.xlu2 %2062  ;;  %2095 = vmax.xlane.f32.xlu2 %v2094_v35 }
 0xa65   :  { %v2109_v54 = vsub.f32 %v6108_v6, %v2063_v52 }
 0xa67   :  { %v2125_v56 = vmul.f32 1.442695, %v2109_v54 }
 0xa69   :  { %5227 = vpow2.f32 %v2125_v56 }
 0xa6b   :  { %2083 = vmax.xlane.f32.xlu0 %v2082_v58 }
 0xa6f   :  { %v6157_v59 = vpop.eup %5227  ;;  %v1990_v61 = vpop.f32.mrf.mxu1 }
 0xa70   :  { %v6159_v63 = vmul.f32 0.35355338, %v1990_v61  ;;  %v2157_v0 = vsel %vm199_vm1, %v6157_v59, 0.0 }
 0xa71   :  { %2158 = vadd.xlane.f32.xlu1 %v2157_v0  ;;  %v2066_v57 = vpop.xlane.xlu2 %2065 }
 0xa72   :  { %v2110_v62 = vsub.f32 %v2046_v19, %v2066_v57  ;;  %v2100_v1 = vsel %vm199_vm1, %v6159_v63, -inf }
 0xa73   :  { %2101 = vmax.xlane.f32.xlu0 %v2100_v1 }
 0xa74   :  { %v2127_v4 = vmul.f32 1.442695, %v2110_v62 }
 0xa76   :  { %5229 = vpow2.f32 %v2127_v4 }
 0xa79   :  { %2071 = vmax.xlane.f32.xlu1 %v2070_v5 }
 0xa7c   :  { %v6169_v6 = vpop.eup %5229  ;;  %v2069_v23 = vpop.xlane.xlu0 %2068 }
 0xa7d   :  { %v2160_v7 = vsel %vm199_vm1, %v6169_v6, 0.0  ;;  %v2111_v9 = vsub.f32 %v6116_v18, %v2069_v23 }
 0xa7e   :  { %2161 = vadd.xlane.f32.xlu0 %v2160_v7 }
 0xa7f   :  { %v2129_v3 = vmul.f32 1.442695, %v2111_v9 }
 0xa81   :  { %2104 = vmax.xlane.f32.xlu1 %v2103_v11  ;;  %5231 = vpow2.f32 %v2129_v3 }
 0xa87   :  { %v6180_v14 = vpop.eup %5231 }
 0xa88   :  { %v2163_v19 = vsel %vm199_vm1, %v6180_v14, 0.0 }
 0xa89   :  { %2107 = vmax.xlane.f32.xlu1 %v2106_v16  ;;  %2164 = vadd.xlane.f32.xlu2 %v2163_v19 }
 0xa92   :  { %1623 = vrot.lane.b32.xlu0 %v6058_v48, %s5401_s25 }
 0xa9a   :  { %v2081_v60 = vpop.xlane.xlu0 %2080 }
 0xa9b   :  { %v2115_v24 = vsub.f32 %v6120_v8, %v2081_v60 }
 0xa9c   :  { %v2075_v18 = vpop.xlane.xlu1 %2074 }
 0xa9d   :  { %v2113_v21 = vsub.f32 %v6122_v27, %v2075_v18  ;;  %v2137_v13 = vmul.f32 1.442695, %v2115_v24 }
 0xa9f   :  { %v2133_v22 = vmul.f32 1.442695, %v2113_v21 }
 0xaa1   :  { %5233 = vpow2.f32 %v2133_v22 }
 0xaa2   :  { %5235 = vpow2.f32 %v2137_v13 }
 0xaa7   :  { %v6192_v29 = vpop.eup %5233 }
 0xaa8   :  { %v2169_v43 = vsel %vm199_vm1, %v6192_v29, 0.0  ;;  %v6196_v30 = vpop.eup %5235 }
 0xaa9   :  { %2170 = vadd.xlane.f32.xlu2 %v2169_v43  ;;  %v2175_v26 = vsel %vm199_vm1, %v6196_v30, 0.0 }
 0xab1   :  { %2176 = vadd.xlane.f32.xlu2 %v2175_v26 }
 0xac5   :  { %v2093_v34 = vpop.xlane.xlu2 %2092 }
 0xac6   :  { %v2119_v36 = vsub.f32 %v6128_v31, %v2093_v34 }
 0xac7   :  { %v2087_v40 = vpop.xlane.xlu0 %2086 }
 0xac8   :  { %v2117_v27 = vsub.f32 %v6130_v33, %v2087_v40  ;;  %v2145_v47 = vmul.f32 1.442695, %v2119_v36 }
 0xaca   :  { %v2141_v8 = vmul.f32 1.442695, %v2117_v27 }
 0xacc   :  { %5237 = vpow2.f32 %v2141_v8 }
 0xace   :  { %v2078_v45 = vpop.xlane.xlu1 %2077 }
 0xacf   :  { %v2114_v49 = vsub.f32 %v6136_v28, %v2078_v45  ;;  %v2099_v61 = vpop.xlane.xlu2 %2098 }
 0xad1   :  { %v2135_v38 = vmul.f32 1.442695, %v2114_v49 }
 0xad2   :  { %v6203_v41 = vpop.eup %5237 }
 0xad3   :  { %5239 = vpow2.f32 %v2135_v38  ;;  %v2181_v44 = vsel %vm199_vm1, %v6203_v41, 0.0 }
 0xad4   :  { %2182 = vadd.xlane.f32.xlu1 %v2181_v44  ;;  %5241 = vpow2.f32 %v2145_v47 }
 0xad6   :  { %v2090_v51 = vpop.xlane.xlu0 %2089 }
 0xad7   :  { %v2118_v1 = vsub.f32 %v6146_v50, %v2090_v51  ;;  %v2096_v7 = vpop.xlane.xlu2 %2095 }
 0xad8   :  { %v2120_v27 = vsub.f32 %v6144_v46, %v2096_v7 }
 0xad9   :  { %v6207_v35 = vpop.eup %5239  ;;  %v2143_v39 = vmul.f32 1.442695, %v2118_v1 }
 0xada   :  { %v2172_v33 = vsel %vm199_vm1, %v6207_v35, 0.0  ;;  %v6211_v28 = vpop.eup %5241 }
 0xadb   :  { %2173 = vadd.xlane.f32.xlu2 %v2172_v33  ;;  %v2187_v52 = vsel %vm199_vm1, %v6211_v28, 0.0 }
 0xade   :  { %v2084_v31 = vpop.xlane.xlu0 %2083 }
 0xadf   :  { %v2116_v18 = vsub.f32 %v6153_v55, %v2084_v31  ;;  %v5118_v55 = vunpack.i.l.bf16 %v6188_v20 }
 0xae1   :  { %v2139_v22 = vmul.f32 1.442695, %v2116_v18 }
 0xae3   :  { %2188 = vadd.xlane.f32.xlu2 %v2187_v52 }
 0xae4   :  { %v2159_v54 = vpop.xlane.xlu1 %2158 }
 0xae5   :  { %5243 = vrcp.f32 %v2159_v54 }
 0xae6   :  { %v2102_v56 = vpop.xlane.xlu0 %2101 }
 0xae7   :  { %v2122_v43 = vsub.f32 %v6159_v63, %v2102_v56  ;;  %v2147_v63 = vmul.f32 1.442695, %v2120_v27 }
 0xae9   :  { %v2151_v45 = vmul.f32 1.442695, %v2122_v43 }
 0xaeb   :  { %v5244_v58 = vpop.eup %5243 }
 0xaec   :  { %v2221_v0 = vmul.f32 %v5244_v58, %v6157_v59  ;;  %v2072_v57 = vpop.xlane.xlu1 %2071 }
 0xaed   :  { %v2112_v62 = vsub.f32 %v6165_v2, %v2072_v57  ;;  %5121 = vrot.lane.b32.xlu1 %v6063_v32, %s5400_s24  ;;  %v2121_v2 = vsub.f32 %v6138_v37, %v2099_v61 }
 0xaee   :  { %4967 = vmatmul.msk.f32.vlgmr.msra.gmra.mxu0 %vm199_vm1, %v2221_v0 }
 0xaef   :  { %v2131_v4 = vmul.f32 1.442695, %v2112_v62  ;;  %v2149_v12 = vmul.f32 1.442695, %v2121_v2 }
 0xaf1   :  { %5245 = vpow2.f32 %v2131_v4  ;;  %v2162_v5 = vpop.xlane.xlu0 %2161 }
 0xaf2   :  { %5247 = vrcp.f32 %v2162_v5 }
 0xaf3   :  { %5249 = vpow2.f32 %v2143_v39 }
 0xaf4   :  { %v2105_v23 = vpop.xlane.xlu1 %2104 }
 0xaf5   :  { %v2123_v9 = vsub.f32 %v6171_v17, %v2105_v23 }
 0xaf7   :  { %v6222_v59 = vpop.eup %5245  ;;  %v2153_v3 = vmul.f32 1.442695, %v2123_v9 }
 0xaf8   :  { %v5248_v32 = vpop.eup %5247  ;;  %v2166_v11 = vsel %vm199_vm1, %v6222_v59, 0.0 }
 0xaf9   :  { %v2222_v50 = vmul.f32 %v5248_v32, %v6169_v6  ;;  %5251 = vpow2.f32 %v2153_v3  ;;  %2167 = vadd.xlane.f32.xlu0 %v2166_v11  ;;  %v6229_v19 = vpop.eup %5249 }
 0xafa   :  { %v2184_v24 = vsel %vm199_vm1, %v6229_v19, 0.0 }
 0xafb   :  { %4968 = vmatmul.msk.f32.vlgmr.msrb.gmra.mxu1 %vm199_vm1, %v2222_v50 }
 0xafc   :  { %v2108_v16 = vpop.xlane.xlu1 %2107  ;;  %v2165_v60 = vpop.xlane.xlu2 %2164 }
 0xafd   :  { %v2124_v17 = vsub.f32 %v6178_v53, %v2108_v16  ;;  %5253 = vrcp.f32 %v2165_v60 }
 0xafe   :  { %5255 = vpow2.f32 %v2149_v12 }
 0xaff   :  { %v6232_v37 = vpop.eup %5251  ;;  %v2155_v21 = vmul.f32 1.442695, %v2124_v17 }
 0xb00   :  { %v2199_v6 = vsel %vm199_vm1, %v6232_v37, 0.0 }
 0xb01   :  { %5257 = vpow2.f32 %v2155_v21  ;;  %2200 = vadd.xlane.f32.xlu2 %v2199_v6  ;;  %2185 = vadd.xlane.f32.xlu0 %v2184_v24 }
 0xb02   :  { %5259 = vpow2.f32 %v2139_v22 }
 0xb03   :  { %v5254_v13 = vpop.eup %5253  ;;  %5261 = vpow2.f32 %v2151_v45 }
 0xb04   :  { %v6239_v53 = vpop.eup %5255  ;;  %v2223_v26 = vmul.f32 %v5254_v13, %v6180_v14  ;;  %5263 = vpow2.f32 %v2147_v63  ;;  %v1624_v56 = vpop.permute.xlu0 %1623 }
 0xb05   :  { %v2193_v34 = vsel %vm199_vm1, %v6239_v53, 0.0 }
 0xb06   :  { %4969 = vmatmul.msk.f32.vlgmr.msra.gmra.mxu2 %vm199_vm1, %v2223_v26 }
 0xb07   :  { %v6244_v40 = vpop.eup %5257  ;;  %2485 = vmatpush.msra.mxu2 %v5118_v55 }
 0xb08   :  { %v2202_v8 = vsel %vm199_vm1, %v6244_v40, 0.0  ;;  %v6252_v14 = vpop.eup %5259 }
 0xb09   :  { %2203 = vadd.xlane.f32.xlu2 %v2202_v8  ;;  %2194 = vadd.xlane.f32.xlu0 %v2193_v34  ;;  %v2178_v46 = vsel %vm199_vm1, %v6252_v14, 0.0  ;;  %v6256_v49 = vpop.eup %5261 }
 0xb0a   :  { %v6258_v36 = vpop.eup %5263  ;;  %v2196_v38 = vsel %vm199_vm1, %v6256_v49, 0.0 }
 0xb0b   :  { %v2190_v44 = vsel %vm199_vm1, %v6258_v36, 0.0 }
 0xb11   :  { %2179 = vadd.xlane.f32.xlu0 %v2178_v46 }
 0xb17   :  { %2197 = vadd.xlane.f32.xlu1 %v2196_v38 }
 0xb19   :  { %2191 = vadd.xlane.f32.xlu0 %v2190_v44 }
 0xb1c   :  { %v2171_v47 = vpop.xlane.xlu2 %2170 }
 0xb1d   :  { %5265 = vrcp.f32 %v2171_v47 }
 0xb21   :  { %1617 = vrot.lane.b32.xlu2 %v6058_v48, %s5402_s26 }
 0xb23   :  { %v5266_v51 = vpop.eup %5265 }
 0xb24   :  { %v2225_v33 = vmul.f32 %v5266_v51, %v6192_v29  ;;  %v2177_v31 = vpop.xlane.xlu2 %2176 }
 0xb25   :  { %5267 = vrcp.f32 %v2177_v31  ;;  %v1470_v31 = vld [vmem:[%s7241_s1 + $0x3a0] sm:$0xff] }
 0xb26   :  { %4971 = vmatmul.msk.f32.vlgmr.msrb.gmra.mxu0 %vm199_vm1, %v2225_v33  ;;  %v1471_v33 = vld [vmem:[%s7241_s1 + $0x3b0] sm:$0xff] }
 0xb2b   :  { %v5268_v52 = vpop.eup %5267 }
 0xb2c   :  { %v2227_v54 = vmul.f32 %v5268_v52, %v6196_v30  ;;  %v1469_v52 = vld [vmem:[%s7241_s1 + $0x390] sm:$0xff] }
 0xb2d   :  { %1625 = vrot.lane.b32.xlu0 %v6056_v42, %s5401_s25 }
 0xb2e   :  { %4973 = vmatmul.msk.f32.vlgmr.msrb.gmra.mxu2 %vm199_vm1, %v2227_v54  ;;  %v1468_v54 = vld [vmem:[%s7241_s1 + $0x380] sm:$0xff] }
 0xb2f   :  { %2577 = vmatpush.msrb.mxu2 %v1624_v56  ;;  %v1467_v56 = vld [vmem:[%s7241_s1 + $0x370] sm:$0xff] }
 0xb35   :  { %1619 = vrot.lane.b32.xlu0 %v6056_v42, %s5402_s26 }
 0xb47   :  { %v2183_v58 = vpop.xlane.xlu1 %2182 }
 0xb4e   :  { %v2174_v48 = vpop.xlane.xlu2 %2173 }
 0xb4f   :  { %5269 = vrcp.f32 %v2174_v48  ;;  %v1466_v48 = vld [vmem:[%s7241_s1 + $0x360] sm:$0xff] }
 0xb55   :  { %v5270_v29 = vpop.eup %5269 }
 0xb56   :  { %v2226_v61 = vmul.f32 %v5270_v29, %v6207_v35  ;;  %v2189_v0 = vpop.xlane.xlu2 %2188  ;;  %v1465_v29 = vld [vmem:[%s7241_s1 + $0x350] sm:$0xff] }
 0xb57   :  { %5271 = vrcp.f32 %v2189_v0 }
 0xb58   :  { %5273 = vrcp.f32 %v2183_v58  ;;  %4972 = vmatmul.msk.f32.vlgmr.msra.gmra.mxu1 %vm199_vm1, %v2226_v61  ;;  %v1464_v61 = vld [vmem:[%s7241_s1 + $0x340] sm:$0xff] }
 0xb5d   :  { %v5272_v30 = vpop.eup %5271 }
 0xb5e   :  { %v5274_v57 = vpop.eup %5273  ;;  %v2231_v62 = vmul.f32 %v5272_v30, %v6211_v28  ;;  %v5119_v28 = vunpack.i.h.bf16 %v6188_v20 }
 0xb5f   :  { %v5122_v1 = vpop.permute.xlu1 %5121  ;;  %v2229_v42 = vmul.f32 %v5274_v57, %v6203_v41 }
 0xb60   :  { %v5124_v4 = vunpack.i.h.bf16 %v5122_v1  ;;  %v5123_v5 = vunpack.i.l.bf16 %v5122_v1  ;;  %4977 = vmatmul.msk.f32.vlgmr.msra.gmra.mxu2 %vm199_vm1, %v2231_v62 }
 0xb62   :  { %2439 = vmatpush.msra.mxu0 %v5123_v5  ;;  %2462 = vmatpush.msrb.mxu1 %v5124_v4 }
 0xb63   :  { %4975 = vmatmul.msk.f32.vlgmr.msra.gmra.mxu0 %vm199_vm1, %v2229_v42 }
 0xb6b   :  { %v2257_v22 = vpop.f32.mrf.mxu0 }
 0xb6c   :  { %v2168_v35 = vpop.xlane.xlu0 %2167 }
 0xb6d   :  { %5275 = vrcp.f32 %v2168_v35 }
 0xb73   :  { %v5276_v39 = vpop.eup %5275 }
 0xb74   :  { %v2224_v23 = vmul.f32 %v5276_v39, %v6222_v59  ;;  %v2201_v7 = vpop.xlane.xlu2 %2200  ;;  %v2186_v9 = vpop.xlane.xlu0 %2185 }
 0xb75   :  { %5277 = vrcp.f32 %v2201_v7 }
 0xb76   :  { %5279 = vrcp.f32 %v2186_v9  ;;  %4970 = vmatmul.msk.f32.vlgmr.msra.gmra.mxu3 %vm199_vm1, %v2224_v23 }
 0xb77   :  { %2508 = vmatpush.msra.mxu3 %v5119_v28 }
 0xb78   :  { %v2280_v34 = vpop.f32.mrf.mxu1 }
 0xb7b   :  { %v5278_v2 = vpop.eup %5277 }
 0xb7c   :  { %v5280_v41 = vpop.eup %5279  ;;  %v2235_v3 = vmul.f32 %v5278_v2, %v6232_v37  ;;  %v2204_v32 = vpop.xlane.xlu2 %2203 }
 0xb7d   :  { %v2195_v11 = vpop.xlane.xlu0 %2194  ;;  %v2230_v50 = vmul.f32 %v5280_v41, %v6229_v19 }
 0xb7e   :  { %5281 = vrcp.f32 %v2195_v11  ;;  %4981 = vmatmul.msk.f32.vlgmr.msrb.gmra.mxu2 %vm199_vm1, %v2235_v3 }
 0xb7f   :  { %4976 = vmatmul.msk.f32.vlgmr.msrb.gmra.mxu1 %vm199_vm1, %v2230_v50 }
 0xb84   :  { %v5282_v59 = vpop.eup %5281  ;;  %v1618_v20 = vpop.permute.xlu2 %1617 }
 0xb85   :  { %v2180_v12 = vpop.xlane.xlu0 %2179  ;;  %v2233_v16 = vmul.f32 %v5282_v59, %v6239_v53  ;;  %2531 = vmatpush.msrb.mxu0 %v1618_v20 }
 0xb86   :  { %5283 = vrcp.f32 %v2180_v12 }
 0xb87   :  { %4979 = vmatmul.msk.f32.vlgmr.msrb.gmra.mxu0 %vm199_vm1, %v2233_v16 }
 0xb88   :  { %2690 = vmatpush.msra.mxu0 %v1471_v33  ;;  %v1473_v33 = vld [vmem:[%s7241_s1 + $0x3d0] sm:$0xff] }
 0xb89   :  { %v2303_v17 = vpop.f32.mrf.mxu2 }
 0xb8a   :  { %2607 = vrot.lane.b32.xlu2 %v2303_v17, %s5403_s27  ;;  %v2198_v6 = vpop.xlane.xlu1 %2197  ;;  %2691 = vmatpush.msra.mxu0 %v1470_v31 }
 0xb8c   :  { %v5284_v60 = vpop.eup %5283  ;;  %2692 = vmatpush.msra.mxu0 %v1469_v52 }
 0xb8d   :  { %v2228_v19 = vmul.f32 %v5284_v60, %v6252_v14  ;;  %v2192_v37 = vpop.xlane.xlu0 %2191 }
 0xb8e   :  { %5285 = vrcp.f32 %v2192_v37  ;;  %2693 = vmatpush.msra.mxu0 %v1468_v54  ;;  %v6354_v37 = vld [vmem:[%s7241_s1 + $0x3c0] sm:$0x3f] }
 0xb8f   :  { %4974 = vmatmul.msk.f32.vlgmr.msrb.gmra.mxu3 %vm199_vm1, %v2228_v19  ;;  %5287 = vrcp.f32 %v2204_v32 }
 0xb90   :  { %5289 = vrcp.f32 %v2198_v6  ;;  %2694 = vmatpush.msra.mxu0 %v1467_v56 }
 0xb92   :  { %2695 = vmatpush.msra.mxu0 %v1466_v48 }
 0xb94   :  { %v5286_v18 = vpop.eup %5285  ;;  %2696 = vmatpush.msra.mxu0 %v1465_v29 }
 0xb95   :  { %v2232_v21 = vmul.f32 %v5286_v18, %v6258_v36  ;;  %v5288_v24 = vpop.eup %5287  ;;  %v2675_v18 = vperm.slane %v6354_v37, 0 }
 0xb96   :  { %v2236_v13 = vmul.f32 %v5288_v24, %v6244_v40  ;;  %v5290_v43 = vpop.eup %5289  ;;  %2697 = vmatpush.msra.mxu0 %v1464_v61 }
 0xb97   :  { %4978 = vmatmul.msk.f32.vlgmr.msra.gmra.mxu3 %vm199_vm1, %v2232_v21  ;;  %v2234_v55 = vmul.f32 %v5290_v43, %v6256_v49 }
 0xb9f   :  { %v1626_v53 = vpop.permute.xlu0 %1625 }
 0xba0   :  { %2600 = vmatpush.msrb.mxu3 %v1626_v53 }
 0xba1   :  { %4982 = vmatmul.msk.f32.vlgmr.msrb.gmra.mxu3 %vm199_vm1, %v2236_v13 }
 0xba3   :  { %v2349_v26 = vpop.f32.mrf.mxu0 }
 0xba4   :  { %2615 = vrot.lane.b32.xlu0 %v2349_v26, %s5404_s28 }
 0xba7   :  { %v1620_v27 = vpop.permute.xlu0 %1619 }
 0xba8   :  { %2554 = vmatpush.msra.mxu1 %v1620_v27 }
 0xba9   :  { %4980 = vmatmul.msk.f32.vlgmr.msra.gmra.mxu1 %vm199_vm1, %v2234_v55 }
 0xbb1   :  { %v2395_v8 = vpop.f32.mrf.mxu2 }
 0xbb2   :  { %2623 = vrot.lane.b32.xlu2 %v2395_v8, %s5405_s29 }
 0xbd5   :  { %v2372_v63 = vpop.f32.mrf.mxu1 }
 0xbe0   :  { %v2441_v45 = vpop.f32.mrf.mxu0 }
 0xbe1   :  { %2631 = vrot.lane.b32.xlu0 %v2441_v45, %s5407_s3 }
 0xbe3   :  { %v2487_v40 = vpop.f32.mrf.mxu2 }
 0xbe4   :  { %2639 = vrot.lane.b32.xlu1 %v2487_v40, %s5406_s30  ;;  %v2608_v30 = vpop.permute.xlu2 %2607 }
 0xbe5   :  { %v2661_v4 = vsel %vm199_vm1, %v2257_v22, %v2608_v30  ;;  %v2751_v30 = vperm.slane %v6354_v37, 1 }
 0xbe9   :  { %2617 = vrot.lane.b32.xlu0 %v2372_v63, %s5404_s28 }
 0xbf9   :  { %v2326_v36 = vpop.f32.mrf.mxu3 }
 0xbfc   :  { %v2464_v14 = vpop.f32.mrf.mxu1 }
 0xbfd   :  { %2633 = vrot.lane.b32.xlu0 %v2464_v14, %s5407_s3 }
 0xc01   :  { %v2579_v46 = vpop.f32.mrf.mxu2 }
 0xc04   :  { %v2533_v49 = vpop.f32.mrf.mxu0 }
 0xc05   :  { %2647 = vrot.lane.b32.xlu2 %v2533_v49, %s5409_s7  ;;  %2655 = vrot.lane.b32.xlu0 %v2579_v46, %s5408_s4  ;;  %v1480_v46 = vld [vmem:[%s7241_s1 + $0x440] sm:$0xff]  ;;  %v1479_v49 = vld [vmem:[%s7241_s1 + $0x430] sm:$0xff] }
 0xc06   :  { %2771 = vmatpush.msrb.mxu1 %v1480_v46 }
 0xc08   :  { %2772 = vmatpush.msrb.mxu1 %v1479_v49 }
 0xc0c   :  { %v2624_v62 = vpop.permute.xlu2 %2623 }
 0xc0d   :  { %2609 = vrot.lane.b32.xlu2 %v2326_v36, %s5403_s27  ;;  %v1478_v36 = vld [vmem:[%s7241_s1 + $0x420] sm:$0xff] }
 0xc0e   :  { %2773 = vmatpush.msrb.mxu1 %v1478_v36 }
 0xc12   :  { %v2418_v38 = vpop.f32.mrf.mxu3 }
 0xc15   :  { %2625 = vrot.lane.b32.xlu2 %v2418_v38, %s5405_s29  ;;  %v1477_v38 = vld [vmem:[%s7241_s1 + $0x410] sm:$0xff] }
 0xc16   :  { %v2616_v58 = vpop.permute.xlu0 %2615  ;;  %2774 = vmatpush.msrb.mxu1 %v1477_v38 }
 0xc17   :  { %v2663_v5 = vsel %vm1232_vm2, %v2661_v4, %v2616_v58 }
 0xc18   :  { %v2665_v35 = vsel %vm1235_vm3, %v2663_v5, %v2624_v62 }
 0xc1a   :  { %v2510_v44 = vpop.f32.mrf.mxu3 }
 0xc1b   :  { %2641 = vrot.lane.b32.xlu1 %v2510_v44, %s5406_s30  ;;  %v1476_v44 = vld [vmem:[%s7241_s1 + $0x400] sm:$0xff] }
 0xc1c   :  { %2775 = vmatpush.msrb.mxu1 %v1476_v44 }
 0xc24   :  { %v2602_v47 = vpop.f32.mrf.mxu3 }
 0xc25   :  { %2657 = vrot.lane.b32.xlu0 %v2602_v47, %s5408_s4  ;;  %v1475_v47 = vld [vmem:[%s7241_s1 + $0x3f0] sm:$0xff] }
 0xc26   :  { %v2556_v51 = vpop.f32.mrf.mxu1  ;;  %2776 = vmatpush.msrb.mxu1 %v1475_v47 }
 0xc27   :  { %2649 = vrot.lane.b32.xlu2 %v2556_v51, %s5409_s7  ;;  %v1474_v51 = vld [vmem:[%s7241_s1 + $0x3e0] sm:$0xff] }
 0xc28   :  { %2777 = vmatpush.msrb.mxu1 %v1474_v51 }
 0xc2a   :  { %2778 = vmatpush.msrb.mxu1 %v1473_v33 }
 0xc53   :  { %v2632_v0 = vpop.permute.xlu0 %2631 }
 0xc54   :  { %v2667_v23 = vsel %vm1238_vm4, %v2665_v35, %v2632_v0  ;;  %v1496_v35 = vld [vmem:[%s7241_s1 + $0x540] sm:$0xff] }
 0xc56   :  { %v2640_v42 = vpop.permute.xlu1 %2639 }
 0xc57   :  { %v2669_v7 = vsel %vm1241_vm5, %v2667_v23, %v2640_v42  ;;  %v1497_v42 = vld [vmem:[%s7241_s1 + $0x550] sm:$0xff] }
 0xc58   :  { %2789 = vmatpush.msra.mxu2 %v1497_v42  ;;  %v2873_v42 = vld [vmem:[%s7241_s1 + $0x5a8] sm:$0xff] }
 0xc5a   :  { %2790 = vmatpush.msra.mxu2 %v1496_v35  ;;  %v2870_v35 = vld [vmem:[%s7241_s1 + $0x590] sm:$0xff] }
 0xc5b   :  { %v2618_v57 = vpop.permute.xlu0 %2617 }
 0xc5f   :  { %v2648_v39 = vpop.permute.xlu2 %2647 }
 0xc60   :  { %v2671_v9 = vsel %vm1244_vm6, %v2669_v7, %v2648_v39  ;;  %v1495_v39 = vld [vmem:[%s7241_s1 + $0x530] sm:$0xff] }
 0xc61   :  { %2791 = vmatpush.msra.mxu2 %v1495_v39  ;;  %v2871_v39 = vld [vmem:[%s7241_s1 + $0x598] sm:$0xff] }
 0xc67   :  { %v2610_v41 = vpop.permute.xlu2 %2609 }
 0xc68   :  { %v2662_v3 = vsel %vm199_vm1, %v2280_v34, %v2610_v41  ;;  %v1492_v41 = vld [vmem:[%s7241_s1 + $0x500] sm:$0xff] }
 0xc69   :  { %v2664_v11 = vsel %vm1232_vm2, %v2662_v3, %v2618_v57  ;;  %v1491_v3 = vld [vmem:[%s7241_s1 + $0x4f0] sm:$0xff] }
 0xc6f   :  { %v2634_v1 = vpop.permute.xlu0 %2633  ;;  %v2626_v32 = vpop.permute.xlu2 %2625 }
 0xc70   :  { %v2666_v50 = vsel %vm1235_vm3, %v2664_v11, %v2626_v32  ;;  %v1490_v32 = vld [vmem:[%s7241_s1 + $0x4e0] sm:$0xff] }
 0xc71   :  { %v2668_v20 = vsel %vm1238_vm4, %v2666_v50, %v2634_v1  ;;  %v2754_v1 = vperm.slane %v6354_v37, 2  ;;  %v1489_v50 = vld [vmem:[%s7241_s1 + $0x4d0] sm:$0xff] }
 0xc77   :  { %v2656_v28 = vpop.permute.xlu0 %2655 }
 0xc78   :  { %v2673_v2 = vsel %vm1247_vm7, %v2671_v9, %v2656_v28  ;;  %v1494_v9 = vld [vmem:[%s7241_s1 + $0x520] sm:$0xff] }
 0xc79   :  { %4983 = vmatmul.msk.f32.vlgmr.msra.gmra.mxu0 %vm70_vm0, %v2673_v2  ;;  %v1493_v2 = vld [vmem:[%s7241_s1 + $0x510] sm:$0xff]  ;;  %2792 = vmatpush.msra.mxu2 %v1494_v9 }
 0xc7a   :  { %v2866_v9 = vld [vmem:[%s7241_s1 + $0x570] sm:$0xff] }
 0xc7b   :  { %2793 = vmatpush.msra.mxu2 %v1493_v2  ;;  %v2864_v2 = vld [vmem:[%s7241_s1 + $0x560] sm:$0xff] }
 0xc7d   :  { %2794 = vmatpush.msra.mxu2 %v1492_v41  ;;  %v2865_v41 = vld [vmem:[%s7241_s1 + $0x568] sm:$0xff] }
 0xc7f   :  { %2795 = vmatpush.msra.mxu2 %v1491_v3 }
 0xc81   :  { %v2650_v16 = vpop.permute.xlu2 %2649  ;;  %2796 = vmatpush.msra.mxu2 %v1490_v32 }
 0xc83   :  { %2797 = vmatpush.msra.mxu2 %v1489_v50 }
 0xc8d   :  { %v2642_v59 = vpop.permute.xlu1 %2641 }
 0xc8e   :  { %v2670_v12 = vsel %vm1241_vm5, %v2668_v20, %v2642_v59  ;;  %v1488_v20 = vld [vmem:[%s7241_s1 + $0x4c0] sm:$0xff] }
 0xc8f   :  { %v2672_v60 = vsel %vm1244_vm6, %v2670_v12, %v2650_v16  ;;  %v1487_v16 = vld [vmem:[%s7241_s1 + $0x4b0] sm:$0xff]  ;;  %2798 = vmatpush.msra.mxu2 %v1488_v20 }
 0xc91   :  { %2799 = vmatpush.msra.mxu2 %v1487_v16 }
 0xc97   :  { %v2658_v17 = vpop.permute.xlu0 %2657 }
 0xc98   :  { %v2674_v19 = vsel %vm1247_vm7, %v2672_v60, %v2658_v17  ;;  %v1486_v60 = vld [vmem:[%s7241_s1 + $0x4a0] sm:$0xff] }
 0xc99   :  { %4984 = vmatmul.msk.f32.gmra.mxu0 %vm70_vm0, %v2674_v19  ;;  %2800 = vmatpush.msra.mxu2 %v1486_v60  ;;  %v2858_v60 = vperm.slane %v6354_v37, 4 }
 0xcf6   :  { %v2699_v21 = vpop.f32.mrf.mxu0 }
 0xcf7   :  { %v2700_v6 = vadd.f32 %v2699_v21, %v2675_v18 }
 0xcf9   :  { %v2705_v24 = vadd.f32 %v2700_v6, %v6002_v10 }
 0xcfb   :  { %v2707_v22 = vsel %vm70_vm0, %v2705_v24, 0.0 }
 0xcfc   :  { %2708 = vadd.xlane.f32.xlu1 %v2707_v22 }
 0xd16   :  { %v2702_v13 = vpop.f32.mrf.mxu0 }
 0xd17   :  { %v2703_v53 = vadd.f32 %v2702_v13, %v2675_v18  ;;  %v1485_v18 = vld [vmem:[%s7241_s1 + $0x490] sm:$0xff] }
 0xd18   :  { %2801 = vmatpush.msra.mxu2 %v1485_v18 }
 0xd19   :  { %v2706_v43 = vadd.f32 %v2703_v53, %v6010_v25  ;;  %v1484_v53 = vld [vmem:[%s7241_s1 + $0x480] sm:$0xff] }
 0xd1a   :  { %2802 = vmatpush.msra.mxu2 %v1484_v53 }
 0xd1b   :  { %v2710_v26 = vsel %vm70_vm0, %v2706_v43, 0.0 }
 0xd1c   :  { %2711 = vadd.xlane.f32.xlu2 %v2710_v26  ;;  %v1482_v26 = vld [vmem:[%s7241_s1 + $0x460] sm:$0xff] }
 0xd6f   :  { %v2709_v55 = vpop.xlane.xlu1 %2708 }
 0xd70   :  { %v2713_v27 = vmul.f32 %v2709_v55, %v5844_v15  ;;  %v1481_v55 = vld [vmem:[%s7241_s1 + $0x450] ss:$0 sm:$0xff] }
 0xd72   :  { %v2715_v8 = vsub.f32 %v2705_v24, %v2713_v27 }
 0xd74   :  { %v2717_v34 = vmul.f32 %v2715_v8, %v2715_v8 }
 0xd76   :  { %v2719_v45 = vsel %vm70_vm0, %v2717_v34, 0.0 }
 0xd77   :  { %2720 = vadd.xlane.f32.xlu0 %v2719_v45 }
 0xd8f   :  { %v2712_v40 = vpop.xlane.xlu2 %2711 }
 0xd90   :  { %v2714_v10 = vmul.f32 %v2712_v40, %v5844_v15 }
 0xd92   :  { %v6364_v63 = vsub.f32 %v2706_v43, %v2714_v10  ;;  %v1483_v43 = vld [vmem:[%s7241_s1 + $0x470] sm:$0xff] }
 0xd93   :  { %2803 = vmatpush.msra.mxu2 %v1483_v43 }
 0xd94   :  { %v2718_v14 = vmul.f32 %v6364_v63, %v6364_v63 }
 0xd95   :  { %2804 = vmatpush.msra.mxu2 %v1482_v26 }
 0xd96   :  { %v2722_v25 = vsel %vm70_vm0, %v2718_v14, 0.0 }
 0xd97   :  { %2723 = vadd.xlane.f32.xlu2 %v2722_v25 }
 0xdea   :  { %v2721_v31 = vpop.xlane.xlu0 %2720 }
 0xdeb   :  { %v2725_v52 = vmul.f32 %v2721_v31, %v5844_v15 }
 0xded   :  { %v2727_v54 = vadd.f32 1e-05, %v2725_v52 }
 0xdef   :  { %5291 = vrsqrt.f32 %v2727_v54  ;;  %vm2735_vm14 = vweird.f32 %v2727_v54 }
 0xdf5   :  { %v5292_v56 = vpop.eup %5291 }
 0xdf6   :  { %v2730_v48 = vmul.f32 %v5292_v56, %v2727_v54  ;;  %vm2736_vm13 = vweird.f32 %v5292_v56 }
 0xdf7   :  { %vm2737_vm15 = vmor %vm2735_vm14, %vm2736_vm13 }
 0xdf8   :  { %v2731_v29 = vmul.f32 %v5292_v56, %v2730_v48 }
 0xdfa   :  { %v2732_v58 = vmul.f32 0.5, %v2731_v29 }
 0xdfc   :  { %v2733_v61 = vsub.f32 1.5, %v2732_v58 }
 0xdfe   :  { %v2734_v0 = vmul.f32 %v5292_v56, %v2733_v61 }
 0xe00   :  { %v2738_v57 = vsel %vm2737_vm15, %v5292_v56, %v2734_v0  ;;  %v2878_v0 = vld [vmem:[%s7241_s1 + $0x5d0] sm:$0xff] }
 0xe01   :  { %v2749_v62 = vmul.f32 %v2738_v57, %v2715_v8  ;;  %2935 = vmatpush.msra.mxu3 %v2878_v0  ;;  %v2876_v57 = vld [vmem:[%s7241_s1 + $0x5c0] sm:$0xff] }
 0xe03   :  { %v2752_v4 = vmul.f32 %v2751_v30, %v2749_v62  ;;  %v2877_v62 = vld [vmem:[%s7241_s1 + $0x5c8] sm:$0xff]  ;;  %2936 = vmatpush.msra.mxu3 %v2876_v57 }
 0xe05   :  { %v6396_v5 = vadd.f32 %v2754_v1, %v2752_v4  ;;  %v2875_v4 = vld [vmem:[%s7241_s1 + $0x5b8] sm:$0xff] }
 0xe07   :  { %4985 = vmatmul.msk.f32.vlgmr.msrb.gmra.mxu1 %vm70_vm0, %v6396_v5 }
 0xe0a   :  { %v2724_v23 = vpop.xlane.xlu2 %2723 }
 0xe0b   :  { %v2726_v7 = vmul.f32 %v2724_v23, %v5844_v15  ;;  %v2868_v23 = vld [vmem:[%s7241_s1 + $0x580] sm:$0xff] }
 0xe0d   :  { %v2728_v28 = vadd.f32 1e-05, %v2726_v7  ;;  %v2869_v7 = vld [vmem:[%s7241_s1 + $0x588] sm:$0xff] }
 0xe0f   :  { %5293 = vrsqrt.f32 %v2728_v28  ;;  %vm2745_vm9 = vweird.f32 %v2728_v28 }
 0xe15   :  { %v5294_v11 = vpop.eup %5293 }
 0xe16   :  { %v2740_v59 = vmul.f32 %v5294_v11, %v2728_v28  ;;  %vm2746_vm8 = vweird.f32 %v5294_v11  ;;  %v2867_v28 = vld [vmem:[%s7241_s1 + $0x578] sm:$0xff] }
 0xe17   :  { %vm2747_vm10 = vmor %vm2745_vm9, %vm2746_vm8 }
 0xe18   :  { %v2741_v12 = vmul.f32 %v5294_v11, %v2740_v59 }
 0xe1a   :  { %v2742_v17 = vmul.f32 0.5, %v2741_v12 }
 0xe1c   :  { %v2743_v19 = vsub.f32 1.5, %v2742_v17 }
 0xe1e   :  { %v2744_v21 = vmul.f32 %v5294_v11, %v2743_v19 }
 0xe20   :  { %v2748_v6 = vsel %vm2747_vm10, %v5294_v11, %v2744_v21  ;;  %v2861_v21 = vperm.slane %v6354_v37, 5 }
 0xe21   :  { %v2750_v24 = vmul.f32 %v2748_v6, %v6364_v63  ;;  %v2788_v63 = vperm.slane %v6354_v37, 3 }
 0xe23   :  { %v2753_v22 = vmul.f32 %v2751_v30, %v2750_v24  ;;  %v2879_v30 = vld [vmem:[%s7241_s1 + $0x5d8] sm:$0xff] }
 0xe24   :  { %2958 = vmatpush.msrb.mxu0 %v2879_v30 }
 0xe25   :  { %v2756_v13 = vadd.f32 %v2754_v1, %v2753_v22  ;;  %v2874_v1 = vld [vmem:[%s7241_s1 + $0x5b0] sm:$0xff] }
 0xe26   :  { %2959 = vmatpush.msrb.mxu0 %v2877_v62  ;;  %2937 = vmatpush.msra.mxu3 %v2874_v1 }
 0xe27   :  { %4986 = vmatmul.msk.f32.gmra.mxu1 %vm70_vm0, %v2756_v13 }
 0xe28   :  { %2960 = vmatpush.msrb.mxu0 %v2875_v4 }
 0xe2a   :  { %2961 = vmatpush.msrb.mxu0 %v2873_v42 }
 0xe2c   :  { %2962 = vmatpush.msrb.mxu0 %v2871_v39 }
 0xe2e   :  { %2963 = vmatpush.msrb.mxu0 %v2869_v7 }
 0xe30   :  { %2964 = vmatpush.msrb.mxu0 %v2867_v28 }
 0xe32   :  { %2965 = vmatpush.msrb.mxu0 %v2865_v41 }
 0xe84   :  { %v2780_v27 = vpop.f32.mrf.mxu1 }
 0xe85   :  { %v2781_v8 = vadd.f32 %v2780_v27, %v1481_v55 }
 0xe87   :  { %v2786_v34 = vmax.f32 %v2781_v8, 0.0 }
 0xe89   :  { %2805 = vmatmul.f32.vlgmr.msra.gmra.mxu2 %v2786_v34 }
 0xea4   :  { %v2783_v45 = vpop.f32.mrf.mxu1 }
 0xea5   :  { %v2784_v40 = vadd.f32 %v2783_v45, %v1481_v55 }
 0xea7   :  { %v2787_v10 = vmax.f32 %v2784_v40, 0.0 }
 0xea9   :  { %2808 = vmatmul.f32.gmra.mxu2 %v2787_v10 }
 0xf0c   :  { %v2806_v14 = vpop.f32.mrf.mxu2 }
 0xf0d   :  { %v2807_v25 = vadd.f32 %v2806_v14, %v2788_v63 }
 0xf0f   :  { %v2812_v46 = vadd.f32 %v2807_v25, %v6396_v5  ;;  %v2872_v5 = vld [vmem:[%s7241_s1 + $0x5a0] sm:$0xff] }
 0xf10   :  { %2938 = vmatpush.msra.mxu3 %v2872_v5 }
 0xf11   :  { %v2814_v49 = vsel %vm70_vm0, %v2812_v46, 0.0 }
 0xf12   :  { %2815 = vadd.xlane.f32.xlu1 %v2814_v49  ;;  %2939 = vmatpush.msra.mxu3 %v2870_v35 }
 0xf14   :  { %2940 = vmatpush.msra.mxu3 %v2868_v23 }
 0xf16   :  { %2941 = vmatpush.msra.mxu3 %v2866_v9 }
 0xf18   :  { %2942 = vmatpush.msra.mxu3 %v2864_v2 }
 0xf2c   :  { %v2809_v36 = vpop.f32.mrf.mxu2 }
 0xf2d   :  { %v2810_v38 = vadd.f32 %v2809_v36, %v2788_v63  ;;  %v4987_v63 = vld [vmem:[%s7241_s1 + $0x5e0] ss:$8 sm:$0x3] }
 0xf2e   :  { %v2917_v14 = vperm.slane %v4987_v63, 0  ;;  %v2918_v30 = vperm.slane %v4987_v63, 1 }
 0xf2f   :  { %v2813_v44 = vadd.f32 %v2810_v38, %v2756_v13 }
 0xf31   :  { %v2817_v47 = vsel %vm70_vm0, %v2813_v44, 0.0 }
 0xf32   :  { %2818 = vadd.xlane.f32.xlu0 %v2817_v47 }
 0xf85   :  { %v2816_v51 = vpop.xlane.xlu1 %2815 }
 0xf86   :  { %v2820_v33 = vmul.f32 %v2816_v51, %v5844_v15 }
 0xf88   :  { %v2822_v31 = vsub.f32 %v2812_v46, %v2820_v33 }
 0xf8a   :  { %v2824_v52 = vmul.f32 %v2822_v31, %v2822_v31 }
 0xf8c   :  { %v2826_v54 = vsel %vm70_vm0, %v2824_v52, 0.0 }
 0xf8d   :  { %2827 = vadd.xlane.f32.xlu2 %v2826_v54 }
 0xfa5   :  { %v2819_v56 = vpop.xlane.xlu0 %2818 }
 0xfa6   :  { %v2821_v48 = vmul.f32 %v2819_v56, %v5844_v15 }
 0xfa8   :  { %v6461_v29 = vsub.f32 %v2813_v44, %v2821_v48 }
 0xfaa   :  { %v2825_v58 = vmul.f32 %v6461_v29, %v6461_v29 }
 0xfac   :  { %v2829_v61 = vsel %vm70_vm0, %v2825_v58, 0.0 }
 0xfad   :  { %2830 = vadd.xlane.f32.xlu1 %v2829_v61 }
0x1000   :  { %v2828_v3 = vpop.xlane.xlu2 %2827 }
0x1001   :  { %v2832_v32 = vmul.f32 %v2828_v3, %v5844_v15 }
0x1003   :  { %v2834_v11 = vadd.f32 1e-05, %v2832_v32 }
0x1005   :  { %5295 = vrsqrt.f32 %v2834_v11  ;;  %vm2842_vm12 = vweird.f32 %v2834_v11 }
0x100b   :  { %v5296_v50 = vpop.eup %5295 }
0x100c   :  { %v2837_v59 = vmul.f32 %v5296_v50, %v2834_v11  ;;  %vm2843_vm11 = vweird.f32 %v5296_v50 }
0x100d   :  { %vm2844_vm13 = vmor %vm2842_vm12, %vm2843_vm11 }
0x100e   :  { %v2838_v20 = vmul.f32 %v5296_v50, %v2837_v59 }
0x1010   :  { %v2839_v12 = vmul.f32 0.5, %v2838_v20 }
0x1012   :  { %v2840_v16 = vsub.f32 1.5, %v2839_v12 }
0x1014   :  { %v2841_v17 = vmul.f32 %v5296_v50, %v2840_v16 }
0x1016   :  { %v2845_v19 = vsel %vm2844_vm13, %v5296_v50, %v2841_v17 }
0x1017   :  { %v2856_v18 = vmul.f32 %v2845_v19, %v2822_v31 }
0x1019   :  { %v2859_v6 = vmul.f32 %v2858_v60, %v2856_v18 }
0x101b   :  { %v6517_v24 = vadd.f32 %v2861_v21, %v2859_v6 }
0x101d   :  { %4988 = vmatmul.msk.f32.vlgmr.msra.gmra.mxu3 %vm70_vm0, %v6517_v24  ;;  %4990 = vmatmul.msk.f32.vlgmr.msrb.gmra.mxu0 %vm70_vm0, %v6517_v24 }
0x1020   :  { %v2831_v22 = vpop.xlane.xlu1 %2830 }
0x1021   :  { %v2833_v13 = vmul.f32 %v2831_v22, %v5844_v15 }
0x1023   :  { %v2835_v53 = vadd.f32 1e-05, %v2833_v13 }
0x1025   :  { %5297 = vrsqrt.f32 %v2835_v53  ;;  %vm2852_vm15 = vweird.f32 %v2835_v53 }
0x102b   :  { %v5298_v43 = vpop.eup %5297 }
0x102c   :  { %v2847_v26 = vmul.f32 %v5298_v43, %v2835_v53  ;;  %vm2853_vm14 = vweird.f32 %v5298_v43 }
0x102d   :  { %vm2854_vm8 = vmor %vm2852_vm15, %vm2853_vm14 }
0x102e   :  { %v2848_v55 = vmul.f32 %v5298_v43, %v2847_v26 }
0x1030   :  { %v2849_v27 = vmul.f32 0.5, %v2848_v55 }
0x1032   :  { %v2850_v8 = vsub.f32 1.5, %v2849_v27 }
0x1034   :  { %v2851_v37 = vmul.f32 %v5298_v43, %v2850_v8 }
0x1036   :  { %v2855_v34 = vsel %vm2854_vm8, %v5298_v43, %v2851_v37 }
0x1037   :  { %v2857_v45 = vmul.f32 %v2855_v34, %v6461_v29 }
0x1039   :  { %v2860_v40 = vmul.f32 %v2858_v60, %v2857_v45 }
0x103b   :  { %v6525_v10 = vadd.f32 %v2861_v21, %v2860_v40 }
0x103d   :  { %4989 = vmatmul.msk.f32.gmra.mxu3 %vm70_vm0, %v6525_v10  ;;  %4991 = vmatmul.msk.f32.gmra.mxu0 %vm70_vm0, %v6525_v10 }
0x109a   :  { %v2967_v54 = vpop.f32.mrf.mxu0 }
0x109b   :  { %v6573_v1 = vadd.f32 %v2967_v54, %v2918_v30 }
0x10a0   :  { %v2944_v25 = vpop.f32.mrf.mxu3 }
0x10a1   :  { %v2945_v46 = vadd.f32 %v2944_v25, %v2917_v14 }
0x10a3   :  { %2983 = vrot.lane.b32.xlu1 %v2945_v46, %s5395_s5  ;;  %2975 = vrot.lane.b32.xlu0 %v2945_v46, %s5397_s11 }
0x10ab   :  { %2979 = vrot.lane.b32.xlu1 %v2945_v46, %s5396_s6  ;;  %2987 = vrot.lane.b32.xlu0 %v2945_v46, %s5400_s24 }
0x10ba   :  { %v2970_v58 = vpop.f32.mrf.mxu0 }
0x10bb   :  { %v6571_v62 = vadd.f32 %v2970_v58, %v2918_v30 }
0x10bd   :  { %v6578_v4 = vpack.i.bf16 %v6571_v62, %v6573_v1 }
0x10c0   :  { %v2947_v49 = vpop.f32.mrf.mxu3 }
0x10c1   :  { %v2948_v36 = vadd.f32 %v2947_v49, %v2917_v14 }
0x10c3   :  { %2981 = vrot.lane.b32.xlu1 %v2948_v36, %s5396_s6  ;;  %2985 = vrot.lane.b32.xlu0 %v2948_v36, %s5395_s5 }
0x10c4   :  { %2977 = vrot.lane.b32.xlu2 %v2948_v36, %s5397_s11 }
0x10cb   :  { %2989 = vrot.lane.b32.xlu1 %v2948_v36, %s5400_s24  ;;  %2993 = vrot.lane.b32.xlu0 %v2948_v36, %s5398_s22 }
0x10cc   :  { %2991 = vrot.lane.b32.xlu2 %v2945_v46, %s5398_s22 }
0x10d3   :  { %3073 = vrot.lane.b32.xlu1 %v2948_v36, %s5399_s23  ;;  %2995 = vrot.lane.b32.xlu0 %v2945_v46, %s5402_s26 }
0x10d4   :  { %2999 = vrot.lane.b32.xlu2 %v2945_v46, %s5401_s25 }
0x10db   :  { %2997 = vrot.lane.b32.xlu0 %v2948_v36, %s5402_s26 }
0x10dc   :  { %3001 = vrot.lane.b32.xlu2 %v2948_v36, %s5401_s25 }
0x10e4   :  { %3047 = vrot.lane.b32.xlu2 %v2945_v46, %s5399_s23 }
0x1115   :  { %v2976_v38 = vpop.permute.xlu0 %2975  ;;  %v2984_v44 = vpop.permute.xlu1 %2983 }
0x1116   :  { %3099 = vrot.lane.b32.xlu2 %v2976_v38, %s5399_s23  ;;  %3203 = vrot.lane.b32.xlu0 %v2984_v44, %s5399_s23 }
0x111d   :  { %v2980_v47 = vpop.permute.xlu1 %2979  ;;  %v2988_v31 = vpop.permute.xlu0 %2987 }
0x111e   :  { %v2978_v51 = vpop.permute.xlu2 %2977  ;;  %3151 = vrot.lane.b32.xlu0 %v2980_v47, %s5399_s23 }
0x111f   :  { %3125 = vrot.lane.b32.xlu1 %v2978_v51, %s5399_s23 }
0x1126   :  { %v2992_v33 = vpop.permute.xlu2 %2991 }
0x1127   :  { %3307 = vrot.lane.b32.xlu1 %v2992_v33, %s5399_s23 }
0x112e   :  { %v3000_v52 = vpop.permute.xlu2 %2999 }
0x112f   :  { %3411 = vrot.lane.b32.xlu1 %v3000_v52, %s5399_s23 }
0x1135   :  { %v2986_v56 = vpop.permute.xlu0 %2985  ;;  %v6556_v48 = vpop.permute.xlu1 %2981 }
0x1136   :  { %v6558_v29 = vpop.permute.xlu2 %3001  ;;  %3229 = vrot.lane.b32.xlu2 %v2986_v56, %s5399_s23  ;;  %3177 = vrot.lane.b32.xlu0 %v6556_v48, %s5399_s23 }
0x1137   :  { %3437 = vrot.lane.b32.xlu1 %v6558_v29, %s5399_s23 }
0x113d   :  { %v2994_v61 = vpop.permute.xlu0 %2993  ;;  %v6565_v0 = vpop.permute.xlu1 %2989 }
0x113e   :  { %v3048_v57 = vpop.permute.xlu2 %3047  ;;  %3333 = vrot.lane.b32.xlu2 %v2994_v61, %s5399_s23  ;;  %3281 = vrot.lane.b32.xlu0 %v6565_v0, %s5399_s23 }
0x113f   :  { %4992 = vmatpush.xpose.msk.msra.mxu1 %vm199_vm1, %v3048_v57 }
0x1142   :  { %4993 = vmatmul.msk.f32.vlgmr.msra.gmra.mxu1 %vm199_vm1, %v2945_v46 }
0x1145   :  { %v2996_v5 = vpop.permute.xlu0 %2995  ;;  %v3074_v42 = vpop.permute.xlu1 %3073 }
0x1146   :  { %3255 = vrot.lane.b32.xlu2 %v2988_v31, %s5399_s23  ;;  %5131 = vrot.lane.b32.xlu0 %v6578_v4, %s5395_s5 }
0x1147   :  { %4994 = vmatpush.xpose.msk.msrb.mxu3 %vm199_vm1, %v3074_v42 }
0x114a   :  { %4995 = vmatmul.msk.f32.vlgmr.msrb.gmra.mxu3 %vm199_vm1, %v2948_v36 }
0x114d   :  { %v2998_v35 = vpop.permute.xlu0 %2997 }
0x114e   :  { %3359 = vrot.lane.b32.xlu2 %v2996_v5, %s5399_s23  ;;  %3385 = vrot.lane.b32.xlu1 %v2998_v35, %s5399_s23 }
0x1156   :  { %5136 = vrot.lane.b32.xlu2 %v6578_v4, %s5396_s6  ;;  %5126 = vrot.lane.b32.xlu1 %v6578_v4, %s5397_s11 }
0x115e   :  { %5141 = vrot.lane.b32.xlu1 %v6578_v4, %s5398_s22 }
0x1170   :  { %v3100_v39 = vpop.permute.xlu2 %3099 }
0x1171   :  { %4996 = vmatpush.xpose.msk.msrb.mxu1 %vm199_vm1, %v3100_v39 }
0x1174   :  { %4997 = vmatmul.msk.f32.vlgmr.msrb.gmra.mxu1 %vm199_vm1, %v2976_v38 }
0x1188   :  { %v3204_v23 = vpop.permute.xlu0 %3203 }
0x1189   :  { %5004 = vmatpush.xpose.msk.msrb.mxu2 %vm199_vm1, %v3204_v23 }
0x118c   :  { %5005 = vmatmul.msk.f32.vlgmr.msrb.gmra.mxu2 %vm199_vm1, %v2984_v44 }
0x1190   :  { %v3152_v7 = vpop.permute.xlu0 %3151  ;;  %v3230_v9 = vpop.permute.xlu2 %3229 }
0x1191   :  { %5000 = vmatpush.xpose.msk.msra.mxu0 %vm199_vm1, %v3152_v7  ;;  %v3126_v28 = vpop.permute.xlu1 %3125 }
0x1192   :  { %4998 = vmatpush.xpose.msk.msra.mxu3 %vm199_vm1, %v3126_v28 }
0x1194   :  { %5001 = vmatmul.msk.f32.vlgmr.msra.gmra.mxu0 %vm199_vm1, %v2980_v47 }
0x1195   :  { %4999 = vmatmul.msk.f32.vlgmr.msra.gmra.mxu3 %vm199_vm1, %v2978_v51 }
0x1196   :  { %5006 = vmatpush.xpose.msk.msrb.mxu3 %vm199_vm1, %v3230_v9 }
0x1198   :  { %v3334_v2 = vpop.permute.xlu2 %3333 }
0x1199   :  { %v3308_v41 = vpop.permute.xlu1 %3307 }
0x119a   :  { %5014 = vmatpush.xpose.msk.msra.mxu3 %vm199_vm1, %v3334_v2  ;;  %5012 = vmatpush.xpose.msk.msra.mxu2 %vm199_vm1, %v3308_v41 }
0x119d   :  { %5007 = vmatmul.msk.f32.vlgmr.msrb.gmra.mxu3 %vm199_vm1, %v2986_v56  ;;  %5013 = vmatmul.msk.f32.vlgmr.msra.gmra.mxu2 %vm199_vm1, %v2992_v33 }
0x11a0   :  { %v3256_v3 = vpop.permute.xlu2 %3255 }
0x11a1   :  { %v3412_v32 = vpop.permute.xlu1 %3411  ;;  %5008 = vmatpush.xpose.msk.msrb.mxu0 %vm199_vm1, %v3256_v3 }
0x11a2   :  { %5020 = vmatpush.xpose.msk.msrb.mxu2 %vm199_vm1, %v3412_v32 }
0x11a4   :  { %5009 = vmatmul.msk.f32.vlgmr.msrb.gmra.mxu0 %vm199_vm1, %v2988_v31 }
0x11a5   :  { %5015 = vmatmul.msk.f32.vlgmr.msra.gmra.mxu3 %vm199_vm1, %v2994_v61  ;;  %5021 = vmatmul.msk.f32.vlgmr.msrb.gmra.mxu2 %vm199_vm1, %v3000_v52 }
0x11a8   :  { %v3360_v11 = vpop.permute.xlu2 %3359  ;;  %v3178_v50 = vpop.permute.xlu0 %3177 }
0x11a9   :  { %v3438_v59 = vpop.permute.xlu1 %3437  ;;  %5002 = vmatpush.xpose.msk.msra.mxu1 %vm199_vm1, %v3178_v50  ;;  %5016 = vmatpush.xpose.msk.msra.mxu0 %vm199_vm1, %v3360_v11 }
0x11aa   :  { %5022 = vmatpush.xpose.msk.msrb.mxu3 %vm199_vm1, %v3438_v59 }
0x11ac   :  { %5003 = vmatmul.msk.f32.vlgmr.msra.gmra.mxu1 %vm199_vm1, %v6556_v48  ;;  %5017 = vmatmul.msk.f32.vlgmr.msra.gmra.mxu0 %vm199_vm1, %v2996_v5 }
0x11ad   :  { %3673 = vmatpush.msrb.mxu0 %v6573_v1  ;;  %5023 = vmatmul.msk.f32.vlgmr.msrb.gmra.mxu3 %vm199_vm1, %v6558_v29 }
0x11b0   :  { %v5137_v20 = vpop.permute.xlu2 %5136  ;;  %v3282_v12 = vpop.permute.xlu0 %3281 }
0x11b1   :  { %v5138_v16 = vunpack.i.l.bf16 %v5137_v20  ;;  %5010 = vmatpush.xpose.msk.msrb.mxu1 %vm199_vm1, %v3282_v12  ;;  %v5139_v21 = vunpack.i.h.bf16 %v5137_v20 }
0x11b3   :  { %3765 = vmatpush.msra.mxu0 %v5138_v16 }
0x11b4   :  { %5011 = vmatmul.msk.f32.vlgmr.msrb.gmra.mxu1 %vm199_vm1, %v6565_v0 }
0x11b8   :  { %v5132_v6 = vpop.permute.xlu0 %5131 }
0x11b9   :  { %v5134_v43 = vunpack.i.h.bf16 %v5132_v6  ;;  %v5133_v26 = vunpack.i.l.bf16 %v5132_v6 }
0x11bf   :  { %v3070_v17 = vpop.f32.mrf.mxu1 }
0x11c0   :  { %v3463_v60 = vmul.f32 0.35355338, %v3070_v17  ;;  %v3386_v19 = vpop.permute.xlu1 %3385 }
0x11c1   :  { %5018 = vmatpush.xpose.msk.msra.mxu1 %vm199_vm1, %v3386_v19 }
0x11c2   :  { %v3479_v18 = vsel %vm199_vm1, %v3463_v60, -inf }
0x11c3   :  { %3480 = vmax.xlane.f32.xlu2 %v3479_v18 }
0x11c4   :  { %5019 = vmatmul.msk.f32.vlgmr.msra.gmra.mxu1 %vm199_vm1, %v2998_v35 }
0x11c5   :  { %3696 = vmatpush.msrb.mxu1 %v6571_v62 }
0x11c7   :  { %3788 = vmatpush.msra.mxu1 %v5139_v21 }
0x11c8   :  { %v5127_v22 = vpop.permute.xlu1 %5126 }
0x11c9   :  { %v5129_v13 = vunpack.i.h.bf16 %v5127_v22  ;;  %v5128_v53 = vunpack.i.l.bf16 %v5127_v22 }
0x11cb   :  { %3719 = vmatpush.msra.mxu2 %v5128_v53  ;;  %3742 = vmatpush.msra.mxu3 %v5129_v13 }
0x11cd   :  { %3811 = vmatpush.msrb.mxu2 %v5133_v26  ;;  %3834 = vmatpush.msrb.mxu3 %v5134_v43  ;;  %v3096_v55 = vpop.f32.mrf.mxu3 }
0x11ce   :  { %v3464_v27 = vmul.f32 0.35355338, %v3096_v55 }
0x11d0   :  { %v3482_v8 = vsel %vm199_vm1, %v3464_v27, -inf }
0x11d1   :  { %3483 = vmax.xlane.f32.xlu2 %v3482_v8  ;;  %v6699_v8 = vpop.permute.xlu1 %5141 }
0x11f1   :  { %v3122_v37 = vpop.f32.mrf.mxu1 }
0x11f2   :  { %v6628_v34 = vmul.f32 0.35355338, %v3122_v37 }
0x11f4   :  { %v3485_v45 = vsel %vm199_vm1, %v6628_v34, -inf }
0x11f5   :  { %3486 = vmax.xlane.f32.xlu0 %v3485_v45 }
0x120f   :  { %v3226_v40 = vpop.f32.mrf.mxu2 }
0x1210   :  { %v6632_v63 = vmul.f32 0.35355338, %v3226_v40 }
0x1211   :  { %v3174_v14 = vpop.f32.mrf.mxu0 }
0x1212   :  { %v6634_v25 = vmul.f32 0.35355338, %v3174_v14  ;;  %v3497_v46 = vsel %vm199_vm1, %v6632_v63, -inf }
0x1213   :  { %3498 = vmax.xlane.f32.xlu0 %v3497_v46 }
0x1214   :  { %v3491_v49 = vsel %vm199_vm1, %v6634_v25, -inf }
0x1215   :  { %3492 = vmax.xlane.f32.xlu1 %v3491_v49 }
0x1218   :  { %v3148_v36 = vpop.f32.mrf.mxu3 }
0x1219   :  { %v6676_v12 = vmul.f32 0.35355338, %v3148_v36 }
0x1220   :  { %v3330_v38 = vpop.f32.mrf.mxu2  ;;  %v3252_v33 = vpop.f32.mrf.mxu3 }
0x1221   :  { %v6640_v44 = vmul.f32 0.35355338, %v3330_v38  ;;  %v3278_v47 = vpop.f32.mrf.mxu0  ;;  %v6660_v39 = vmul.f32 0.35355338, %v3252_v33 }
0x1222   :  { %v6642_v51 = vmul.f32 0.35355338, %v3278_v47 }
0x1223   :  { %v3509_v31 = vsel %vm199_vm1, %v6640_v44, -inf  ;;  %v3500_v7 = vsel %vm199_vm1, %v6660_v39, -inf }
0x1224   :  { %3510 = vmax.xlane.f32.xlu2 %v3509_v31  ;;  %v3503_v52 = vsel %vm199_vm1, %v6642_v51, -inf }
0x1225   :  { %3504 = vmax.xlane.f32.xlu0 %v3503_v52 }
0x1228   :  { %v3356_v58 = vpop.f32.mrf.mxu3  ;;  %v3434_v19 = vpop.f32.mrf.mxu2 }
0x1229   :  { %v3200_v54 = vpop.f32.mrf.mxu1  ;;  %v3382_v56 = vpop.f32.mrf.mxu0  ;;  %v6652_v61 = vmul.f32 0.35355338, %v3356_v58  ;;  %v6684_v18 = vmul.f32 0.35355338, %v3434_v19 }
0x122a   :  { %v6648_v48 = vmul.f32 0.35355338, %v3382_v56  ;;  %v6672_v50 = vmul.f32 0.35355338, %v3200_v54 }
0x122b   :  { %v3512_v5 = vsel %vm199_vm1, %v6652_v61, -inf  ;;  %v3521_v21 = vsel %vm199_vm1, %v6684_v18, -inf }
0x122c   :  { %v3515_v29 = vsel %vm199_vm1, %v6648_v48, -inf  ;;  %v3494_v20 = vsel %vm199_vm1, %v6672_v50, -inf }
0x122d   :  { %3516 = vmax.xlane.f32.xlu2 %v3515_v29 }
0x1230   :  { %v3460_v6 = vpop.f32.mrf.mxu3 }
0x1231   :  { %v3304_v0 = vpop.f32.mrf.mxu1  ;;  %v6688_v22 = vmul.f32 0.35355338, %v3460_v6 }
0x1232   :  { %v6654_v30 = vmul.f32 0.35355338, %v3304_v0 }
0x1233   :  { %v3524_v13 = vsel %vm199_vm1, %v6688_v22, -inf }
0x1234   :  { %v3506_v57 = vsel %vm199_vm1, %v6654_v30, -inf }
0x1235   :  { %3507 = vmax.xlane.f32.xlu0 %v3506_v57  ;;  %3513 = vmax.xlane.f32.xlu2 %v3512_v5 }
0x1236   :  { %v3481_v42 = vpop.xlane.xlu2 %3480 }
0x1237   :  { %v3527_v35 = vsub.f32 %v3463_v60, %v3481_v42  ;;  %v3488_v60 = vsel %vm199_vm1, %v6676_v12, -inf }
0x1239   :  { %v3543_v23 = vmul.f32 1.442695, %v3527_v35 }
0x123b   :  { %5299 = vpow2.f32 %v3543_v23 }
0x123d   :  { %3501 = vmax.xlane.f32.xlu0 %v3500_v7 }
0x1241   :  { %v6664_v9 = vpop.eup %5299  ;;  %v3408_v28 = vpop.f32.mrf.mxu1 }
0x1242   :  { %v6666_v2 = vmul.f32 0.35355338, %v3408_v28  ;;  %v3575_v41 = vsel %vm199_vm1, %v6664_v9, 0.0 }
0x1243   :  { %3576 = vadd.xlane.f32.xlu1 %v3575_v41 }
0x1244   :  { %v3484_v3 = vpop.xlane.xlu2 %3483  ;;  %v3518_v32 = vsel %vm199_vm1, %v6666_v2, -inf }
0x1245   :  { %v3528_v11 = vsub.f32 %v3464_v27, %v3484_v3  ;;  %3519 = vmax.xlane.f32.xlu0 %v3518_v32 }
0x1247   :  { %v3545_v59 = vmul.f32 1.442695, %v3528_v11 }
0x1249   :  { %5301 = vpow2.f32 %v3545_v59 }
0x124b   :  { %3495 = vmax.xlane.f32.xlu1 %v3494_v20 }
0x124f   :  { %v6678_v16 = vpop.eup %5301 }
0x1250   :  { %v3578_v17 = vsel %vm199_vm1, %v6678_v16, 0.0 }
0x1251   :  { %3579 = vadd.xlane.f32.xlu0 %v3578_v17 }
0x1253   :  { %3489 = vmax.xlane.f32.xlu1 %v3488_v60 }
0x125b   :  { %3522 = vmax.xlane.f32.xlu1 %v3521_v21 }
0x1263   :  { %3525 = vmax.xlane.f32.xlu1 %v3524_v13 }
0x1265   :  { %3041 = vrot.lane.b32.xlu0 %v6573_v1, %s5401_s25 }
0x1268   :  { %v3487_v53 = vpop.xlane.xlu0 %3486 }
0x1269   :  { %v3529_v43 = vsub.f32 %v6628_v34, %v3487_v53 }
0x126b   :  { %v3547_v26 = vmul.f32 1.442695, %v3529_v43 }
0x126d   :  { %5303 = vpow2.f32 %v3547_v26 }
0x1273   :  { %v6695_v55 = vpop.eup %5303 }
0x1274   :  { %v3581_v27 = vsel %vm199_vm1, %v6695_v55, 0.0 }
0x1275   :  { %3582 = vadd.xlane.f32.xlu2 %v3581_v27 }
0x1286   :  { %v3499_v37 = vpop.xlane.xlu0 %3498 }
0x1287   :  { %v3533_v14 = vsub.f32 %v6632_v63, %v3499_v37 }
0x1288   :  { %v3493_v45 = vpop.xlane.xlu1 %3492 }
0x1289   :  { %v3531_v40 = vsub.f32 %v6634_v25, %v3493_v45  ;;  %v3555_v49 = vmul.f32 1.442695, %v3533_v14 }
0x128b   :  { %v3551_v46 = vmul.f32 1.442695, %v3531_v40 }
0x128d   :  { %5305 = vpow2.f32 %v3551_v46 }
0x128e   :  { %5307 = vpow2.f32 %v3555_v49 }
0x1293   :  { %v6703_v34 = vpop.eup %5305 }
0x1294   :  { %v3587_v36 = vsel %vm199_vm1, %v6703_v34, 0.0  ;;  %v6708_v31 = vpop.eup %5307 }
0x1295   :  { %3588 = vadd.xlane.f32.xlu2 %v3587_v36  ;;  %v3593_v54 = vsel %vm199_vm1, %v6708_v31, 0.0 }
0x1297   :  { %v3511_v38 = vpop.xlane.xlu2 %3510 }
0x1298   :  { %v3537_v47 = vsub.f32 %v6640_v44, %v3511_v38  ;;  %v3505_v33 = vpop.xlane.xlu0 %3504 }
0x1299   :  { %v3535_v25 = vsub.f32 %v6642_v51, %v3505_v33 }
0x129a   :  { %v3563_v52 = vmul.f32 1.442695, %v3537_v47 }
0x129b   :  { %v3559_v63 = vmul.f32 1.442695, %v3535_v25 }
0x129c   :  { %5309 = vpow2.f32 %v3563_v52 }
0x129d   :  { %5311 = vpow2.f32 %v3559_v63  ;;  %3594 = vadd.xlane.f32.xlu2 %v3593_v54 }
0x12a0   :  { %v3517_v56 = vpop.xlane.xlu2 %3516 }
0x12a1   :  { %v3539_v29 = vsub.f32 %v6648_v48, %v3517_v56 }
0x12a2   :  { %v6714_v58 = vpop.eup %5309 }
0x12a3   :  { %v6716_v0 = vpop.eup %5311  ;;  %v3567_v44 = vmul.f32 1.442695, %v3539_v29  ;;  %v3605_v57 = vsel %vm199_vm1, %v6714_v58, 0.0 }
0x12a4   :  { %v3599_v51 = vsel %vm199_vm1, %v6716_v0, 0.0 }
0x12a5   :  { %5313 = vpow2.f32 %v3567_v44  ;;  %3606 = vadd.xlane.f32.xlu2 %v3605_v57  ;;  %3600 = vadd.xlane.f32.xlu1 %v3599_v51  ;;  %v5143_v57 = vunpack.i.l.bf16 %v6699_v8 }
0x12a8   :  { %v3508_v5 = vpop.xlane.xlu0 %3507  ;;  %v3514_v37 = vpop.xlane.xlu2 %3513 }
0x12a9   :  { %v3536_v19 = vsub.f32 %v6654_v30, %v3508_v5  ;;  %v3538_v46 = vsub.f32 %v6652_v61, %v3514_v37 }
0x12ab   :  { %v6722_v42 = vpop.eup %5313  ;;  %v3561_v6 = vmul.f32 1.442695, %v3536_v19 }
0x12ac   :  { %v3611_v48 = vsel %vm199_vm1, %v6722_v42, 0.0 }
0x12ad   :  { %3612 = vadd.xlane.f32.xlu0 %v3611_v48 }
0x12b0   :  { %v3502_v35 = vpop.xlane.xlu0 %3501 }
0x12b1   :  { %v3534_v30 = vsub.f32 %v6660_v39, %v3502_v35 }
0x12b3   :  { %v3557_v27 = vmul.f32 1.442695, %v3534_v30 }
0x12b6   :  { %v3577_v23 = vpop.xlane.xlu1 %3576 }
0x12b7   :  { %5315 = vrcp.f32 %v3577_v23 }
0x12b8   :  { %v3520_v7 = vpop.xlane.xlu0 %3519 }
0x12bd   :  { %v5316_v28 = vpop.eup %5315 }
0x12be   :  { %v3639_v41 = vmul.f32 %v5316_v28, %v6664_v9  ;;  %v3496_v3 = vpop.xlane.xlu1 %3495  ;;  %5146 = vrot.lane.b32.xlu1 %v6578_v4, %s5400_s24 }
0x12bf   :  { %v3532_v32 = vsub.f32 %v6672_v50, %v3496_v3 }
0x12c0   :  { %5024 = vmatmul.msk.f32.vlgmr.msrb.gmra.mxu0 %vm199_vm1, %v3639_v41 }
0x12c1   :  { %v3553_v11 = vmul.f32 1.442695, %v3532_v32 }
0x12c3   :  { %5317 = vpow2.f32 %v3553_v11 }
0x12c4   :  { %v3580_v59 = vpop.xlane.xlu0 %3579 }
0x12c5   :  { %5319 = vrcp.f32 %v3580_v59 }
0x12c6   :  { %v3490_v20 = vpop.xlane.xlu1 %3489 }
0x12c7   :  { %v3530_v17 = vsub.f32 %v6676_v12, %v3490_v20 }
0x12c9   :  { %v6732_v60 = vpop.eup %5317  ;;  %v3549_v9 = vmul.f32 1.442695, %v3530_v17 }
0x12ca   :  { %v3590_v21 = vsel %vm199_vm1, %v6732_v60, 0.0 }
0x12cb   :  { %v5320_v4 = vpop.eup %5319  ;;  %5321 = vpow2.f32 %v3549_v9  ;;  %3591 = vadd.xlane.f32.xlu2 %v3590_v21 }
0x12cc   :  { %v3640_v50 = vmul.f32 %v5320_v4, %v6678_v16  ;;  %5323 = vpow2.f32 %v3561_v6  ;;  %v3540_v16 = vsub.f32 %v6666_v2, %v3520_v7  ;;  %v3565_v2 = vmul.f32 1.442695, %v3538_v46 }
0x12ce   :  { %5025 = vmatmul.msk.f32.vlgmr.msrb.gmra.mxu1 %vm199_vm1, %v3640_v50  ;;  %v3523_v13 = vpop.xlane.xlu1 %3522  ;;  %v3569_v49 = vmul.f32 1.442695, %v3540_v16 }
0x12cf   :  { %v3541_v53 = vsub.f32 %v6684_v18, %v3523_v13 }
0x12d1   :  { %v6740_v12 = vpop.eup %5321  ;;  %v3571_v43 = vmul.f32 1.442695, %v3541_v53 }
0x12d2   :  { %v3584_v26 = vsel %vm199_vm1, %v6740_v12, 0.0  ;;  %v6746_v40 = vpop.eup %5323 }
0x12d3   :  { %5325 = vpow2.f32 %v3571_v43  ;;  %3585 = vadd.xlane.f32.xlu0 %v3584_v26  ;;  %v3602_v36 = vsel %vm199_vm1, %v6746_v40, 0.0 }
0x12d4   :  { %5327 = vpow2.f32 %v3557_v27 }
0x12d6   :  { %v3526_v45 = vpop.xlane.xlu1 %3525 }
0x12d7   :  { %v3542_v18 = vsub.f32 %v6688_v22, %v3526_v45 }
0x12d9   :  { %v6749_v14 = vpop.eup %5325  ;;  %v3573_v39 = vmul.f32 1.442695, %v3542_v18 }
0x12da   :  { %v3617_v38 = vsel %vm199_vm1, %v6749_v14, 0.0  ;;  %v6756_v47 = vpop.eup %5327 }
0x12db   :  { %5329 = vpow2.f32 %v3573_v39  ;;  %3603 = vadd.xlane.f32.xlu0 %v3602_v36  ;;  %3618 = vadd.xlane.f32.xlu2 %v3617_v38  ;;  %v3596_v61 = vsel %vm199_vm1, %v6756_v47, 0.0 }
0x12dc   :  { %5331 = vpow2.f32 %v3569_v49 }
0x12dd   :  { %5333 = vpow2.f32 %v3565_v2 }
0x12e1   :  { %v6758_v22 = vpop.eup %5329 }
0x12e2   :  { %v3620_v33 = vsel %vm199_vm1, %v6758_v22, 0.0  ;;  %v6764_v25 = vpop.eup %5331 }
0x12e3   :  { %3597 = vadd.xlane.f32.xlu0 %v3596_v61  ;;  %3621 = vadd.xlane.f32.xlu2 %v3620_v33  ;;  %v6766_v52 = vpop.eup %5333  ;;  %v3614_v63 = vsel %vm199_vm1, %v6764_v25, 0.0 }
0x12e4   :  { %v3608_v56 = vsel %vm199_vm1, %v6766_v52, 0.0 }
0x12e8   :  { %v3583_v54 = vpop.xlane.xlu2 %3582  ;;  %3615 = vadd.xlane.f32.xlu1 %v3614_v63 }
0x12e9   :  { %5335 = vrcp.f32 %v3583_v54 }
0x12eb   :  { %3609 = vadd.xlane.f32.xlu0 %v3608_v56 }
0x12ef   :  { %v5336_v29 = vpop.eup %5335 }
0x12f0   :  { %v3641_v44 = vmul.f32 %v5336_v29, %v6695_v55 }
0x12f2   :  { %5026 = vmatmul.msk.f32.vlgmr.msra.gmra.mxu2 %vm199_vm1, %v3641_v44 }
0x12f3   :  { %3903 = vmatpush.msra.mxu2 %v5143_v57 }
0x12fb   :  { %3035 = vrot.lane.b32.xlu2 %v6573_v1, %s5402_s26  ;;  %v3042_v1 = vpop.permute.xlu0 %3041 }
0x12ff   :  { %3043 = vrot.lane.b32.xlu0 %v6571_v62, %s5401_s25 }
0x1307   :  { %3037 = vrot.lane.b32.xlu0 %v6571_v62, %s5402_s26 }
0x1308   :  { %v3589_v51 = vpop.xlane.xlu2 %3588 }
0x1309   :  { %5337 = vrcp.f32 %v3589_v51 }
0x130f   :  { %v5338_v5 = vpop.eup %5337 }
0x1310   :  { %v3643_v48 = vmul.f32 %v5338_v5, %v6703_v34  ;;  %v3595_v55 = vpop.xlane.xlu2 %3594 }
0x1311   :  { %5339 = vrcp.f32 %v3595_v55  ;;  %v2888_v55 = vld [vmem:[%s7241_s1 + $0x650] sm:$0xff] }
0x1312   :  { %5028 = vmatmul.msk.f32.vlgmr.msra.gmra.mxu0 %vm199_vm1, %v3643_v48  ;;  %v2889_v48 = vld [vmem:[%s7241_s1 + $0x660] sm:$0xff] }
0x1317   :  { %v5340_v35 = vpop.eup %5339 }
0x1318   :  { %v3645_v23 = vmul.f32 %v5340_v35, %v6708_v31  ;;  %v3607_v7 = vpop.xlane.xlu2 %3606  ;;  %v3601_v41 = vpop.xlane.xlu1 %3600  ;;  %v2887_v35 = vld [vmem:[%s7241_s1 + $0x640] sm:$0xff] }
0x1319   :  { %5341 = vrcp.f32 %v3607_v7  ;;  %v2885_v7 = vld [vmem:[%s7241_s1 + $0x620] sm:$0xff] }
0x131a   :  { %5030 = vmatmul.msk.f32.vlgmr.msrb.gmra.mxu2 %vm199_vm1, %v3645_v23  ;;  %5343 = vrcp.f32 %v3601_v41  ;;  %v2886_v23 = vld [vmem:[%s7241_s1 + $0x630] sm:$0xff] }
0x131b   :  { %3995 = vmatpush.msrb.mxu2 %v3042_v1  ;;  %v2884_v1 = vld [vmem:[%s7241_s1 + $0x610] sm:$0xff] }
0x131c   :  { %v2882_v41 = vld [vmem:[%s7241_s1 + $0x5f0] sm:$0xff] }
0x131f   :  { %v5342_v28 = vpop.eup %5341 }
0x1320   :  { %v3649_v62 = vmul.f32 %v5342_v28, %v6714_v58  ;;  %v5344_v34 = vpop.eup %5343  ;;  %v3613_v31 = vpop.xlane.xlu0 %3612  ;;  %v2883_v28 = vld [vmem:[%s7241_s1 + $0x600] sm:$0xff] }
0x1321   :  { %v3647_v59 = vmul.f32 %v5344_v34, %v6716_v0  ;;  %v5144_v0 = vunpack.i.h.bf16 %v6699_v8 }
0x1322   :  { %5034 = vmatmul.msk.f32.vlgmr.msra.gmra.mxu2 %vm199_vm1, %v3649_v62 }
0x1330   :  { %v5147_v3 = vpop.permute.xlu1 %5146 }
0x1331   :  { %v5149_v32 = vunpack.i.h.bf16 %v5147_v3  ;;  %v5148_v11 = vunpack.i.l.bf16 %v5147_v3 }
0x1333   :  { %3857 = vmatpush.msrb.mxu0 %v5148_v11  ;;  %3880 = vmatpush.msrb.mxu1 %v5149_v32 }
0x1334   :  { %5032 = vmatmul.msk.f32.vlgmr.msrb.gmra.mxu0 %vm199_vm1, %v3647_v59 }
0x133d   :  { %v3675_v2 = vpop.f32.mrf.mxu0 }
0x133e   :  { %v3592_v20 = vpop.xlane.xlu2 %3591 }
0x133f   :  { %5345 = vrcp.f32 %v3592_v20 }
0x1345   :  { %v5346_v17 = vpop.eup %5345 }
0x1346   :  { %v3644_v58 = vmul.f32 %v5346_v17, %v6732_v60  ;;  %v3586_v19 = vpop.xlane.xlu0 %3585 }
0x1347   :  { %5347 = vrcp.f32 %v3586_v19 }
0x1348   :  { %5029 = vmatmul.msk.f32.vlgmr.msra.gmra.mxu1 %vm199_vm1, %v3644_v58 }
0x134d   :  { %v5348_v9 = vpop.eup %5347 }
0x134e   :  { %v3642_v21 = vmul.f32 %v5348_v9, %v6740_v12  ;;  %v3604_v4 = vpop.xlane.xlu0 %3603  ;;  %v3619_v50 = vpop.xlane.xlu2 %3618 }
0x134f   :  { %5349 = vrcp.f32 %v3604_v4 }
0x1350   :  { %5351 = vrcp.f32 %v3619_v50  ;;  %5027 = vmatmul.msk.f32.vlgmr.msra.gmra.mxu3 %vm199_vm1, %v3642_v21 }
0x1351   :  { %3926 = vmatpush.msra.mxu3 %v5144_v0  ;;  %5353 = vrcp.f32 %v3613_v31 }
0x1355   :  { %v5350_v6 = vpop.eup %5349 }
0x1356   :  { %v5352_v13 = vpop.eup %5351  ;;  %v3648_v60 = vmul.f32 %v5350_v6, %v6746_v40  ;;  %v3598_v53 = vpop.xlane.xlu0 %3597 }
0x1357   :  { %v3622_v30 = vpop.xlane.xlu2 %3621  ;;  %v3653_v43 = vmul.f32 %v5352_v13, %v6749_v14  ;;  %5355 = vrcp.f32 %v3598_v53  ;;  %v5354_v8 = vpop.eup %5353 }
0x1358   :  { %5033 = vmatmul.msk.f32.vlgmr.msrb.gmra.mxu1 %vm199_vm1, %v3648_v60  ;;  %v3651_v26 = vmul.f32 %v5354_v8, %v6722_v42 }
0x1359   :  { %5038 = vmatmul.msk.f32.vlgmr.msrb.gmra.mxu2 %vm199_vm1, %v3653_v43 }
0x135b   :  { %v3616_v18 = vpop.xlane.xlu1 %3615 }
0x135d   :  { %v5356_v12 = vpop.eup %5355 }
0x135e   :  { %v3646_v27 = vmul.f32 %v5356_v12, %v6756_v47  ;;  %v3610_v37 = vpop.xlane.xlu0 %3609 }
0x135f   :  { %v3036_v16 = vpop.permute.xlu2 %3035  ;;  %5357 = vrcp.f32 %v3610_v37 }
0x1360   :  { %3949 = vmatpush.msra.mxu0 %v3036_v16  ;;  %5031 = vmatmul.msk.f32.vlgmr.msrb.gmra.mxu3 %vm199_vm1, %v3646_v27  ;;  %5359 = vrcp.f32 %v3622_v30 }
0x1361   :  { %5036 = vmatmul.msk.f32.vlgmr.msra.gmra.mxu0 %vm199_vm1, %v3651_v26  ;;  %5361 = vrcp.f32 %v3616_v18 }
0x1362   :  { %4108 = vmatpush.msrb.mxu0 %v2889_v48  ;;  %v2891_v48 = vld [vmem:[%s7241_s1 + $0x680] sm:$0xff] }
0x1364   :  { %4109 = vmatpush.msrb.mxu0 %v2888_v55 }
0x1365   :  { %v5358_v45 = vpop.eup %5357 }
0x1366   :  { %v3650_v40 = vmul.f32 %v5358_v45, %v6766_v52  ;;  %v5360_v14 = vpop.eup %5359  ;;  %v3698_v52 = vpop.f32.mrf.mxu1  ;;  %4110 = vmatpush.msrb.mxu0 %v2887_v35  ;;  %v6865_v45 = vld [vmem:[%s7241_s1 + $0x670] sm:$0x3f] }
0x1367   :  { %v3654_v42 = vmul.f32 %v5360_v14, %v6758_v22  ;;  %v5362_v49 = vpop.eup %5361 }
0x1368   :  { %5035 = vmatmul.msk.f32.vlgmr.msra.gmra.mxu3 %vm199_vm1, %v3650_v40  ;;  %v3652_v36 = vmul.f32 %v5362_v49, %v6764_v25  ;;  %4111 = vmatpush.msrb.mxu0 %v2886_v23  ;;  %v4093_v40 = vperm.slane %v6865_v45, 0 }
0x136a   :  { %4112 = vmatpush.msrb.mxu0 %v2885_v7 }
0x136c   :  { %4113 = vmatpush.msrb.mxu0 %v2884_v1 }
0x136e   :  { %4114 = vmatpush.msrb.mxu0 %v2883_v28 }
0x1370   :  { %4115 = vmatpush.msrb.mxu0 %v2882_v41 }
0x1371   :  { %v3044_v46 = vpop.permute.xlu0 %3043 }
0x1372   :  { %4018 = vmatpush.msrb.mxu3 %v3044_v46 }
0x1373   :  { %5039 = vmatmul.msk.f32.vlgmr.msrb.gmra.mxu3 %vm199_vm1, %v3654_v42 }
0x1375   :  { %v3721_v39 = vpop.f32.mrf.mxu2 }
0x1376   :  { %4025 = vrot.lane.b32.xlu2 %v3721_v39, %s5403_s27 }
0x1379   :  { %v3038_v38 = vpop.permute.xlu0 %3037 }
0x137a   :  { %3972 = vmatpush.msra.mxu1 %v3038_v38 }
0x137b   :  { %5037 = vmatmul.msk.f32.vlgmr.msra.gmra.mxu1 %vm199_vm1, %v3652_v36 }
0x138f   :  { %v3767_v47 = vpop.f32.mrf.mxu0 }
0x1390   :  { %4033 = vrot.lane.b32.xlu0 %v3767_v47, %s5404_s28 }
0x139d   :  { %v3813_v61 = vpop.f32.mrf.mxu2 }
0x139e   :  { %4041 = vrot.lane.b32.xlu2 %v3813_v61, %s5405_s29 }
0x13a5   :  { %v3905_v22 = vpop.f32.mrf.mxu2 }
0x13a6   :  { %4057 = vrot.lane.b32.xlu1 %v3905_v22, %s5406_s30 }
0x13b1   :  { %v3859_v33 = vpop.f32.mrf.mxu0 }
0x13b2   :  { %4049 = vrot.lane.b32.xlu0 %v3859_v33, %s5407_s3 }
0x13c5   :  { %v3790_v63 = vpop.f32.mrf.mxu1 }
0x13c6   :  { %4035 = vrot.lane.b32.xlu0 %v3790_v63, %s5404_s28 }
0x13d0   :  { %v4026_v3 = vpop.permute.xlu2 %4025 }
0x13d1   :  { %v4079_v59 = vsel %vm199_vm1, %v3675_v2, %v4026_v3  ;;  %v4169_v3 = vperm.slane %v6865_v45, 1 }
0x13d3   :  { %v3744_v54 = vpop.f32.mrf.mxu3 }
0x13d5   :  { %v3882_v25 = vpop.f32.mrf.mxu1 }
0x13d6   :  { %4051 = vrot.lane.b32.xlu0 %v3882_v25, %s5407_s3 }
0x13dc   :  { %v3997_v56 = vpop.f32.mrf.mxu2 }
0x13de   :  { %v3951_v29 = vpop.f32.mrf.mxu0  ;;  %4073 = vrot.lane.b32.xlu0 %v3997_v56, %s5408_s4  ;;  %v2897_v56 = vld [vmem:[%s7241_s1 + $0x6e0] sm:$0xff] }
0x13df   :  { %4065 = vrot.lane.b32.xlu2 %v3951_v29, %s5409_s7  ;;  %v2896_v29 = vld [vmem:[%s7241_s1 + $0x6d0] sm:$0xff] }
0x13e3   :  { %v3836_v44 = vpop.f32.mrf.mxu3 }
0x13e7   :  { %4027 = vrot.lane.b32.xlu2 %v3744_v54, %s5403_s27  ;;  %v2898_v54 = vld [vmem:[%s7241_s1 + $0x6f0] sm:$0xff] }
0x13e8   :  { %4189 = vmatpush.msrb.mxu1 %v2898_v54 }
0x13ea   :  { %4190 = vmatpush.msrb.mxu1 %v2897_v56 }
0x13eb   :  { %v3928_v57 = vpop.f32.mrf.mxu3 }
0x13ec   :  { %4191 = vmatpush.msrb.mxu1 %v2896_v29 }
0x13ef   :  { %4043 = vrot.lane.b32.xlu2 %v3836_v44, %s5405_s29  ;;  %v2895_v44 = vld [vmem:[%s7241_s1 + $0x6c0] sm:$0xff] }
0x13f0   :  { %4192 = vmatpush.msrb.mxu1 %v2895_v44 }
0x13f6   :  { %v4020_v51 = vpop.f32.mrf.mxu3 }
0x13f7   :  { %4059 = vrot.lane.b32.xlu2 %v3928_v57, %s5406_s30  ;;  %4075 = vrot.lane.b32.xlu0 %v4020_v51, %s5408_s4  ;;  %v2894_v57 = vld [vmem:[%s7241_s1 + $0x6b0] sm:$0xff]  ;;  %v2893_v51 = vld [vmem:[%s7241_s1 + $0x6a0] sm:$0xff] }
0x13f8   :  { %v3974_v5 = vpop.f32.mrf.mxu1  ;;  %v4042_v11 = vpop.permute.xlu2 %4041  ;;  %4193 = vmatpush.msrb.mxu1 %v2894_v57 }
0x13f9   :  { %4067 = vrot.lane.b32.xlu1 %v3974_v5, %s5409_s7  ;;  %v2892_v5 = vld [vmem:[%s7241_s1 + $0x690] sm:$0xff] }
0x13fa   :  { %4194 = vmatpush.msrb.mxu1 %v2893_v51 }
0x13fc   :  { %4195 = vmatpush.msrb.mxu1 %v2892_v5 }
0x13fe   :  { %4196 = vmatpush.msrb.mxu1 %v2891_v48 }
0x1402   :  { %v4034_v62 = vpop.permute.xlu0 %4033 }
0x1403   :  { %v4081_v31 = vsel %vm1232_vm2, %v4079_v59, %v4034_v62 }
0x1404   :  { %v4083_v58 = vsel %vm1235_vm3, %v4081_v31, %v4042_v11  ;;  %v4172_v11 = vperm.slane %v6865_v45, 2 }
0x1418   :  { %v4058_v9 = vpop.permute.xlu1 %4057 }
0x1424   :  { %v4050_v34 = vpop.permute.xlu0 %4049 }
0x1425   :  { %v4085_v19 = vsel %vm1238_vm4, %v4083_v58, %v4050_v34 }
0x1426   :  { %v4087_v21 = vsel %vm1241_vm5, %v4085_v19, %v4058_v9  ;;  %v2913_v19 = vld [vmem:[%s7241_s1 + $0x7e0] sm:$0xff] }
0x1438   :  { %v4036_v32 = vpop.permute.xlu0 %4035 }
0x1439   :  { %v4066_v17 = vpop.permute.xlu2 %4065 }
0x143a   :  { %v4089_v4 = vsel %vm1244_vm6, %v4087_v21, %v4066_v17  ;;  %v2914_v17 = vld [vmem:[%s7241_s1 + $0x7f0] sm:$0xff] }
0x1441   :  { %v4028_v6 = vpop.permute.xlu2 %4027 }
0x1442   :  { %v4080_v60 = vsel %vm199_vm1, %v3698_v52, %v4028_v6  ;;  %v2910_v6 = vld [vmem:[%s7241_s1 + $0x7b0] sm:$0xff] }
0x1443   :  { %v4082_v53 = vsel %vm1232_vm2, %v4080_v60, %v4036_v32  ;;  %v2908_v60 = vld [vmem:[%s7241_s1 + $0x790] sm:$0xff] }
0x1448   :  { %v4052_v20 = vpop.permute.xlu0 %4051 }
0x1449   :  { %v4044_v13 = vpop.permute.xlu2 %4043 }
0x144a   :  { %v4084_v30 = vsel %vm1235_vm3, %v4082_v53, %v4044_v13  ;;  %v2909_v13 = vld [vmem:[%s7241_s1 + $0x7a0] sm:$0xff] }
0x144b   :  { %v4086_v8 = vsel %vm1238_vm4, %v4084_v30, %v4052_v20  ;;  %v2915_v20 = vld [vmem:[%s7241_s1 + $0x800] sm:$0xff] }
0x144c   :  { %4207 = vmatpush.msra.mxu2 %v2915_v20  ;;  %v2907_v30 = vld [vmem:[%s7241_s1 + $0x780] sm:$0xff] }
0x144d   :  { %v4284_v20 = vld [vmem:[%s7241_s1 + $0x820] sm:$0xff] }
0x144e   :  { %4208 = vmatpush.msra.mxu2 %v2914_v17  ;;  %v4283_v17 = vld [vmem:[%s7241_s1 + $0x810] sm:$0xff] }
0x1450   :  { %v4074_v50 = vpop.permute.xlu0 %4073  ;;  %4209 = vmatpush.msra.mxu2 %v2913_v19 }
0x1451   :  { %v4091_v0 = vsel %vm1247_vm7, %v4089_v4, %v4074_v50  ;;  %v4060_v43 = vpop.permute.xlu2 %4059  ;;  %v2912_v4 = vld [vmem:[%s7241_s1 + $0x7d0] sm:$0xff] }
0x1452   :  { %5040 = vmatmul.msk.f32.vlgmr.msrb.gmra.mxu0 %vm70_vm0, %v4091_v0  ;;  %v4088_v12 = vsel %vm1241_vm5, %v4086_v8, %v4060_v43  ;;  %v2911_v0 = vld [vmem:[%s7241_s1 + $0x7c0] sm:$0xff]  ;;  %4210 = vmatpush.msra.mxu2 %v2912_v4  ;;  %v2906_v8 = vld [vmem:[%s7241_s1 + $0x770] sm:$0xff] }
0x1454   :  { %4211 = vmatpush.msra.mxu2 %v2911_v0 }
0x1456   :  { %4212 = vmatpush.msra.mxu2 %v2910_v6 }
0x1458   :  { %4213 = vmatpush.msra.mxu2 %v2909_v13 }
0x145a   :  { %4214 = vmatpush.msra.mxu2 %v2908_v60  ;;  %v4276_v60 = vperm.slane %v6865_v45, 4 }
0x145c   :  { %4215 = vmatpush.msra.mxu2 %v2907_v30  ;;  %v4279_v30 = vperm.slane %v6865_v45, 5 }
0x145e   :  { %4216 = vmatpush.msra.mxu2 %v2906_v8 }
0x1469   :  { %v4076_v27 = vpop.permute.xlu0 %4075 }
0x146b   :  { %v4068_v26 = vpop.permute.xlu1 %4067 }
0x146c   :  { %v4090_v37 = vsel %vm1244_vm6, %v4088_v12, %v4068_v26  ;;  %v2905_v26 = vld [vmem:[%s7241_s1 + $0x760] sm:$0xff] }
0x146d   :  { %v4092_v16 = vsel %vm1247_vm7, %v4090_v37, %v4076_v27  ;;  %v2904_v37 = vld [vmem:[%s7241_s1 + $0x750] sm:$0xff]  ;;  %4217 = vmatpush.msra.mxu2 %v2905_v26 }
0x146e   :  { %5041 = vmatmul.msk.f32.gmra.mxu0 %vm70_vm0, %v4092_v16 }
0x146f   :  { %4218 = vmatpush.msra.mxu2 %v2904_v37 }
0x14cf   :  { %v4117_v18 = vpop.f32.mrf.mxu0 }
0x14d0   :  { %v4118_v14 = vadd.f32 %v4117_v18, %v4093_v40 }
0x14d2   :  { %v4123_v42 = vadd.f32 %v4118_v14, %v6517_v24 }
0x14d4   :  { %v4125_v46 = vsel %vm70_vm0, %v4123_v42, 0.0 }
0x14d5   :  { %4126 = vadd.xlane.f32.xlu2 %v4125_v46 }
0x14eb   :  { %v4120_v39 = vpop.f32.mrf.mxu0 }
0x14ec   :  { %v4121_v49 = vadd.f32 %v4120_v39, %v4093_v40  ;;  %v2903_v40 = vld [vmem:[%s7241_s1 + $0x740] sm:$0xff] }
0x14ed   :  { %4219 = vmatpush.msra.mxu2 %v2903_v40 }
0x14ee   :  { %v4124_v36 = vadd.f32 %v4121_v49, %v6525_v10  ;;  %v2902_v49 = vld [vmem:[%s7241_s1 + $0x730] sm:$0xff] }
0x14ef   :  { %4220 = vmatpush.msra.mxu2 %v2902_v49 }
0x14f0   :  { %v4128_v38 = vsel %vm70_vm0, %v4124_v36, 0.0 }
0x14f1   :  { %4129 = vadd.xlane.f32.xlu1 %v4128_v38  ;;  %v2900_v38 = vld [vmem:[%s7241_s1 + $0x710] sm:$0xff] }
0x1548   :  { %v4127_v2 = vpop.xlane.xlu2 %4126 }
0x1549   :  { %v4131_v47 = vmul.f32 %v4127_v2, %v5844_v15  ;;  %v2899_v2 = vld [vmem:[%s7241_s1 + $0x700] ss:$0 sm:$0xff] }
0x154b   :  { %v4133_v61 = vsub.f32 %v4123_v42, %v4131_v47 }
0x154d   :  { %v4135_v22 = vmul.f32 %v4133_v61, %v4133_v61 }
0x154f   :  { %v4137_v33 = vsel %vm70_vm0, %v4135_v22, 0.0 }
0x1550   :  { %4138 = vadd.xlane.f32.xlu0 %v4137_v33 }
0x1564   :  { %v4130_v52 = vpop.xlane.xlu1 %4129 }
0x1565   :  { %v4132_v24 = vmul.f32 %v4130_v52, %v5844_v15 }
0x1567   :  { %v6875_v63 = vsub.f32 %v4124_v36, %v4132_v24  ;;  %v2901_v36 = vld [vmem:[%s7241_s1 + $0x720] sm:$0xff] }
0x1568   :  { %4221 = vmatpush.msra.mxu2 %v2901_v36 }
0x1569   :  { %v4136_v25 = vmul.f32 %v6875_v63, %v6875_v63 }
0x156a   :  { %4222 = vmatpush.msra.mxu2 %v2900_v38 }
0x156b   :  { %v4140_v10 = vsel %vm70_vm0, %v4136_v25, 0.0 }
0x156c   :  { %4141 = vadd.xlane.f32.xlu2 %v4140_v10 }
0x15c3   :  { %v4139_v55 = vpop.xlane.xlu0 %4138 }
0x15c4   :  { %v4143_v35 = vmul.f32 %v4139_v55, %v5844_v15 }
0x15c6   :  { %v4145_v23 = vadd.f32 1e-05, %v4143_v35 }
0x15c8   :  { %5363 = vrsqrt.f32 %v4145_v23  ;;  %vm4153_vm5 = vweird.f32 %v4145_v23 }
0x15ce   :  { %v5364_v7 = vpop.eup %5363 }
0x15cf   :  { %v4148_v1 = vmul.f32 %v5364_v7, %v4145_v23  ;;  %vm4154_vm3 = vweird.f32 %v5364_v7 }
0x15d0   :  { %vm4155_vm6 = vmor %vm4153_vm5, %vm4154_vm3  ;;  %vm4338_vm3 = vcmask 1041409   ;;  %vm4341_vm5 = vcmask 58368  }
0x15d1   :  { %v4149_v28 = vmul.f32 %v5364_v7, %v4148_v1 }
0x15d3   :  { %v4150_v62 = vmul.f32 0.5, %v4149_v28 }
0x15d5   :  { %v4151_v41 = vsub.f32 1.5, %v4150_v62 }
0x15d7   :  { %v4152_v34 = vmul.f32 %v5364_v7, %v4151_v41 }
0x15d9   :  { %v4156_v32 = vsel %vm4155_vm6, %v5364_v7, %v4152_v34  ;;  %v4290_v34 = vld [vmem:[%s7241_s1 + $0x880] sm:$0xff]  ;;  %vm4440_vm6 = vcmask 254976  }
0x15da   :  { %v4167_v59 = vmul.f32 %v4156_v32, %v4133_v61  ;;  %4306 = vmatpush.msra.mxu3 %v4290_v34  ;;  %v4288_v32 = vld [vmem:[%s7241_s1 + $0x860] sm:$0xff] }
0x15dc   :  { %v4170_v31 = vmul.f32 %v4169_v3, %v4167_v59  ;;  %v4286_v59 = vld [vmem:[%s7241_s1 + $0x840] sm:$0xff] }
0x15de   :  { %v4173_v58 = vadd.f32 %v4172_v11, %v4170_v31  ;;  %v4285_v31 = vld [vmem:[%s7241_s1 + $0x830] sm:$0xff] }
0x15df   :  { %v4142_v9 = vpop.xlane.xlu2 %4141 }
0x15e0   :  { %v4144_v21 = vmul.f32 %v4142_v9, %v5844_v15  ;;  %5042 = vmatmul.msk.f32.vlgmr.msrb.gmra.mxu1 %vm70_vm0, %v4173_v58 }
0x15e2   :  { %v4146_v50 = vadd.f32 1e-05, %v4144_v21 }
0x15e4   :  { %5365 = vrsqrt.f32 %v4146_v50  ;;  %vm4163_vm9 = vweird.f32 %v4146_v50 }
0x15ea   :  { %v5366_v53 = vpop.eup %5365 }
0x15eb   :  { %v4158_v43 = vmul.f32 %v5366_v53, %v4146_v50  ;;  %vm4164_vm7 = vweird.f32 %v5366_v53 }
0x15ec   :  { %vm4165_vm10 = vmor %vm4163_vm9, %vm4164_vm7 }
0x15ed   :  { %v4159_v12 = vmul.f32 %v5366_v53, %v4158_v43 }
0x15ef   :  { %v4160_v27 = vmul.f32 0.5, %v4159_v12 }
0x15f1   :  { %v4161_v16 = vsub.f32 1.5, %v4160_v27 }
0x15f3   :  { %v4162_v18 = vmul.f32 %v5366_v53, %v4161_v16 }
0x15f5   :  { %v4166_v14 = vsel %vm4165_vm10, %v5366_v53, %v4162_v18 }
0x15f6   :  { %v4168_v42 = vmul.f32 %v4166_v14, %v6875_v63  ;;  %v4206_v63 = vperm.slane %v6865_v45, 3 }
0x15f8   :  { %v4171_v46 = vmul.f32 %v4169_v3, %v4168_v42  ;;  %v4289_v3 = vld [vmem:[%s7241_s1 + $0x870] sm:$0xff] }
0x15f9   :  { %4307 = vmatpush.msra.mxu3 %v4289_v3 }
0x15fa   :  { %v4174_v39 = vadd.f32 %v4172_v11, %v4171_v46  ;;  %v4287_v11 = vld [vmem:[%s7241_s1 + $0x850] sm:$0xff] }
0x15fb   :  { %4308 = vmatpush.msra.mxu3 %v4288_v32 }
0x15fc   :  { %5043 = vmatmul.msk.f32.gmra.mxu1 %vm70_vm0, %v4174_v39 }
0x15fd   :  { %4309 = vmatpush.msra.mxu3 %v4287_v11 }
0x15ff   :  { %4310 = vmatpush.msra.mxu3 %v4286_v59 }
0x1601   :  { %4311 = vmatpush.msra.mxu3 %v4285_v31 }
0x1603   :  { %4312 = vmatpush.msra.mxu3 %v4284_v20 }
0x1605   :  { %4313 = vmatpush.msra.mxu3 %v4283_v17 }
0x165d   :  { %v4198_v47 = vpop.f32.mrf.mxu1 }
0x165e   :  { %v4199_v61 = vadd.f32 %v4198_v47, %v2899_v2 }
0x1660   :  { %v4204_v22 = vmax.f32 %v4199_v61, 0.0 }
0x1662   :  { %4223 = vmatmul.f32.vlgmr.msra.gmra.mxu2 %v4204_v22 }
0x1679   :  { %v4201_v33 = vpop.f32.mrf.mxu1 }
0x167a   :  { %v4202_v52 = vadd.f32 %v4201_v33, %v2899_v2 }
0x167c   :  { %v4205_v24 = vmax.f32 %v4202_v52, 0.0 }
0x167e   :  { %4226 = vmatmul.f32.gmra.mxu2 %v4205_v24 }
0x16e5   :  { %v4224_v25 = vpop.f32.mrf.mxu2 }
0x16e6   :  { %v4225_v10 = vadd.f32 %v4224_v25, %v4206_v63 }
0x16e8   :  { %v4230_v54 = vadd.f32 %v4225_v10, %v4173_v58 }
0x16ea   :  { %v4232_v56 = vsel %vm70_vm0, %v4230_v54, 0.0 }
0x16eb   :  { %4233 = vadd.xlane.f32.xlu1 %v4232_v56  ;;  %v4334_v56 = vlaneseq }
0x1701   :  { %v4227_v29 = vpop.f32.mrf.mxu2 }
0x1702   :  { %v4228_v44 = vadd.f32 %v4227_v29, %v4206_v63  ;;  %v4335_v29 = vand.u32 127, %v4334_v56 }
0x1704   :  { %v4231_v57 = vadd.f32 %v4228_v44, %v4174_v39 }
0x1706   :  { %v4235_v51 = vsel %vm70_vm0, %v4231_v57, 0.0 }
0x1707   :  { %4236 = vadd.xlane.f32.xlu0 %v4235_v51 }
0x175e   :  { %v4234_v5 = vpop.xlane.xlu1 %4233 }
0x175f   :  { %v4238_v48 = vmul.f32 %v4234_v5, %v5844_v15 }
0x1761   :  { %v4240_v55 = vsub.f32 %v4230_v54, %v4238_v48 }
0x1763   :  { %v4242_v35 = vmul.f32 %v4240_v55, %v4240_v55 }
0x1765   :  { %v4244_v23 = vsel %vm70_vm0, %v4242_v35, 0.0  ;;  %v5411_v35 = vmov 0  }
0x1766   :  { %4245 = vadd.xlane.f32.xlu2 %v4244_v23  ;;  %5150 = vset.pattern.permute.xlu0 %v5411_v35 }
0x1767   :  { %5151 = vset.pattern.permute.xlu2 %v5411_v35  ;;  %5152 = vset.pattern.permute.xlu1 %v5411_v35 }
0x177a   :  { %v4237_v7 = vpop.xlane.xlu0 %4236 }
0x177b   :  { %v4239_v1 = vmul.f32 %v4237_v7, %v5844_v15 }
0x177d   :  { %v4241_v28 = vsub.f32 %v4231_v57, %v4239_v1 }
0x177f   :  { %v4243_v62 = vmul.f32 %v4241_v28, %v4241_v28 }
0x1781   :  { %v4247_v41 = vsel %vm70_vm0, %v4243_v62, 0.0 }
0x1782   :  { %4248 = vadd.xlane.f32.xlu1 %v4247_v41 }
0x17d9   :  { %v4246_v58 = vpop.xlane.xlu2 %4245 }
0x17da   :  { %v4250_v19 = vmul.f32 %v4246_v58, %v5844_v15 }
0x17dc   :  { %v4252_v9 = vadd.f32 1e-05, %v4250_v19 }
0x17de   :  { %5367 = vrsqrt.f32 %v4252_v9  ;;  %vm4260_vm12 = vweird.f32 %v4252_v9 }
0x17e4   :  { %v5368_v21 = vpop.eup %5367 }
0x17e5   :  { %v4255_v4 = vmul.f32 %v5368_v21, %v4252_v9  ;;  %vm4261_vm11 = vweird.f32 %v5368_v21 }
0x17e6   :  { %vm4262_vm13 = vmor %vm4260_vm12, %vm4261_vm11 }
0x17e7   :  { %v4256_v50 = vmul.f32 %v5368_v21, %v4255_v4 }
0x17e9   :  { %v4257_v0 = vmul.f32 0.5, %v4256_v50 }
0x17eb   :  { %v4258_v6 = vsub.f32 1.5, %v4257_v0 }
0x17ed   :  { %v4259_v13 = vmul.f32 %v5368_v21, %v4258_v6  ;;  %v4413_v6 = vld [vmem:[%s7241_s1 + $0x910] sm:$0xff] }
0x17ee   :  { %4428 = vmatpush.msra.mxu0 %v4413_v6 }
0x17ef   :  { %v4263_v53 = vsel %vm4262_vm13, %v5368_v21, %v4259_v13  ;;  %v4412_v13 = vld [vmem:[%s7241_s1 + $0x900] sm:$0xff] }
0x17f0   :  { %v4274_v43 = vmul.f32 %v4263_v53, %v4240_v55  ;;  %4429 = vmatpush.msra.mxu0 %v4412_v13  ;;  %v4410_v53 = vld [vmem:[%s7241_s1 + $0x8e0] sm:$0xff] }
0x17f2   :  { %v4277_v8 = vmul.f32 %v4276_v60, %v4274_v43  ;;  %v4408_v43 = vld [vmem:[%s7241_s1 + $0x8c0] sm:$0xff] }
0x17f4   :  { %v6996_v12 = vadd.f32 %v4279_v30, %v4277_v8  ;;  %v4407_v8 = vld [vmem:[%s7241_s1 + $0x8b0] sm:$0xff] }
0x17f5   :  { %v4249_v26 = vpop.xlane.xlu1 %4248 }
0x17f6   :  { %v4251_v27 = vmul.f32 %v4249_v26, %v5844_v15  ;;  %5044 = vmatmul.msk.f32.vlgmr.msra.gmra.mxu3 %vm70_vm0, %v6996_v12  ;;  %v4282_v15 = vld [vmem:[%s7241_s1 + $0x890] sm:$0x3]  ;;  %v4406_v26 = vld [vmem:[%s7241_s1 + $0x8a0] sm:$0xff] }
0x17f7   :  { %v4291_v38 = vperm.slane %v4282_v15, 0  ;;  %v4323_v61 = vperm.slane %v4282_v15, 1 }
0x17f8   :  { %v4253_v37 = vadd.f32 1e-05, %v4251_v27 }
0x17fa   :  { %5369 = vrsqrt.f32 %v4253_v37  ;;  %vm4270_vm15 = vweird.f32 %v4253_v37 }
0x1800   :  { %v5370_v16 = vpop.eup %5369 }
0x1801   :  { %v4265_v40 = vmul.f32 %v5370_v16, %v4253_v37  ;;  %vm4271_vm14 = vweird.f32 %v5370_v16 }
0x1802   :  { %vm4272_vm8 = vmor %vm4270_vm15, %vm4271_vm14 }
0x1803   :  { %v4266_v18 = vmul.f32 %v5370_v16, %v4265_v40 }
0x1805   :  { %v4267_v14 = vmul.f32 0.5, %v4266_v18 }
0x1807   :  { %v4268_v42 = vsub.f32 1.5, %v4267_v14 }
0x1809   :  { %v4269_v46 = vmul.f32 %v5370_v16, %v4268_v42 }
0x180b   :  { %v4273_v45 = vsel %vm4272_vm8, %v5370_v16, %v4269_v46 }
0x180c   :  { %v4275_v39 = vmul.f32 %v4273_v45, %v4241_v28 }
0x180e   :  { %v4278_v49 = vmul.f32 %v4276_v60, %v4275_v39  ;;  %v4411_v60 = vld [vmem:[%s7241_s1 + $0x8f0] sm:$0xff] }
0x180f   :  { %4430 = vmatpush.msra.mxu0 %v4411_v60 }
0x1810   :  { %v7001_v36 = vadd.f32 %v4279_v30, %v4278_v49  ;;  %v4409_v30 = vld [vmem:[%s7241_s1 + $0x8d0] sm:$0xff] }
0x1811   :  { %4431 = vmatpush.msra.mxu0 %v4410_v53 }
0x1812   :  { %5045 = vmatmul.msk.f32.gmra.mxu3 %vm70_vm0, %v7001_v36 }
0x1813   :  { %4432 = vmatpush.msra.mxu0 %v4409_v30 }
0x1815   :  { %4433 = vmatpush.msra.mxu0 %v4408_v43 }
0x1817   :  { %4434 = vmatpush.msra.mxu0 %v4407_v8 }
0x1819   :  { %4435 = vmatpush.msra.mxu0 %v4406_v26 }
0x1879   :  { %v4315_v2 = vpop.f32.mrf.mxu3 }
0x187a   :  { %v4316_v47 = vadd.f32 %v4315_v2, %v4291_v38 }
0x187c   :  { %5371 = vtanh.f32 %v4316_v47 }
0x1882   :  { %v5372_v22 = vpop.eup %5371 }
0x1883   :  { %v4324_v33 = vmul.f32 %v5372_v22, %v4323_v61 }
0x1885   :  { %v4326_v52 = vsel %vm1238_vm4, %v4324_v33, 0.0 }
0x1886   :  { %4327 = vadd.xlane.f32.xlu0 %v4326_v52 }
0x1895   :  { %v4318_v24 = vpop.f32.mrf.mxu3 }
0x1896   :  { %v4319_v63 = vadd.f32 %v4318_v24, %v4291_v38 }
0x1898   :  { %5373 = vtanh.f32 %v4319_v63 }
0x189e   :  { %v5374_v25 = vpop.eup %5373 }
0x189f   :  { %v4325_v10 = vmul.f32 %v5374_v25, %v4323_v61 }
0x18a1   :  { %v4329_v54 = vsel %vm1238_vm4, %v4325_v10, 0.0  ;;  %v5412_v10 = vmov 32.0  }
0x18a2   :  { %4330 = vadd.xlane.f32.xlu2 %v4329_v54 }
0x18f9   :  { %v4328_v44 = vpop.xlane.xlu0 %4327 }
0x18fa   :  { %v4336_v51 = vperm.slane %v4328_v44, %v4335_v29 }
0x1915   :  { %v4331_v57 = vpop.xlane.xlu2 %4330 }
0x1916   :  { %v4337_v5 = vperm.slane %v4331_v57, %v4335_v29 }
0x1918   :  { %v4339_v48 = vsel %vm4338_vm3, %v4337_v5, %v4336_v51 }
0x1919   :  { %v4342_v55 = vsel %vm4341_vm5, %v4339_v48, -inf }
0x191a   :  { %4343 = vmax.xlane.f32.xlu1 %v4342_v55 }
0x198d   :  { %v4344_v23 = vpop.xlane.xlu1 %4343 }
0x198e   :  { %v4346_v7 = vperm.slane %v4344_v23, 0  ;;  %v4347_v1 = vperm.slane %v4344_v23, 1 }
0x1990   :  { %v4350_v28 = vsub.f32 %v4328_v44, %v4346_v7  ;;  %v4351_v62 = vsub.f32 %v4331_v57, %v4347_v1  ;;  %v4478_v7 = vld [vmem:[%s7241_s1 + $0x960] sm:$0xff]  ;;  %v4477_v1 = vld [vmem:[%s7241_s1 + $0x950] sm:$0xff] }
0x1991   :  { %4495 = vmatpush.msra.mxu1 %v4478_v7 }
0x1992   :  { %v4352_v41 = vmul.f32 1.442695, %v4350_v28  ;;  %v4354_v34 = vmul.f32 1.442695, %v4351_v62  ;;  %v4476_v28 = vld [vmem:[%s7241_s1 + $0x940] sm:$0xff]  ;;  %v4475_v62 = vld [vmem:[%s7241_s1 + $0x930] sm:$0xff] }
0x1993   :  { %4496 = vmatpush.msra.mxu1 %v4477_v1 }
0x1994   :  { %5375 = vpow2.f32 %v4352_v41 }
0x1995   :  { %5377 = vpow2.f32 %v4354_v34  ;;  %4497 = vmatpush.msra.mxu1 %v4476_v28  ;;  %v7132_v28 = vld [vmem:[%s7241_s1 + $0xa60] sm:$0x1f] }
0x1997   :  { %4498 = vmatpush.msra.mxu1 %v4475_v62 }
0x199a   :  { %v5376_v3 = vpop.eup %5375 }
0x199b   :  { %v5378_v32 = vpop.eup %5377  ;;  %4359 = vperm.xlu0 %5150, %v5376_v3  }
0x199c   :  { %4362 = vperm.xlu2 %5151, %v5378_v32  }
0x19f6   :  { %v4363_v11 = vpop.permute.xlu2 %4362 }
0x19f7   :  { %v4365_v31 = vperm.slane %v4363_v11, %v4335_v29 }
0x1a0d   :  { %v4360_v59 = vpop.permute.xlu0 %4359 }
0x1a0e   :  { %v4364_v20 = vperm.slane %v4360_v59, %v4335_v29 }
0x1a10   :  { %v4366_v17 = vsel %vm4338_vm3, %v4365_v31, %v4364_v20 }
0x1a11   :  { %v4368_v58 = vsel %vm4341_vm5, %v4366_v17, 0.0 }
0x1a12   :  { %4369 = vadd.xlane.f32.xlu1 %v4368_v58 }
0x1a85   :  { %v4370_v19 = vpop.xlane.xlu1 %4369 }
0x1a86   :  { %5379 = vrcp.f32 %v4370_v19 }
0x1a87   :  { %5381 = vrcp.f32 %v5412_v10 }
0x1a8c   :  { %v5380_v9 = vpop.eup %5379 }
0x1a8d   :  { %v4373_v21 = vperm.slane %v5380_v9, 0  ;;  %v4374_v4 = vperm.slane %v5380_v9, 1  ;;  %v5382_v54 = vpop.eup %5381 }
0x1a8e   :  { %v4445_v56 = vmul.f32 32.0, %v5382_v54 }
0x1a8f   :  { %v4378_v50 = vmul.f32 %v5378_v32, %v4374_v4  ;;  %v4377_v0 = vmul.f32 %v5376_v3, %v4373_v21 }
0x1a90   :  { %v4446_v29 = vsub.f32 1.0, %v4445_v56 }
0x1a91   :  { %4386 = vperm.xlu2 %5151, %v4378_v50   ;;  %4381 = vperm.xlu1 %5152, %v4377_v0  }
0x1a92   :  { %v4447_v44 = vmul.f32 %v5382_v54, %v4446_v29 }
0x1a94   :  { %v4448_v57 = vadd.f32 %v5382_v54, %v4447_v44 }
0x1aeb   :  { %v4387_v27 = vpop.permute.xlu2 %4386 }
0x1aec   :  { %v4390_v37 = vmul.f32 %v4387_v27, %v7001_v36 }
0x1aee   :  { %v4398_v16 = vsel %vm70_vm0, %v4390_v37, 0.0  ;;  %v4534_v37 = vld [vmem:[%s7241_s1 + $0x9a0] sm:$0xff] }
0x1aef   :  { %v4399_v40 = vrot.slane %v4398_v16, 4  ;;  %4551 = vmatpush.msrb.mxu3 %v4534_v37  ;;  %v4803_v37 = vld [vmem:[%s7241_s1 + $0xb30] sm:$0xff] }
0x1af1   :  { %v4400_v18 = vadd.f32 %v4399_v40, %v4398_v16  ;;  %v4753_v16 = vld [vmem:[%s7241_s1 + $0xb00] sm:$0xff]  ;;  %v4533_v40 = vld [vmem:[%s7241_s1 + $0x990] sm:$0xff] }
0x1af2   :  { %4767 = vmatpush.msrb.mxu2 %v4753_v16  ;;  %4552 = vmatpush.msrb.mxu3 %v4533_v40  ;;  %v4586_v16 = vld [vmem:[%s7241_s1 + $0x9c0] sm:$0xff] }
0x1af3   :  { %v4401_v46 = vrot.slane %v4400_v18, 2  ;;  %v4802_v40 = vld [vmem:[%s7241_s1 + $0xb20] sm:$0xff] }
0x1af5   :  { %v4402_v49 = vadd.f32 %v4401_v46, %v4400_v18  ;;  %v4752_v18 = vld [vmem:[%s7241_s1 + $0xaf0] sm:$0xff] }
0x1af6   :  { %4768 = vmatpush.msrb.mxu2 %v4752_v18  ;;  %v4531_v46 = vld [vmem:[%s7241_s1 + $0x970] sm:$0xff] }
0x1af7   :  { %v4403_v2 = vrot.slane %v4402_v49, 1 }
0x1af9   :  { %v4404_v22 = vadd.f32 %v4403_v2, %v4402_v49  ;;  %v4644_v49 = vld [vmem:[%s7241_s1 + $0xa40] sm:$0xff]  ;;  %v4643_v2 = vld [vmem:[%s7241_s1 + $0xa30] sm:$0xff] }
0x1b03   :  { %v4382_v14 = vpop.permute.xlu1 %4381 }
0x1b04   :  { %v4389_v42 = vmul.f32 %v4382_v14, %v6996_v12  ;;  %v7047_v12 = vld [vmem:[%s7241_s1 + $0x920] sm:$0x3f] }
0x1b05   :  { %v4414_v52 = vperm.slane %v7047_v12, 0  ;;  %v4470_v58 = vperm.slane %v7047_v12, 1  ;;  %v4472_v9 = vperm.slane %v7047_v12, 2  ;;  %v4479_v6 = vperm.slane %v7047_v12, 3  ;;  %v4532_v14 = vld [vmem:[%s7241_s1 + $0x980] sm:$0xff] }
0x1b06   :  { %v4391_v45 = vsel %vm70_vm0, %v4389_v42, 0.0  ;;  %v4751_v42 = vld [vmem:[%s7241_s1 + $0xae0] sm:$0xff]  ;;  %4553 = vmatpush.msrb.mxu3 %v4532_v14 }
0x1b07   :  { %v4392_v39 = vrot.slane %v4391_v45, 4  ;;  %4769 = vmatpush.msrb.mxu2 %v4751_v42  ;;  %v4697_v42 = vld [vmem:[%s7241_s1 + $0xaa0] sm:$0xff] }
0x1b08   :  { %4554 = vmatpush.msrb.mxu3 %v4531_v46 }
0x1b09   :  { %v4393_v15 = vadd.f32 %v4392_v39, %v4391_v45  ;;  %v4750_v45 = vld [vmem:[%s7241_s1 + $0xad0] sm:$0xff] }
0x1b0a   :  { %4770 = vmatpush.msrb.mxu2 %v4750_v45  ;;  %v4645_v39 = vld [vmem:[%s7241_s1 + $0xa50] sm:$0xff] }
0x1b0b   :  { %v4394_v38 = vrot.slane %v4393_v15, 2  ;;  %4659 = vmatpush.msra.mxu3 %v4645_v39  ;;  %v4696_v39 = vld [vmem:[%s7241_s1 + $0xa90] sm:$0xff] }
0x1b0d   :  { %v4395_v47 = vadd.f32 %v4394_v38, %v4393_v15  ;;  %4660 = vmatpush.msra.mxu3 %v4644_v49 }
0x1b0f   :  { %v4396_v61 = vrot.slane %v4395_v47, 1  ;;  %4661 = vmatpush.msra.mxu3 %v4643_v2  ;;  %v4694_v2 = vld [vmem:[%s7241_s1 + $0xa70] sm:$0xff] }
0x1b11   :  { %v4397_v33 = vadd.f32 %v4396_v61, %v4395_v47  ;;  %v4642_v61 = vld [vmem:[%s7241_s1 + $0xa20] sm:$0xff] }
0x1b12   :  { %4662 = vmatpush.msra.mxu3 %v4642_v61 }
0x1b13   :  { %v4417_v36 = vsel %vm4338_vm3, %v4404_v22, %v4397_v33 }
0x1b14   :  { %5046 = vmatmul.msk.f32.vlgmr.msra.gmra.mxu0 %vm70_vm0, %v4417_v36  ;;  %vm4449_vm0 = vweird.f32 %v5382_v54 }
0x1b15   :  { %v7051_v51 = vsel %vm4449_vm0, %v5382_v54, %v4448_v57  ;;  %v4527_v54 = vperm.slane %v7047_v12, 5 }
0x1b91   :  { %v4437_v24 = vpop.f32.mrf.mxu0 }
0x1b92   :  { %v4438_v63 = vadd.f32 %v4437_v24, %v4414_v52 }
0x1b94   :  { %v4441_v25 = vsel %vm4440_vm6, %v4438_v63, 0.0 }
0x1b95   :  { %4442 = vadd.xlane.f32.xlu2 %v4441_v25  ;;  %v4525_v25 = vperm.slane %v7047_v12, 4 }
0x1c08   :  { %v4443_v5 = vpop.xlane.xlu2 %4442 }
0x1c09   :  { %v4451_v48 = vmul.f32 %v7051_v51, %v4443_v5  ;;  %v7120_v5 = vld [vmem:[%s7241_s1 + $0x9b0] sm:$0x1f] }
0x1c0a   :  { %v4535_v12 = vperm.slane %v7120_v5, 0 }
0x1c0b   :  { %v4452_v55 = vsub.f32 %v4438_v63, %v4451_v48  ;;  %v7125_v48 = vld [vmem:[%s7241_s1 + $0xb10] sm:$0x1f] }
0x1c0d   :  { %v4453_v35 = vmul.f32 %v4452_v55, %v4452_v55 }
0x1c0f   :  { %v4454_v23 = vsel %vm4440_vm6, %v4453_v35, 0.0 }
0x1c10   :  { %4455 = vadd.xlane.f32.xlu1 %v4454_v23 }
0x1c83   :  { %v4456_v41 = vpop.xlane.xlu1 %4455 }
0x1c84   :  { %v4457_v34 = vmul.f32 %v4456_v41, %v7051_v51 }
0x1c86   :  { %v4458_v3 = vadd.f32 1e-05, %v4457_v34  ;;  %v4646_v34 = vperm.slane %v7132_v28, 0 }
0x1c88   :  { %5383 = vrsqrt.f32 %v4458_v3  ;;  %vm4465_vm9 = vweird.f32 %v4458_v3 }
0x1c8e   :  { %v5384_v32 = vpop.eup %5383 }
0x1c8f   :  { %v4460_v11 = vmul.f32 %v5384_v32, %v4458_v3  ;;  %vm4466_vm7 = vweird.f32 %v5384_v32 }
0x1c90   :  { %vm4467_vm10 = vmor %vm4465_vm9, %vm4466_vm7 }
0x1c91   :  { %v4461_v59 = vmul.f32 %v5384_v32, %v4460_v11 }
0x1c93   :  { %v4462_v31 = vmul.f32 0.5, %v4461_v59 }
0x1c95   :  { %v4463_v20 = vsub.f32 1.5, %v4462_v31 }
0x1c97   :  { %v4464_v17 = vmul.f32 %v5384_v32, %v4463_v20 }
0x1c99   :  { %v4468_v19 = vsel %vm4467_vm10, %v5384_v32, %v4464_v17 }
0x1c9a   :  { %v4469_v21 = vmul.f32 %v4468_v19, %v4452_v55  ;;  %v4754_v55 = vperm.slane %v7125_v48, 0 }
0x1c9c   :  { %v4471_v4 = vmul.f32 %v4470_v58, %v4469_v21 }
0x1c9e   :  { %v4473_v50 = vadd.f32 %v4472_v9, %v4471_v4 }
0x1ca0   :  { %v4474_v0 = vmax.f32 %v4473_v50, 0.0 }
0x1ca2   :  { %5047 = vmatmul.msk.f32.vlgmr.msra.gmra.mxu1 %vm1238_vm4, %v4474_v0 }
0x1d1f   :  { %v4500_v13 = vpop.f32.mrf.mxu1 }
0x1d20   :  { %v4501_v60 = vadd.f32 %v4500_v13, %v4479_v6 }
0x1d22   :  { %v4503_v53 = vsel %vm4440_vm6, %v4501_v60, 0.0 }
0x1d23   :  { %4504 = vadd.xlane.f32.xlu0 %v4503_v53 }
0x1d96   :  { %v4505_v30 = vpop.xlane.xlu0 %4504 }
0x1d97   :  { %v4506_v43 = vmul.f32 %v4505_v30, %v7051_v51  ;;  %v4589_v30 = vld [vmem:[%s7241_s1 + $0x9f0] sm:$0xff] }
0x1d98   :  { %4606 = vmatpush.msrb.mxu0 %v4589_v30  ;;  %v4616_v30 = vld [vmem:[%s7241_s1 + $0xa10] sm:$0xff] }
0x1d99   :  { %v4507_v8 = vsub.f32 %v4501_v60, %v4506_v43  ;;  %v4805_v43 = vld [vmem:[%s7241_s1 + $0xb50] sm:$0xff]  ;;  %4635 = vmatpush.msrb.mxu1 %v4616_v30 }
0x1d9b   :  { %v4508_v26 = vmul.f32 %v4507_v8, %v4507_v8 }
0x1d9d   :  { %v4509_v27 = vsel %vm4440_vm6, %v4508_v26, 0.0  ;;  %v4804_v26 = vld [vmem:[%s7241_s1 + $0xb40] sm:$0xff] }
0x1d9e   :  { %4510 = vadd.xlane.f32.xlu2 %v4509_v27  ;;  %v4587_v27 = vld [vmem:[%s7241_s1 + $0x9d0] sm:$0xff] }
0x1e11   :  { %v4511_v15 = vpop.xlane.xlu2 %4510 }
0x1e12   :  { %v4512_v38 = vmul.f32 %v4511_v15, %v7051_v51 }
0x1e14   :  { %v4513_v47 = vadd.f32 1e-05, %v4512_v38  ;;  %v4695_v38 = vld [vmem:[%s7241_s1 + $0xa80] sm:$0xff] }
0x1e16   :  { %5385 = vrsqrt.f32 %v4513_v47  ;;  %vm4520_vm12 = vweird.f32 %v4513_v47 }
0x1e1c   :  { %v5386_v22 = vpop.eup %5385 }
0x1e1d   :  { %v4515_v33 = vmul.f32 %v5386_v22, %v4513_v47  ;;  %vm4521_vm11 = vweird.f32 %v5386_v22 }
0x1e1e   :  { %vm4522_vm13 = vmor %vm4520_vm12, %vm4521_vm11 }
0x1e1f   :  { %v4516_v36 = vmul.f32 %v5386_v22, %v4515_v33 }
0x1e21   :  { %v4517_v52 = vmul.f32 0.5, %v4516_v36 }
0x1e23   :  { %v4518_v24 = vsub.f32 1.5, %v4517_v52 }
0x1e25   :  { %v4519_v63 = vmul.f32 %v5386_v22, %v4518_v24 }
0x1e27   :  { %v4523_v10 = vsel %vm4522_vm13, %v5386_v22, %v4519_v63 }
0x1e28   :  { %v4524_v56 = vmul.f32 %v4523_v10, %v4507_v8  ;;  %v4588_v8 = vld [vmem:[%s7241_s1 + $0x9e0] sm:$0xff] }
0x1e29   :  { %4607 = vmatpush.msrb.mxu0 %v4588_v8  ;;  %v4724_v8 = vld [vmem:[%s7241_s1 + $0xac0] sm:$0xff] }
0x1e2a   :  { %v4526_v29 = vmul.f32 %v4525_v25, %v4524_v56 }
0x1e2b   :  { %4608 = vmatpush.msrb.mxu0 %v4587_v27  ;;  %v4723_v27 = vld [vmem:[%s7241_s1 + $0xab0] sm:$0xff] }
0x1e2c   :  { %v4528_v44 = vadd.f32 %v4527_v54, %v4526_v29 }
0x1e2d   :  { %4609 = vmatpush.msrb.mxu0 %v4586_v16 }
0x1e2e   :  { %v4529_v57 = vmax.f32 %v4528_v44, 0.0 }
0x1e2f   :  { %4714 = vmatpush.msra.mxu0 %v4697_v42 }
0x1e30   :  { %5048 = vmatmul.msk.f32.vlgmr.msrb.gmra.mxu3 %vm1238_vm4, %v4529_v57  ;;  %5054 = vmatmul.msk.f32.vlgmr.msrb.gmra.mxu2 %vm1238_vm4, %v4529_v57 }
0x1e31   :  { %4822 = vmatpush.msrb.mxu3 %v4805_v43  ;;  %4715 = vmatpush.msra.mxu0 %v4696_v39  ;;  %v4615_v43 = vld [vmem:[%s7241_s1 + $0xa00] sm:$0xff] }
0x1e32   :  { %4636 = vmatpush.msrb.mxu1 %v4615_v43 }
0x1e33   :  { %4823 = vmatpush.msrb.mxu3 %v4804_v26  ;;  %4716 = vmatpush.msra.mxu0 %v4695_v38  ;;  %v4831_v26 = vld [vmem:[%s7241_s1 + $0xb60] sm:$0xff] }
0x1e34   :  { %4743 = vmatpush.msra.mxu1 %v4724_v8 }
0x1e35   :  { %4824 = vmatpush.msrb.mxu3 %v4803_v37  ;;  %4717 = vmatpush.msra.mxu0 %v4694_v2  ;;  %v4590_v37 = vperm.slane %v7120_v5, 3 }
0x1e36   :  { %4744 = vmatpush.msra.mxu1 %v4723_v27 }
0x1e37   :  { %4825 = vmatpush.msrb.mxu3 %v4802_v40 }
0x1e38   :  { %5051 = vmatmul.msk.f32.vlgmr.msra.gmra.mxu3 %vm1238_vm4, %v4529_v57 }
0x1eb3   :  { %v4556_v35 = vpop.f32.mrf.mxu3  ;;  %v4772_v23 = vpop.f32.mrf.mxu2 }
0x1eb4   :  { %v4557_v7 = vadd.f32 %v4556_v35, %v4535_v12  ;;  %v4773_v1 = vadd.f32 %v4772_v23, %v4754_v55  ;;  %v4581_v23 = vperm.slane %v7120_v5, 1 }
0x1eb6   :  { %v4775_v62 = vsel %vm4440_vm6, %v4773_v1, 0.0  ;;  %v4559_v41 = vsel %vm4440_vm6, %v4557_v7, 0.0 }
0x1eb7   :  { %4776 = vadd.xlane.f32.xlu0 %v4775_v62  ;;  %4560 = vadd.xlane.f32.xlu1 %v4559_v41 }
0x1ebb   :  { %v4664_v3 = vpop.f32.mrf.mxu3 }
0x1ebc   :  { %v4665_v32 = vadd.f32 %v4664_v3, %v4646_v34  ;;  %v4583_v34 = vperm.slane %v7120_v5, 2 }
0x1ebe   :  { %v4667_v11 = vsel %vm4440_vm6, %v4665_v32, 0.0 }
0x1ebf   :  { %4668 = vadd.xlane.f32.xlu2 %v4667_v11 }
0x1f2a   :  { %v4777_v59 = vpop.xlane.xlu0 %4776  ;;  %v4561_v31 = vpop.xlane.xlu1 %4560 }
0x1f2b   :  { %v4778_v20 = vmul.f32 %v4777_v59, %v7051_v51  ;;  %v4562_v17 = vmul.f32 %v4561_v31, %v7051_v51 }
0x1f2d   :  { %v7140_v58 = vsub.f32 %v4773_v1, %v4778_v20  ;;  %v7142_v19 = vsub.f32 %v4557_v7, %v4562_v17  ;;  %v4799_v1 = vperm.slane %v7125_v48, 2 }
0x1f2f   :  { %v4780_v9 = vmul.f32 %v7140_v58, %v7140_v58  ;;  %v4564_v21 = vmul.f32 %v7142_v19, %v7142_v19 }
0x1f31   :  { %v4781_v4 = vsel %vm4440_vm6, %v4780_v9, 0.0  ;;  %v4565_v50 = vsel %vm4440_vm6, %v4564_v21, 0.0 }
0x1f32   :  { %4782 = vadd.xlane.f32.xlu0 %v4781_v4  ;;  %v4669_v0 = vpop.xlane.xlu2 %4668  ;;  %4566 = vadd.xlane.f32.xlu1 %v4565_v50  ;;  %v4689_v4 = vperm.slane %v7132_v28, 1 }
0x1f33   :  { %v4670_v6 = vmul.f32 %v4669_v0, %v7051_v51  ;;  %v4691_v0 = vperm.slane %v7132_v28, 2 }
0x1f35   :  { %v7151_v13 = vsub.f32 %v4665_v32, %v4670_v6 }
0x1f37   :  { %v4672_v60 = vmul.f32 %v7151_v13, %v7151_v13 }
0x1f39   :  { %v4673_v53 = vsel %vm4440_vm6, %v4672_v60, 0.0 }
0x1f3a   :  { %4674 = vadd.xlane.f32.xlu2 %v4673_v53 }
0x1fa5   :  { %v4783_v18 = vpop.xlane.xlu0 %4782  ;;  %v4567_v14 = vpop.xlane.xlu1 %4566 }
0x1fa6   :  { %v4784_v46 = vmul.f32 %v4783_v18, %v7051_v51  ;;  %v4568_v45 = vmul.f32 %v4567_v14, %v7051_v51  ;;  %v4806_v18 = vperm.slane %v7125_v48, 3 }
0x1fa8   :  { %v4785_v49 = vadd.f32 1e-05, %v4784_v46  ;;  %v4569_v15 = vadd.f32 1e-05, %v4568_v45  ;;  %v4698_v46 = vperm.slane %v7132_v28, 3 }
0x1faa   :  { %5387 = vrsqrt.f32 %v4785_v49  ;;  %vm4792_vm8 = vweird.f32 %v4785_v49  ;;  %vm4576_vm5 = vweird.f32 %v4569_v15 }
0x1fab   :  { %5389 = vrsqrt.f32 %v4569_v15 }
0x1fad   :  { %v4675_v47 = vpop.xlane.xlu2 %4674 }
0x1fae   :  { %v4676_v61 = vmul.f32 %v4675_v47, %v7051_v51  ;;  %v4797_v51 = vperm.slane %v7125_v48, 1  ;;  %v4833_v47 = vperm.slane %v7125_v48, 4 }
0x1fb0   :  { %v5388_v22 = vpop.eup %5387  ;;  %v4677_v33 = vadd.f32 1e-05, %v4676_v61 }
0x1fb1   :  { %v5390_v36 = vpop.eup %5389  ;;  %v4787_v52 = vmul.f32 %v5388_v22, %v4785_v49  ;;  %vm4793_vm14 = vweird.f32 %v5388_v22 }
0x1fb2   :  { %v4571_v24 = vmul.f32 %v5390_v36, %v4569_v15  ;;  %5391 = vrsqrt.f32 %v4677_v33  ;;  %vm4577_vm15 = vweird.f32 %v5390_v36  ;;  %vm4794_vm3 = vmor %vm4792_vm8, %vm4793_vm14  ;;  %vm4684_vm7 = vweird.f32 %v4677_v33 }
0x1fb3   :  { %v4788_v63 = vmul.f32 %v5388_v22, %v4787_v52  ;;  %vm4578_vm6 = vmor %vm4576_vm5, %vm4577_vm15 }
0x1fb4   :  { %v4572_v25 = vmul.f32 %v5390_v36, %v4571_v24  ;;  %v4617_v24 = vperm.slane %v7120_v5, 4 }
0x1fb5   :  { %v4789_v10 = vmul.f32 0.5, %v4788_v63 }
0x1fb6   :  { %v4573_v54 = vmul.f32 0.5, %v4572_v25 }
0x1fb7   :  { %v4790_v56 = vsub.f32 1.5, %v4789_v10 }
0x1fb8   :  { %v5392_v29 = vpop.eup %5391  ;;  %v4574_v44 = vsub.f32 1.5, %v4573_v54 }
0x1fb9   :  { %v4791_v57 = vmul.f32 %v5388_v22, %v4790_v56  ;;  %v4679_v12 = vmul.f32 %v5392_v29, %v4677_v33  ;;  %vm4685_vm0 = vweird.f32 %v5392_v29 }
0x1fba   :  { %v4575_v55 = vmul.f32 %v5390_v36, %v4574_v44  ;;  %vm4686_vm9 = vmor %vm4684_vm7, %vm4685_vm0 }
0x1fbb   :  { %v4795_v35 = vsel %vm4794_vm3, %v5388_v22, %v4791_v57  ;;  %v4680_v7 = vmul.f32 %v5392_v29, %v4679_v12  ;;  %v4725_v22 = vperm.slane %v7132_v28, 4 }
0x1fbc   :  { %v4796_v62 = vmul.f32 %v4795_v35, %v7140_v58  ;;  %v4579_v41 = vsel %vm4578_vm6, %v5390_v36, %v4575_v55 }
0x1fbd   :  { %v4580_v3 = vmul.f32 %v4579_v41, %v7142_v19  ;;  %v4681_v32 = vmul.f32 0.5, %v4680_v7 }
0x1fbe   :  { %v4798_v11 = vmul.f32 %v4797_v51, %v4796_v62 }
0x1fbf   :  { %v4582_v59 = vmul.f32 %v4581_v23, %v4580_v3  ;;  %v4682_v31 = vsub.f32 1.5, %v4681_v32 }
0x1fc0   :  { %v4800_v20 = vadd.f32 %v4799_v1, %v4798_v11 }
0x1fc1   :  { %v4584_v17 = vadd.f32 %v4583_v34, %v4582_v59  ;;  %v4683_v9 = vmul.f32 %v5392_v29, %v4682_v31 }
0x1fc2   :  { %v4801_v21 = vmax.f32 %v4800_v20, 0.0 }
0x1fc3   :  { %v4585_v50 = vmax.f32 %v4584_v17, 0.0  ;;  %v4687_v58 = vsel %vm4686_vm9, %v5392_v29, %v4683_v9 }
0x1fc4   :  { %v4688_v6 = vmul.f32 %v4687_v58, %v7151_v13  ;;  %5055 = vmatmul.msk.f32.vlgmr.msrb.gmra.mxu3 %vm1238_vm4, %v4801_v21  ;;  %v4832_v13 = vld [vmem:[%s7241_s1 + $0xb70] sm:$0xff] }
0x1fc5   :  { %5049 = vmatmul.msk.f32.vlgmr.msrb.gmra.mxu0 %vm1238_vm4, %v4585_v50 }
0x1fc6   :  { %v4690_v19 = vmul.f32 %v4689_v4, %v4688_v6  ;;  %4851 = vmatpush.msrb.mxu0 %v4832_v13 }
0x1fc8   :  { %v4692_v60 = vadd.f32 %v4691_v0, %v4690_v19  ;;  %4852 = vmatpush.msrb.mxu0 %v4831_v26 }
0x1fca   :  { %v4693_v53 = vmax.f32 %v4692_v60, 0.0 }
0x1fcd   :  { %5052 = vmatmul.msk.f32.vlgmr.msra.gmra.mxu0 %vm1238_vm4, %v4693_v53  ;;  %vm4867_vm4 = vcmask 189440  }
0x2042   :  { %v4611_v16 = vpop.f32.mrf.mxu0 }
0x2043   :  { %v4612_v40 = vadd.f32 %v4611_v16, %v4590_v37 }
0x2045   :  { %v4614_v14 = vmax.f32 %v4612_v40, 0.0 }
0x2047   :  { %5050 = vmatmul.msk.f32.vlgmr.msrb.gmra.mxu1 %vm1232_vm2, %v4614_v14  ;;  %v4827_v42 = vpop.f32.mrf.mxu3 }
0x2048   :  { %v4828_v45 = vadd.f32 %v4827_v42, %v4806_v18 }
0x204a   :  { %v4830_v39 = vmax.f32 %v4828_v45, 0.0  ;;  %v4719_v49 = vpop.f32.mrf.mxu0 }
0x204b   :  { %v4720_v15 = vadd.f32 %v4719_v49, %v4698_v46 }
0x204c   :  { %5056 = vmatmul.msk.f32.vlgmr.msrb.gmra.mxu0 %vm1232_vm2, %v4830_v39 }
0x204d   :  { %v4722_v38 = vmax.f32 %v4720_v15, 0.0 }
0x204f   :  { %5053 = vmatmul.msk.f32.vlgmr.msra.gmra.mxu1 %vm1232_vm2, %v4722_v38 }
0x20c4   :  { %v4638_v2 = vpop.f32.mrf.mxu1 }
0x20c5   :  { %v4639_v63 = vadd.f32 %v4638_v2, %v4617_v24 }
0x20c9   :  { %v4854_v61 = vpop.f32.mrf.mxu0 }
0x20ca   :  { %v4855_v33 = vadd.f32 %v4854_v61, %v4833_v47 }
0x20cc   :  { %v4746_v36 = vpop.f32.mrf.mxu1  ;;  %4862 = vrot.lane.b32.xlu0 %v4855_v33, %s5404_s28 }
0x20cd   :  { %v4747_v52 = vadd.f32 %v4746_v36, %v4725_v22 }
0x20cf   :  { %4858 = vrot.lane.b32.xlu1 %v4747_v52, %s5403_s27 }
0x213e   :  { %v4863_v10 = vpop.permute.xlu0 %4862 }
0x2141   :  { %v4859_v25 = vpop.permute.xlu1 %4858 }
0x2142   :  { %v4865_v54 = vsel %vm199_vm1, %v4639_v63, %v4859_v25 }
0x2143   :  { %v4866_v48 = vsel %vm1232_vm2, %v4865_v54, %v4863_v10 }
0x2144   :  { %4868 = vst.msk [vmem:[%s7243_s2] sm:$0x3] %vm4867_vm4, %v4866_v48 }

</bundles_post_ra>
